<compile_context>
chip_gen: v7x
topology: tpu7x:2x2x1
jax: 0.10.0
libtpu: 0.0.40
codegen_flags: <defaults>
</compile_context>

<pallas_src>
import jax
import jax.numpy as jnp
import numpy as np
from jax import lax
from jax.experimental import pallas as pl
from jax.experimental.pallas import tpu as pltpu

EPS = 1e-5
CBLK = 128  # channels per grid step (one full lane-tile group)


def _round_up(v, m):
    return (v + m - 1) // m * m


def _dwconv_bn_kernel(x_ref, w_ref, g_ref, b_ref, out_ref, conv_ref):
    """One 128-channel block of depthwise 3x3 / stride-2 conv + training-mode BN.

    x_ref   : [2, 2, N, Hp, Wp, Cb]  phase-major padded input (row-parity, col-parity,
                                     n, row-pair, col-pair, channel)
    w_ref   : [9, Cb]                depthwise taps, row-major over (kh, kw)
    g_ref   : [1, Cb]  gamma         b_ref: [1, Cb]  beta
    out_ref : [N, Ho, Wo, Cb]
    conv_ref: [N, Ho, Wo, Cb] f32 scratch holding the raw conv rows
    """
    N, Ho, Wo, Cb = out_ref.shape
    Wp = x_ref.shape[4]
    f32 = jnp.float32

    # Weights loaded once; per-tap [1, Cb] rows hoisted out of the row loops.
    w = w_ref[...].astype(f32)
    wt = [w[k:k + 1, :] for k in range(9)]

    def conv_row(n, ho):
        # Six distinct (row-parity, row-pair) planes feeding output row `ho`.
        p00 = x_ref[0, 0, n, ho].astype(f32)       # kh=0, even cols   [Wp, Cb]
        p01 = x_ref[0, 1, n, ho].astype(f32)       # kh=0, odd cols
        p10 = x_ref[1, 0, n, ho].astype(f32)       # kh=1, even cols
        p11 = x_ref[1, 1, n, ho].astype(f32)       # kh=1, odd cols
        p20 = x_ref[0, 0, n, ho + 1].astype(f32)   # kh=2, even cols
        p21 = x_ref[0, 1, n, ho + 1].astype(f32)   # kh=2, odd cols
        # kw=2 needs the *next* even column pair: derive via a sublane roll (XLU)
        # instead of an unaligned offset-1 slice.
        sh = Wp - 1                                 # == roll by -1 on a length-Wp axis
        q00 = pltpu.roll(p00, sh, 0)
        q10 = pltpu.roll(p10, sh, 0)
        q20 = pltpu.roll(p20, sh, 0)
        acc = p00 * wt[0]
        acc += p01 * wt[1]
        acc += q00 * wt[2]
        acc += p10 * wt[3]
        acc += p11 * wt[4]
        acc += q10 * wt[5]
        acc += p20 * wt[6]
        acc += p21 * wt[7]
        acc += q20 * wt[8]
        return acc[:Wo]                             # [Wo, Cb]

    inv_cnt = 1.0 / float(N * Ho * Wo)

    # ---- pass 1: conv rows -> scratch, accumulate per-channel sum (loop carry) ----
    def p1_body(n):
        def body(ho, s):
            row = conv_row(n, ho)
            conv_ref[n, ho] = row
            return s + jnp.sum(row, axis=0, keepdims=True)
        return body

    s = jnp.zeros((1, Cb), f32)
    for n in range(N):
        s = lax.fori_loop(0, Ho, p1_body(n), s, unroll=True)
    mean = s * inv_cnt                              # [1, Cb]

    # ---- pass 2: centered sum of squares (two-pass variance, no cancellation) ----
    def p2_body(n):
        def body(ho, s2):
            d = conv_ref[n, ho] - mean
            return s2 + jnp.sum(d * d, axis=0, keepdims=True)
        return body

    s2 = jnp.zeros((1, Cb), f32)
    for n in range(N):
        s2 = lax.fori_loop(0, Ho, p2_body(n), s2, unroll=True)
    var = s2 * inv_cnt

    inv = lax.rsqrt(var + EPS)
    scale = g_ref[...].astype(f32) * inv            # [1, Cb]
    bias = b_ref[...].astype(f32) - mean * scale

    # ---- pass 3: apply folded scale/bias row-by-row (lane-dense stores) ----
    def p3_body(n):
        def body(ho, c):
            out_ref[n, ho] = (conv_ref[n, ho] * scale + bias).astype(out_ref.dtype)
            return c
        return body

    for n in range(N):
        lax.fori_loop(0, Ho, p3_body(n), 0, unroll=True)


def dwconv3x3s2_bn(x_nchw, weight, gamma, beta):
    """Depthwise Conv2d(C, C, 3, stride=2, pad=1, groups=C, bias=False) + BatchNorm2d(C)
    with batch statistics.  x_nchw: [N, C, H, W]; weight: [C, 1, 3, 3]; gamma/beta: [C].
    Returns NCHW."""
    N, C, H, W = x_nchw.shape
    assert H % 2 == 0 and W % 2 == 0, "stride-2 / pad-1 path expects even H, W"
    Ho, Wo = H // 2, W // 2
    Hp = Ho + 1                       # row pairs in the padded input (leading dim)
    Wp = _round_up(Wo + 1, 8)         # col pairs, rounded up to a full sublane tile
    Cpad = _round_up(C, CBLK)         # lane-dense channel axis

    # ---- layout glue: zero-pad + free reshape + one XLA transpose to phase-major ----
    xp = jnp.pad(x_nchw, ((0, 0), (0, Cpad - C),
                          (1, 2 * Hp - H - 1), (1, 2 * Wp - W - 1)))
    xr = xp.reshape(N, Cpad, Hp, 2, Wp, 2)                    # contiguous, free
    xphase = jnp.transpose(xr, (3, 5, 0, 2, 4, 1))            # [2, 2, N, Hp, Wp, Cpad]

    # depthwise weight [C,1,3,3] -> [9, Cpad], row-major over (kh, kw)
    w9c = jnp.transpose(weight[:, 0, :, :], (1, 2, 0)).reshape(9, C)
    w9c = jnp.pad(w9c, ((0, 0), (0, Cpad - C)))
    g2 = jnp.pad(gamma.reshape(1, C), ((0, 0), (0, Cpad - C)))
    b2 = jnp.pad(beta.reshape(1, C), ((0, 0), (0, Cpad - C)))

    out = pl.pallas_call(
        _dwconv_bn_kernel,
        out_shape=jax.ShapeDtypeStruct((N, Ho, Wo, Cpad), x_nchw.dtype),
        grid=(Cpad // CBLK,),
        in_specs=[
            pl.BlockSpec((2, 2, N, Hp, Wp, CBLK), lambda i: (0, 0, 0, 0, 0, i)),
            pl.BlockSpec((9, CBLK), lambda i: (0, i)),
            pl.BlockSpec((1, CBLK), lambda i: (0, i)),
            pl.BlockSpec((1, CBLK), lambda i: (0, i)),
        ],
        out_specs=pl.BlockSpec((N, Ho, Wo, CBLK), lambda i: (0, 0, 0, i)),
        scratch_shapes=[pltpu.VMEM((N, Ho, Wo, CBLK), jnp.float32)],
        compiler_params=pltpu.CompilerParams(
            dimension_semantics=("parallel",),
        ),
    )(xphase, w9c, g2, b2)

    # NHWC -> NCHW + drop channel padding: one fused slice+transpose XLA pass.
    return jnp.transpose(out[..., :C], (0, 3, 1, 2))


if __name__ == "__main__":
    key = jax.random.PRNGKey(0)
    k1, k2, k3, k4 = jax.random.split(key, 4)

    # Shapes from the original module: x102 = [1, 176, 28, 28]
    N, C, H, W = 1, 176, 28, 28
    x = jax.random.normal(k1, (N, C, H, W), dtype=jnp.float32)
    weight = 0.1 * jax.random.normal(k2, (C, 1, 3, 3), dtype=jnp.float32)
    gamma = 1.0 + 0.1 * jax.random.normal(k3, (C,), dtype=jnp.float32)
    beta = 0.1 * jax.random.normal(k4, (C,), dtype=jnp.float32)

    fn = jax.jit(dwconv3x3s2_bn)
    y = jax.block_until_ready(fn(x, weight, gamma, beta))

    # pure-JAX reference: depthwise conv + training-mode (batch-stats) BatchNorm
    ref_conv = jax.lax.conv_general_dilated(
        x, weight, window_strides=(2, 2), padding=((1, 1), (1, 1)),
        dimension_numbers=("NCHW", "OIHW", "NCHW"), feature_group_count=C)
    m = ref_conv.mean(axis=(0, 2, 3), keepdims=True)
    v = ((ref_conv - m) ** 2).mean(axis=(0, 2, 3), keepdims=True)
    ref = ((ref_conv - m) * jax.lax.rsqrt(v + EPS) * gamma.reshape(1, C, 1, 1)
           + beta.reshape(1, C, 1, 1))

    assert y.shape == (N, C, H // 2, W // 2)
    assert np.allclose(np.asarray(y), np.asarray(ref), atol=1e-4, rtol=1e-4)
    print("KERNEL_OK")
</pallas_src>

<mosaic_0001>
module attributes {stable_mosaic.version = 11 : i64} {
  func.func @_dwconv_bn_kernel(%arg0: i32, %arg1: memref<2x2x1x15x16x128xf32, #tpu.memory_space<vmem>>, %arg2: memref<9x128xf32, #tpu.memory_space<vmem>>, %arg3: memref<1x128xf32, #tpu.memory_space<vmem>>, %arg4: memref<1x128xf32, #tpu.memory_space<vmem>>, %arg5: memref<1x14x14x128xf32, #tpu.memory_space<vmem>>, %arg6: memref<1x14x14x128xf32, #tpu.memory_space<vmem>>) attributes {dimension_semantics = [#tpu.dimension_semantics<parallel>], iteration_bounds = array<i64: 2>, scalar_prefetch = 0 : i64, scratch_operands = 1 : i64, tpu.core_type = #tpu.core_type<tc>, window_params = [{transform_indices = @transform_0, window_bounds = array<i64: 2, 2, 1, 15, 16, 128>}, {transform_indices = @transform_1, window_bounds = array<i64: 9, 128>}, {transform_indices = @transform_2, window_bounds = array<i64: 1, 128>}, {transform_indices = @transform_3, window_bounds = array<i64: 1, 128>}, {transform_indices = @transform_4, window_bounds = array<i64: 1, 14, 14, 128>}]} {
    %c0 = arith.constant 0 : index
    %c0_0 = arith.constant 0 : index
    %0 = vector.load %arg2[%c0, %c0_0] : memref<9x128xf32, #tpu.memory_space<vmem>>, vector<9x128xf32>
    %1 = vector.extract_strided_slice %0 {offsets = [0, 0], sizes = [1, 128], strides = [1, 1]} : vector<9x128xf32> to vector<1x128xf32>
    %2 = vector.extract_strided_slice %0 {offsets = [1, 0], sizes = [1, 128], strides = [1, 1]} : vector<9x128xf32> to vector<1x128xf32>
    %3 = vector.extract_strided_slice %0 {offsets = [2, 0], sizes = [1, 128], strides = [1, 1]} : vector<9x128xf32> to vector<1x128xf32>
    %4 = vector.extract_strided_slice %0 {offsets = [3, 0], sizes = [1, 128], strides = [1, 1]} : vector<9x128xf32> to vector<1x128xf32>
    %5 = vector.extract_strided_slice %0 {offsets = [4, 0], sizes = [1, 128], strides = [1, 1]} : vector<9x128xf32> to vector<1x128xf32>
    %6 = vector.extract_strided_slice %0 {offsets = [5, 0], sizes = [1, 128], strides = [1, 1]} : vector<9x128xf32> to vector<1x128xf32>
    %7 = vector.extract_strided_slice %0 {offsets = [6, 0], sizes = [1, 128], strides = [1, 1]} : vector<9x128xf32> to vector<1x128xf32>
    %8 = vector.extract_strided_slice %0 {offsets = [7, 0], sizes = [1, 128], strides = [1, 1]} : vector<9x128xf32> to vector<1x128xf32>
    %9 = vector.extract_strided_slice %0 {offsets = [8, 0], sizes = [1, 128], strides = [1, 1]} : vector<9x128xf32> to vector<1x128xf32>
    %cst = arith.constant 0.000000e+00 : f32
    %10 = vector.broadcast %cst : f32 to vector<1x128xf32>
    %c0_i32 = arith.constant 0 : i32
    %c0_1 = arith.constant 0 : index
    %c0_2 = arith.constant 0 : index
    %c0_3 = arith.constant 0 : index
    %11 = arith.index_cast %c0_i32 : i32 to index
    %c0_4 = arith.constant 0 : index
    %c0_5 = arith.constant 0 : index
    %12 = vector.load %arg1[%c0_1, %c0_2, %c0_3, %11, %c0_4, %c0_5] : memref<2x2x1x15x16x128xf32, #tpu.memory_space<vmem>>, vector<1x1x1x1x16x128xf32>
    %13 = vector.shape_cast %12 : vector<1x1x1x1x16x128xf32> to vector<16x128xf32>
    %c0_6 = arith.constant 0 : index
    %c1 = arith.constant 1 : index
    %c0_7 = arith.constant 0 : index
    %14 = arith.index_cast %c0_i32 : i32 to index
    %c0_8 = arith.constant 0 : index
    %c0_9 = arith.constant 0 : index
    %15 = vector.load %arg1[%c0_6, %c1, %c0_7, %14, %c0_8, %c0_9] : memref<2x2x1x15x16x128xf32, #tpu.memory_space<vmem>>, vector<1x1x1x1x16x128xf32>
    %16 = vector.shape_cast %15 : vector<1x1x1x1x16x128xf32> to vector<16x128xf32>
    %c1_10 = arith.constant 1 : index
    %c0_11 = arith.constant 0 : index
    %c0_12 = arith.constant 0 : index
    %17 = arith.index_cast %c0_i32 : i32 to index
    %c0_13 = arith.constant 0 : index
    %c0_14 = arith.constant 0 : index
    %18 = vector.load %arg1[%c1_10, %c0_11, %c0_12, %17, %c0_13, %c0_14] : memref<2x2x1x15x16x128xf32, #tpu.memory_space<vmem>>, vector<1x1x1x1x16x128xf32>
    %19 = vector.shape_cast %18 : vector<1x1x1x1x16x128xf32> to vector<16x128xf32>
    %c1_15 = arith.constant 1 : index
    %c1_16 = arith.constant 1 : index
    %c0_17 = arith.constant 0 : index
    %20 = arith.index_cast %c0_i32 : i32 to index
    %c0_18 = arith.constant 0 : index
    %c0_19 = arith.constant 0 : index
    %21 = vector.load %arg1[%c1_15, %c1_16, %c0_17, %20, %c0_18, %c0_19] : memref<2x2x1x15x16x128xf32, #tpu.memory_space<vmem>>, vector<1x1x1x1x16x128xf32>
    %22 = vector.shape_cast %21 : vector<1x1x1x1x16x128xf32> to vector<16x128xf32>
    %c1_i32 = arith.constant 1 : i32
    %23 = arith.addi %c0_i32, %c1_i32 : i32
    %c0_20 = arith.constant 0 : index
    %c0_21 = arith.constant 0 : index
    %c0_22 = arith.constant 0 : index
    %24 = arith.index_cast %23 : i32 to index
    %c0_23 = arith.constant 0 : index
    %c0_24 = arith.constant 0 : index
    %25 = vector.load %arg1[%c0_20, %c0_21, %c0_22, %24, %c0_23, %c0_24] : memref<2x2x1x15x16x128xf32, #tpu.memory_space<vmem>>, vector<1x1x1x1x16x128xf32>
    %26 = vector.shape_cast %25 : vector<1x1x1x1x16x128xf32> to vector<16x128xf32>
    %c1_i32_25 = arith.constant 1 : i32
    %27 = arith.addi %c0_i32, %c1_i32_25 : i32
    %c0_26 = arith.constant 0 : index
    %c1_27 = arith.constant 1 : index
    %c0_28 = arith.constant 0 : index
    %28 = arith.index_cast %27 : i32 to index
    %c0_29 = arith.constant 0 : index
    %c0_30 = arith.constant 0 : index
    %29 = vector.load %arg1[%c0_26, %c1_27, %c0_28, %28, %c0_29, %c0_30] : memref<2x2x1x15x16x128xf32, #tpu.memory_space<vmem>>, vector<1x1x1x1x16x128xf32>
    %30 = vector.shape_cast %29 : vector<1x1x1x1x16x128xf32> to vector<16x128xf32>
    %c15_i32 = arith.constant 15 : i32
    %31 = tpu.dynamic_rotate %13 by %c15_i32 dim 0 : vector<16x128xf32>, i32 -> vector<16x128xf32>
    %c15_i32_31 = arith.constant 15 : i32
    %32 = tpu.dynamic_rotate %19 by %c15_i32_31 dim 0 : vector<16x128xf32>, i32 -> vector<16x128xf32>
    %c15_i32_32 = arith.constant 15 : i32
    %33 = tpu.dynamic_rotate %26 by %c15_i32_32 dim 0 : vector<16x128xf32>, i32 -> vector<16x128xf32>
    %34 = vector.broadcast %1 : vector<1x128xf32> to vector<16x128xf32>
    %35 = arith.mulf %13, %34 : vector<16x128xf32>
    %36 = vector.broadcast %2 : vector<1x128xf32> to vector<16x128xf32>
    %37 = arith.mulf %16, %36 : vector<16x128xf32>
    %38 = arith.addf %35, %37 : vector<16x128xf32>
    %39 = vector.broadcast %3 : vector<1x128xf32> to vector<16x128xf32>
    %40 = arith.mulf %31, %39 : vector<16x128xf32>
    %41 = arith.addf %38, %40 : vector<16x128xf32>
    %42 = vector.broadcast %4 : vector<1x128xf32> to vector<16x128xf32>
    %43 = arith.mulf %19, %42 : vector<16x128xf32>
    %44 = arith.addf %41, %43 : vector<16x128xf32>
    %45 = vector.broadcast %5 : vector<1x128xf32> to vector<16x128xf32>
    %46 = arith.mulf %22, %45 : vector<16x128xf32>
    %47 = arith.addf %44, %46 : vector<16x128xf32>
    %48 = vector.broadcast %6 : vector<1x128xf32> to vector<16x128xf32>
    %49 = arith.mulf %32, %48 : vector<16x128xf32>
    %50 = arith.addf %47, %49 : vector<16x128xf32>
    %51 = vector.broadcast %7 : vector<1x128xf32> to vector<16x128xf32>
    %52 = arith.mulf %26, %51 : vector<16x128xf32>
    %53 = arith.addf %50, %52 : vector<16x128xf32>
    %54 = vector.broadcast %8 : vector<1x128xf32> to vector<16x128xf32>
    %55 = arith.mulf %30, %54 : vector<16x128xf32>
    %56 = arith.addf %53, %55 : vector<16x128xf32>
    %57 = vector.broadcast %9 : vector<1x128xf32> to vector<16x128xf32>
    %58 = arith.mulf %33, %57 : vector<16x128xf32>
    %59 = arith.addf %56, %58 : vector<16x128xf32>
    %60 = vector.extract_strided_slice %59 {offsets = [0, 0], sizes = [14, 128], strides = [1, 1]} : vector<16x128xf32> to vector<14x128xf32>
    %c0_33 = arith.constant 0 : index
    %61 = arith.index_cast %c0_i32 : i32 to index
    %c0_34 = arith.constant 0 : index
    %c0_35 = arith.constant 0 : index
    %62 = vector.load %arg6[%c0_33, %61, %c0_34, %c0_35] : memref<1x14x14x128xf32, #tpu.memory_space<vmem>>, vector<1x1x14x128xf32>
    %63 = vector.shape_cast %62 : vector<1x1x14x128xf32> to vector<14x128xf32>
    %64 = vector.shape_cast %60 : vector<14x128xf32> to vector<1x1x14x128xf32>
    tpu.vector_store %arg6[%c0_33, %61, %c0_34, %c0_35], %64 {strides = array<i32>} : memref<1x14x14x128xf32, #tpu.memory_space<vmem>>, vector<1x1x14x128xf32>,
    %cst_36 = arith.constant dense<0.000000e+00> : vector<128xf32>
    %65 = vector.multi_reduction <add>, %60, %cst_36 [0] : vector<14x128xf32> to vector<128xf32>
    %66 = vector.shape_cast %65 : vector<128xf32> to vector<1x128xf32>
    %67 = arith.addf %10, %66 : vector<1x128xf32>
    %c1_i32_37 = arith.constant 1 : i32
    %c0_38 = arith.constant 0 : index
    %c0_39 = arith.constant 0 : index
    %c0_40 = arith.constant 0 : index
    %68 = arith.index_cast %c1_i32_37 : i32 to index
    %c0_41 = arith.constant 0 : index
    %c0_42 = arith.constant 0 : index
    %69 = vector.load %arg1[%c0_38, %c0_39, %c0_40, %68, %c0_41, %c0_42] : memref<2x2x1x15x16x128xf32, #tpu.memory_space<vmem>>, vector<1x1x1x1x16x128xf32>
    %70 = vector.shape_cast %69 : vector<1x1x1x1x16x128xf32> to vector<16x128xf32>
    %c0_43 = arith.constant 0 : index
    %c1_44 = arith.constant 1 : index
    %c0_45 = arith.constant 0 : index
    %71 = arith.index_cast %c1_i32_37 : i32 to index
    %c0_46 = arith.constant 0 : index
    %c0_47 = arith.constant 0 : index
    %72 = vector.load %arg1[%c0_43, %c1_44, %c0_45, %71, %c0_46, %c0_47] : memref<2x2x1x15x16x128xf32, #tpu.memory_space<vmem>>, vector<1x1x1x1x16x128xf32>
    %73 = vector.shape_cast %72 : vector<1x1x1x1x16x128xf32> to vector<16x128xf32>
    %c1_48 = arith.constant 1 : index
    %c0_49 = arith.constant 0 : index
    %c0_50 = arith.constant 0 : index
    %74 = arith.index_cast %c1_i32_37 : i32 to index
    %c0_51 = arith.constant 0 : index
    %c0_52 = arith.constant 0 : index
    %75 = vector.load %arg1[%c1_48, %c0_49, %c0_50, %74, %c0_51, %c0_52] : memref<2x2x1x15x16x128xf32, #tpu.memory_space<vmem>>, vector<1x1x1x1x16x128xf32>
    %76 = vector.shape_cast %75 : vector<1x1x1x1x16x128xf32> to vector<16x128xf32>
    %c1_53 = arith.constant 1 : index
    %c1_54 = arith.constant 1 : index
    %c0_55 = arith.constant 0 : index
    %77 = arith.index_cast %c1_i32_37 : i32 to index
    %c0_56 = arith.constant 0 : index
    %c0_57 = arith.constant 0 : index
    %78 = vector.load %arg1[%c1_53, %c1_54, %c0_55, %77, %c0_56, %c0_57] : memref<2x2x1x15x16x128xf32, #tpu.memory_space<vmem>>, vector<1x1x1x1x16x128xf32>
    %79 = vector.shape_cast %78 : vector<1x1x1x1x16x128xf32> to vector<16x128xf32>
    %c1_i32_58 = arith.constant 1 : i32
    %80 = arith.addi %c1_i32_37, %c1_i32_58 : i32
    %c0_59 = arith.constant 0 : index
    %c0_60 = arith.constant 0 : index
    %c0_61 = arith.constant 0 : index
    %81 = arith.index_cast %80 : i32 to index
    %c0_62 = arith.constant 0 : index
    %c0_63 = arith.constant 0 : index
    %82 = vector.load %arg1[%c0_59, %c0_60, %c0_61, %81, %c0_62, %c0_63] : memref<2x2x1x15x16x128xf32, #tpu.memory_space<vmem>>, vector<1x1x1x1x16x128xf32>
    %83 = vector.shape_cast %82 : vector<1x1x1x1x16x128xf32> to vector<16x128xf32>
    %c1_i32_64 = arith.constant 1 : i32
    %84 = arith.addi %c1_i32_37, %c1_i32_64 : i32
    %c0_65 = arith.constant 0 : index
    %c1_66 = arith.constant 1 : index
    %c0_67 = arith.constant 0 : index
    %85 = arith.index_cast %84 : i32 to index
    %c0_68 = arith.constant 0 : index
    %c0_69 = arith.constant 0 : index
    %86 = vector.load %arg1[%c0_65, %c1_66, %c0_67, %85, %c0_68, %c0_69] : memref<2x2x1x15x16x128xf32, #tpu.memory_space<vmem>>, vector<1x1x1x1x16x128xf32>
    %87 = vector.shape_cast %86 : vector<1x1x1x1x16x128xf32> to vector<16x128xf32>
    %c15_i32_70 = arith.constant 15 : i32
    %88 = tpu.dynamic_rotate %70 by %c15_i32_70 dim 0 : vector<16x128xf32>, i32 -> vector<16x128xf32>
    %c15_i32_71 = arith.constant 15 : i32
    %89 = tpu.dynamic_rotate %76 by %c15_i32_71 dim 0 : vector<16x128xf32>, i32 -> vector<16x128xf32>
    %c15_i32_72 = arith.constant 15 : i32
    %90 = tpu.dynamic_rotate %83 by %c15_i32_72 dim 0 : vector<16x128xf32>, i32 -> vector<16x128xf32>
    %91 = vector.broadcast %1 : vector<1x128xf32> to vector<16x128xf32>
    %92 = arith.mulf %70, %91 : vector<16x128xf32>
    %93 = vector.broadcast %2 : vector<1x128xf32> to vector<16x128xf32>
    %94 = arith.mulf %73, %93 : vector<16x128xf32>
    %95 = arith.addf %92, %94 : vector<16x128xf32>
    %96 = vector.broadcast %3 : vector<1x128xf32> to vector<16x128xf32>
    %97 = arith.mulf %88, %96 : vector<16x128xf32>
    %98 = arith.addf %95, %97 : vector<16x128xf32>
    %99 = vector.broadcast %4 : vector<1x128xf32> to vector<16x128xf32>
    %100 = arith.mulf %76, %99 : vector<16x128xf32>
    %101 = arith.addf %98, %100 : vector<16x128xf32>
    %102 = vector.broadcast %5 : vector<1x128xf32> to vector<16x128xf32>
    %103 = arith.mulf %79, %102 : vector<16x128xf32>
    %104 = arith.addf %101, %103 : vector<16x128xf32>
    %105 = vector.broadcast %6 : vector<1x128xf32> to vector<16x128xf32>
    %106 = arith.mulf %89, %105 : vector<16x128xf32>
    %107 = arith.addf %104, %106 : vector<16x128xf32>
    %108 = vector.broadcast %7 : vector<1x128xf32> to vector<16x128xf32>
    %109 = arith.mulf %83, %108 : vector<16x128xf32>
    %110 = arith.addf %107, %109 : vector<16x128xf32>
    %111 = vector.broadcast %8 : vector<1x128xf32> to vector<16x128xf32>
    %112 = arith.mulf %87, %111 : vector<16x128xf32>
    %113 = arith.addf %110, %112 : vector<16x128xf32>
    %114 = vector.broadcast %9 : vector<1x128xf32> to vector<16x128xf32>
    %115 = arith.mulf %90, %114 : vector<16x128xf32>
    %116 = arith.addf %113, %115 : vector<16x128xf32>
    %117 = vector.extract_strided_slice %116 {offsets = [0, 0], sizes = [14, 128], strides = [1, 1]} : vector<16x128xf32> to vector<14x128xf32>
    %c0_73 = arith.constant 0 : index
    %118 = arith.index_cast %c1_i32_37 : i32 to index
    %c0_74 = arith.constant 0 : index
    %c0_75 = arith.constant 0 : index
    %119 = vector.load %arg6[%c0_73, %118, %c0_74, %c0_75] : memref<1x14x14x128xf32, #tpu.memory_space<vmem>>, vector<1x1x14x128xf32>
    %120 = vector.shape_cast %119 : vector<1x1x14x128xf32> to vector<14x128xf32>
    %121 = vector.shape_cast %117 : vector<14x128xf32> to vector<1x1x14x128xf32>
    tpu.vector_store %arg6[%c0_73, %118, %c0_74, %c0_75], %121 {strides = array<i32>} : memref<1x14x14x128xf32, #tpu.memory_space<vmem>>, vector<1x1x14x128xf32>,
    %cst_76 = arith.constant dense<0.000000e+00> : vector<128xf32>
    %122 = vector.multi_reduction <add>, %117, %cst_76 [0] : vector<14x128xf32> to vector<128xf32>
    %123 = vector.shape_cast %122 : vector<128xf32> to vector<1x128xf32>
    %124 = arith.addf %67, %123 : vector<1x128xf32>
    %c2_i32 = arith.constant 2 : i32
    %c0_77 = arith.constant 0 : index
    %c0_78 = arith.constant 0 : index
    %c0_79 = arith.constant 0 : index
    %125 = arith.index_cast %c2_i32 : i32 to index
    %c0_80 = arith.constant 0 : index
    %c0_81 = arith.constant 0 : index
    %126 = vector.load %arg1[%c0_77, %c0_78, %c0_79, %125, %c0_80, %c0_81] : memref<2x2x1x15x16x128xf32, #tpu.memory_space<vmem>>, vector<1x1x1x1x16x128xf32>
    %127 = vector.shape_cast %126 : vector<1x1x1x1x16x128xf32> to vector<16x128xf32>
    %c0_82 = arith.constant 0 : index
    %c1_83 = arith.constant 1 : index
    %c0_84 = arith.constant 0 : index
    %128 = arith.index_cast %c2_i32 : i32 to index
    %c0_85 = arith.constant 0 : index
    %c0_86 = arith.constant 0 : index
    %129 = vector.load %arg1[%c0_82, %c1_83, %c0_84, %128, %c0_85, %c0_86] : memref<2x2x1x15x16x128xf32, #tpu.memory_space<vmem>>, vector<1x1x1x1x16x128xf32>
    %130 = vector.shape_cast %129 : vector<1x1x1x1x16x128xf32> to vector<16x128xf32>
    %c1_87 = arith.constant 1 : index
    %c0_88 = arith.constant 0 : index
    %c0_89 = arith.constant 0 : index
    %131 = arith.index_cast %c2_i32 : i32 to index
    %c0_90 = arith.constant 0 : index
    %c0_91 = arith.constant 0 : index
    %132 = vector.load %arg1[%c1_87, %c0_88, %c0_89, %131, %c0_90, %c0_91] : memref<2x2x1x15x16x128xf32, #tpu.memory_space<vmem>>, vector<1x1x1x1x16x128xf32>
    %133 = vector.shape_cast %132 : vector<1x1x1x1x16x128xf32> to vector<16x128xf32>
    %c1_92 = arith.constant 1 : index
    %c1_93 = arith.constant 1 : index
    %c0_94 = arith.constant 0 : index
    %134 = arith.index_cast %c2_i32 : i32 to index
    %c0_95 = arith.constant 0 : index
    %c0_96 = arith.constant 0 : index
    %135 = vector.load %arg1[%c1_92, %c1_93, %c0_94, %134, %c0_95, %c0_96] : memref<2x2x1x15x16x128xf32, #tpu.memory_space<vmem>>, vector<1x1x1x1x16x128xf32>
    %136 = vector.shape_cast %135 : vector<1x1x1x1x16x128xf32> to vector<16x128xf32>
    %c1_i32_97 = arith.constant 1 : i32
    %137 = arith.addi %c2_i32, %c1_i32_97 : i32
    %c0_98 = arith.constant 0 : index
    %c0_99 = arith.constant 0 : index
    %c0_100 = arith.constant 0 : index
    %138 = arith.index_cast %137 : i32 to index
    %c0_101 = arith.constant 0 : index
    %c0_102 = arith.constant 0 : index
    %139 = vector.load %arg1[%c0_98, %c0_99, %c0_100, %138, %c0_101, %c0_102] : memref<2x2x1x15x16x128xf32, #tpu.memory_space<vmem>>, vector<1x1x1x1x16x128xf32>
    %140 = vector.shape_cast %139 : vector<1x1x1x1x16x128xf32> to vector<16x128xf32>
    %c1_i32_103 = arith.constant 1 : i32
    %141 = arith.addi %c2_i32, %c1_i32_103 : i32
    %c0_104 = arith.constant 0 : index
    %c1_105 = arith.constant 1 : index
    %c0_106 = arith.constant 0 : index
    %142 = arith.index_cast %141 : i32 to index
    %c0_107 = arith.constant 0 : index
    %c0_108 = arith.constant 0 : index
    %143 = vector.load %arg1[%c0_104, %c1_105, %c0_106, %142, %c0_107, %c0_108] : memref<2x2x1x15x16x128xf32, #tpu.memory_space<vmem>>, vector<1x1x1x1x16x128xf32>
    %144 = vector.shape_cast %143 : vector<1x1x1x1x16x128xf32> to vector<16x128xf32>
    %c15_i32_109 = arith.constant 15 : i32
    %145 = tpu.dynamic_rotate %127 by %c15_i32_109 dim 0 : vector<16x128xf32>, i32 -> vector<16x128xf32>
    %c15_i32_110 = arith.constant 15 : i32
    %146 = tpu.dynamic_rotate %133 by %c15_i32_110 dim 0 : vector<16x128xf32>, i32 -> vector<16x128xf32>
    %c15_i32_111 = arith.constant 15 : i32
    %147 = tpu.dynamic_rotate %140 by %c15_i32_111 dim 0 : vector<16x128xf32>, i32 -> vector<16x128xf32>
    %148 = vector.broadcast %1 : vector<1x128xf32> to vector<16x128xf32>
    %149 = arith.mulf %127, %148 : vector<16x128xf32>
    %150 = vector.broadcast %2 : vector<1x128xf32> to vector<16x128xf32>
    %151 = arith.mulf %130, %150 : vector<16x128xf32>
    %152 = arith.addf %149, %151 : vector<16x128xf32>
    %153 = vector.broadcast %3 : vector<1x128xf32> to vector<16x128xf32>
    %154 = arith.mulf %145, %153 : vector<16x128xf32>
    %155 = arith.addf %152, %154 : vector<16x128xf32>
    %156 = vector.broadcast %4 : vector<1x128xf32> to vector<16x128xf32>
    %157 = arith.mulf %133, %156 : vector<16x128xf32>
    %158 = arith.addf %155, %157 : vector<16x128xf32>
    %159 = vector.broadcast %5 : vector<1x128xf32> to vector<16x128xf32>
    %160 = arith.mulf %136, %159 : vector<16x128xf32>
    %161 = arith.addf %158, %160 : vector<16x128xf32>
    %162 = vector.broadcast %6 : vector<1x128xf32> to vector<16x128xf32>
    %163 = arith.mulf %146, %162 : vector<16x128xf32>
    %164 = arith.addf %161, %163 : vector<16x128xf32>
    %165 = vector.broadcast %7 : vector<1x128xf32> to vector<16x128xf32>
    %166 = arith.mulf %140, %165 : vector<16x128xf32>
    %167 = arith.addf %164, %166 : vector<16x128xf32>
    %168 = vector.broadcast %8 : vector<1x128xf32> to vector<16x128xf32>
    %169 = arith.mulf %144, %168 : vector<16x128xf32>
    %170 = arith.addf %167, %169 : vector<16x128xf32>
    %171 = vector.broadcast %9 : vector<1x128xf32> to vector<16x128xf32>
    %172 = arith.mulf %147, %171 : vector<16x128xf32>
    %173 = arith.addf %170, %172 : vector<16x128xf32>
    %174 = vector.extract_strided_slice %173 {offsets = [0, 0], sizes = [14, 128], strides = [1, 1]} : vector<16x128xf32> to vector<14x128xf32>
    %c0_112 = arith.constant 0 : index
    %175 = arith.index_cast %c2_i32 : i32 to index
    %c0_113 = arith.constant 0 : index
    %c0_114 = arith.constant 0 : index
    %176 = vector.load %arg6[%c0_112, %175, %c0_113, %c0_114] : memref<1x14x14x128xf32, #tpu.memory_space<vmem>>, vector<1x1x14x128xf32>
    %177 = vector.shape_cast %176 : vector<1x1x14x128xf32> to vector<14x128xf32>
    %178 = vector.shape_cast %174 : vector<14x128xf32> to vector<1x1x14x128xf32>
    tpu.vector_store %arg6[%c0_112, %175, %c0_113, %c0_114], %178 {strides = array<i32>} : memref<1x14x14x128xf32, #tpu.memory_space<vmem>>, vector<1x1x14x128xf32>,
    %cst_115 = arith.constant dense<0.000000e+00> : vector<128xf32>
    %179 = vector.multi_reduction <add>, %174, %cst_115 [0] : vector<14x128xf32> to vector<128xf32>
    %180 = vector.shape_cast %179 : vector<128xf32> to vector<1x128xf32>
    %181 = arith.addf %124, %180 : vector<1x128xf32>
    %c3_i32 = arith.constant 3 : i32
    %c0_116 = arith.constant 0 : index
    %c0_117 = arith.constant 0 : index
    %c0_118 = arith.constant 0 : index
    %182 = arith.index_cast %c3_i32 : i32 to index
    %c0_119 = arith.constant 0 : index
    %c0_120 = arith.constant 0 : index
    %183 = vector.load %arg1[%c0_116, %c0_117, %c0_118, %182, %c0_119, %c0_120] : memref<2x2x1x15x16x128xf32, #tpu.memory_space<vmem>>, vector<1x1x1x1x16x128xf32>
    %184 = vector.shape_cast %183 : vector<1x1x1x1x16x128xf32> to vector<16x128xf32>
    %c0_121 = arith.constant 0 : index
    %c1_122 = arith.constant 1 : index
    %c0_123 = arith.constant 0 : index
    %185 = arith.index_cast %c3_i32 : i32 to index
    %c0_124 = arith.constant 0 : index
    %c0_125 = arith.constant 0 : index
    %186 = vector.load %arg1[%c0_121, %c1_122, %c0_123, %185, %c0_124, %c0_125] : memref<2x2x1x15x16x128xf32, #tpu.memory_space<vmem>>, vector<1x1x1x1x16x128xf32>
    %187 = vector.shape_cast %186 : vector<1x1x1x1x16x128xf32> to vector<16x128xf32>
    %c1_126 = arith.constant 1 : index
    %c0_127 = arith.constant 0 : index
    %c0_128 = arith.constant 0 : index
    %188 = arith.index_cast %c3_i32 : i32 to index
    %c0_129 = arith.constant 0 : index
    %c0_130 = arith.constant 0 : index
    %189 = vector.load %arg1[%c1_126, %c0_127, %c0_128, %188, %c0_129, %c0_130] : memref<2x2x1x15x16x128xf32, #tpu.memory_space<vmem>>, vector<1x1x1x1x16x128xf32>
    %190 = vector.shape_cast %189 : vector<1x1x1x1x16x128xf32> to vector<16x128xf32>
    %c1_131 = arith.constant 1 : index
    %c1_132 = arith.constant 1 : index
    %c0_133 = arith.constant 0 : index
    %191 = arith.index_cast %c3_i32 : i32 to index
    %c0_134 = arith.constant 0 : index
    %c0_135 = arith.constant 0 : index
    %192 = vector.load %arg1[%c1_131, %c1_132, %c0_133, %191, %c0_134, %c0_135] : memref<2x2x1x15x16x128xf32, #tpu.memory_space<vmem>>, vector<1x1x1x1x16x128xf32>
    %193 = vector.shape_cast %192 : vector<1x1x1x1x16x128xf32> to vector<16x128xf32>
    %c1_i32_136 = arith.constant 1 : i32
    %194 = arith.addi %c3_i32, %c1_i32_136 : i32
    %c0_137 = arith.constant 0 : index
    %c0_138 = arith.constant 0 : index
    %c0_139 = arith.constant 0 : index
    %195 = arith.index_cast %194 : i32 to index
    %c0_140 = arith.constant 0 : index
    %c0_141 = arith.constant 0 : index
    %196 = vector.load %arg1[%c0_137, %c0_138, %c0_139, %195, %c0_140, %c0_141] : memref<2x2x1x15x16x128xf32, #tpu.memory_space<vmem>>, vector<1x1x1x1x16x128xf32>
    %197 = vector.shape_cast %196 : vector<1x1x1x1x16x128xf32> to vector<16x128xf32>
    %c1_i32_142 = arith.constant 1 : i32
    %198 = arith.addi %c3_i32, %c1_i32_142 : i32
    %c0_143 = arith.constant 0 : index
    %c1_144 = arith.constant 1 : index
    %c0_145 = arith.constant 0 : index
    %199 = arith.index_cast %198 : i32 to index
    %c0_146 = arith.constant 0 : index
    %c0_147 = arith.constant 0 : index
    %200 = vector.load %arg1[%c0_143, %c1_144, %c0_145, %199, %c0_146, %c0_147] : memref<2x2x1x15x16x128xf32, #tpu.memory_space<vmem>>, vector<1x1x1x1x16x128xf32>
    %201 = vector.shape_cast %200 : vector<1x1x1x1x16x128xf32> to vector<16x128xf32>
    %c15_i32_148 = arith.constant 15 : i32
    %202 = tpu.dynamic_rotate %184 by %c15_i32_148 dim 0 : vector<16x128xf32>, i32 -> vector<16x128xf32>
    %c15_i32_149 = arith.constant 15 : i32
    %203 = tpu.dynamic_rotate %190 by %c15_i32_149 dim 0 : vector<16x128xf32>, i32 -> vector<16x128xf32>
    %c15_i32_150 = arith.constant 15 : i32
    %204 = tpu.dynamic_rotate %197 by %c15_i32_150 dim 0 : vector<16x128xf32>, i32 -> vector<16x128xf32>
    %205 = vector.broadcast %1 : vector<1x128xf32> to vector<16x128xf32>
    %206 = arith.mulf %184, %205 : vector<16x128xf32>
    %207 = vector.broadcast %2 : vector<1x128xf32> to vector<16x128xf32>
    %208 = arith.mulf %187, %207 : vector<16x128xf32>
    %209 = arith.addf %206, %208 : vector<16x128xf32>
    %210 = vector.broadcast %3 : vector<1x128xf32> to vector<16x128xf32>
    %211 = arith.mulf %202, %210 : vector<16x128xf32>
    %212 = arith.addf %209, %211 : vector<16x128xf32>
    %213 = vector.broadcast %4 : vector<1x128xf32> to vector<16x128xf32>
    %214 = arith.mulf %190, %213 : vector<16x128xf32>
    %215 = arith.addf %212, %214 : vector<16x128xf32>
    %216 = vector.broadcast %5 : vector<1x128xf32> to vector<16x128xf32>
    %217 = arith.mulf %193, %216 : vector<16x128xf32>
    %218 = arith.addf %215, %217 : vector<16x128xf32>
    %219 = vector.broadcast %6 : vector<1x128xf32> to vector<16x128xf32>
    %220 = arith.mulf %203, %219 : vector<16x128xf32>
    %221 = arith.addf %218, %220 : vector<16x128xf32>
    %222 = vector.broadcast %7 : vector<1x128xf32> to vector<16x128xf32>
    %223 = arith.mulf %197, %222 : vector<16x128xf32>
    %224 = arith.addf %221, %223 : vector<16x128xf32>
    %225 = vector.broadcast %8 : vector<1x128xf32> to vector<16x128xf32>
    %226 = arith.mulf %201, %225 : vector<16x128xf32>
    %227 = arith.addf %224, %226 : vector<16x128xf32>
    %228 = vector.broadcast %9 : vector<1x128xf32> to vector<16x128xf32>
    %229 = arith.mulf %204, %228 : vector<16x128xf32>
    %230 = arith.addf %227, %229 : vector<16x128xf32>
    %231 = vector.extract_strided_slice %230 {offsets = [0, 0], sizes = [14, 128], strides = [1, 1]} : vector<16x128xf32> to vector<14x128xf32>
    %c0_151 = arith.constant 0 : index
    %232 = arith.index_cast %c3_i32 : i32 to index
    %c0_152 = arith.constant 0 : index
    %c0_153 = arith.constant 0 : index
    %233 = vector.load %arg6[%c0_151, %232, %c0_152, %c0_153] : memref<1x14x14x128xf32, #tpu.memory_space<vmem>>, vector<1x1x14x128xf32>
    %234 = vector.shape_cast %233 : vector<1x1x14x128xf32> to vector<14x128xf32>
    %235 = vector.shape_cast %231 : vector<14x128xf32> to vector<1x1x14x128xf32>
    tpu.vector_store %arg6[%c0_151, %232, %c0_152, %c0_153], %235 {strides = array<i32>} : memref<1x14x14x128xf32, #tpu.memory_space<vmem>>, vector<1x1x14x128xf32>,
    %cst_154 = arith.constant dense<0.000000e+00> : vector<128xf32>
    %236 = vector.multi_reduction <add>, %231, %cst_154 [0] : vector<14x128xf32> to vector<128xf32>
    %237 = vector.shape_cast %236 : vector<128xf32> to vector<1x128xf32>
    %238 = arith.addf %181, %237 : vector<1x128xf32>
    %c4_i32 = arith.constant 4 : i32
    %c0_155 = arith.constant 0 : index
    %c0_156 = arith.constant 0 : index
    %c0_157 = arith.constant 0 : index
    %239 = arith.index_cast %c4_i32 : i32 to index
    %c0_158 = arith.constant 0 : index
    %c0_159 = arith.constant 0 : index
    %240 = vector.load %arg1[%c0_155, %c0_156, %c0_157, %239, %c0_158, %c0_159] : memref<2x2x1x15x16x128xf32, #tpu.memory_space<vmem>>, vector<1x1x1x1x16x128xf32>
    %241 = vector.shape_cast %240 : vector<1x1x1x1x16x128xf32> to vector<16x128xf32>
    %c0_160 = arith.constant 0 : index
    %c1_161 = arith.constant 1 : index
    %c0_162 = arith.constant 0 : index
    %242 = arith.index_cast %c4_i32 : i32 to index
    %c0_163 = arith.constant 0 : index
    %c0_164 = arith.constant 0 : index
    %243 = vector.load %arg1[%c0_160, %c1_161, %c0_162, %242, %c0_163, %c0_164] : memref<2x2x1x15x16x128xf32, #tpu.memory_space<vmem>>, vector<1x1x1x1x16x128xf32>
    %244 = vector.shape_cast %243 : vector<1x1x1x1x16x128xf32> to vector<16x128xf32>
    %c1_165 = arith.constant 1 : index
    %c0_166 = arith.constant 0 : index
    %c0_167 = arith.constant 0 : index
    %245 = arith.index_cast %c4_i32 : i32 to index
    %c0_168 = arith.constant 0 : index
    %c0_169 = arith.constant 0 : index
    %246 = vector.load %arg1[%c1_165, %c0_166, %c0_167, %245, %c0_168, %c0_169] : memref<2x2x1x15x16x128xf32, #tpu.memory_space<vmem>>, vector<1x1x1x1x16x128xf32>
    %247 = vector.shape_cast %246 : vector<1x1x1x1x16x128xf32> to vector<16x128xf32>
    %c1_170 = arith.constant 1 : index
    %c1_171 = arith.constant 1 : index
    %c0_172 = arith.constant 0 : index
    %248 = arith.index_cast %c4_i32 : i32 to index
    %c0_173 = arith.constant 0 : index
    %c0_174 = arith.constant 0 : index
    %249 = vector.load %arg1[%c1_170, %c1_171, %c0_172, %248, %c0_173, %c0_174] : memref<2x2x1x15x16x128xf32, #tpu.memory_space<vmem>>, vector<1x1x1x1x16x128xf32>
    %250 = vector.shape_cast %249 : vector<1x1x1x1x16x128xf32> to vector<16x128xf32>
    %c1_i32_175 = arith.constant 1 : i32
    %251 = arith.addi %c4_i32, %c1_i32_175 : i32
    %c0_176 = arith.constant 0 : index
    %c0_177 = arith.constant 0 : index
    %c0_178 = arith.constant 0 : index
    %252 = arith.index_cast %251 : i32 to index
    %c0_179 = arith.constant 0 : index
    %c0_180 = arith.constant 0 : index
    %253 = vector.load %arg1[%c0_176, %c0_177, %c0_178, %252, %c0_179, %c0_180] : memref<2x2x1x15x16x128xf32, #tpu.memory_space<vmem>>, vector<1x1x1x1x16x128xf32>
    %254 = vector.shape_cast %253 : vector<1x1x1x1x16x128xf32> to vector<16x128xf32>
    %c1_i32_181 = arith.constant 1 : i32
    %255 = arith.addi %c4_i32, %c1_i32_181 : i32
    %c0_182 = arith.constant 0 : index
    %c1_183 = arith.constant 1 : index
    %c0_184 = arith.constant 0 : index
    %256 = arith.index_cast %255 : i32 to index
    %c0_185 = arith.constant 0 : index
    %c0_186 = arith.constant 0 : index
    %257 = vector.load %arg1[%c0_182, %c1_183, %c0_184, %256, %c0_185, %c0_186] : memref<2x2x1x15x16x128xf32, #tpu.memory_space<vmem>>, vector<1x1x1x1x16x128xf32>
    %258 = vector.shape_cast %257 : vector<1x1x1x1x16x128xf32> to vector<16x128xf32>
    %c15_i32_187 = arith.constant 15 : i32
    %259 = tpu.dynamic_rotate %241 by %c15_i32_187 dim 0 : vector<16x128xf32>, i32 -> vector<16x128xf32>
    %c15_i32_188 = arith.constant 15 : i32
    %260 = tpu.dynamic_rotate %247 by %c15_i32_188 dim 0 : vector<16x128xf32>, i32 -> vector<16x128xf32>
    %c15_i32_189 = arith.constant 15 : i32
    %261 = tpu.dynamic_rotate %254 by %c15_i32_189 dim 0 : vector<16x128xf32>, i32 -> vector<16x128xf32>
    %262 = vector.broadcast %1 : vector<1x128xf32> to vector<16x128xf32>
    %263 = arith.mulf %241, %262 : vector<16x128xf32>
    %264 = vector.broadcast %2 : vector<1x128xf32> to vector<16x128xf32>
    %265 = arith.mulf %244, %264 : vector<16x128xf32>
    %266 = arith.addf %263, %265 : vector<16x128xf32>
    %267 = vector.broadcast %3 : vector<1x128xf32> to vector<16x128xf32>
    %268 = arith.mulf %259, %267 : vector<16x128xf32>
    %269 = arith.addf %266, %268 : vector<16x128xf32>
    %270 = vector.broadcast %4 : vector<1x128xf32> to vector<16x128xf32>
    %271 = arith.mulf %247, %270 : vector<16x128xf32>
    %272 = arith.addf %269, %271 : vector<16x128xf32>
    %273 = vector.broadcast %5 : vector<1x128xf32> to vector<16x128xf32>
    %274 = arith.mulf %250, %273 : vector<16x128xf32>
    %275 = arith.addf %272, %274 : vector<16x128xf32>
    %276 = vector.broadcast %6 : vector<1x128xf32> to vector<16x128xf32>
    %277 = arith.mulf %260, %276 : vector<16x128xf32>
    %278 = arith.addf %275, %277 : vector<16x128xf32>
    %279 = vector.broadcast %7 : vector<1x128xf32> to vector<16x128xf32>
    %280 = arith.mulf %254, %279 : vector<16x128xf32>
    %281 = arith.addf %278, %280 : vector<16x128xf32>
    %282 = vector.broadcast %8 : vector<1x128xf32> to vector<16x128xf32>
    %283 = arith.mulf %258, %282 : vector<16x128xf32>
    %284 = arith.addf %281, %283 : vector<16x128xf32>
    %285 = vector.broadcast %9 : vector<1x128xf32> to vector<16x128xf32>
    %286 = arith.mulf %261, %285 : vector<16x128xf32>
    %287 = arith.addf %284, %286 : vector<16x128xf32>
    %288 = vector.extract_strided_slice %287 {offsets = [0, 0], sizes = [14, 128], strides = [1, 1]} : vector<16x128xf32> to vector<14x128xf32>
    %c0_190 = arith.constant 0 : index
    %289 = arith.index_cast %c4_i32 : i32 to index
    %c0_191 = arith.constant 0 : index
    %c0_192 = arith.constant 0 : index
    %290 = vector.load %arg6[%c0_190, %289, %c0_191, %c0_192] : memref<1x14x14x128xf32, #tpu.memory_space<vmem>>, vector<1x1x14x128xf32>
    %291 = vector.shape_cast %290 : vector<1x1x14x128xf32> to vector<14x128xf32>
    %292 = vector.shape_cast %288 : vector<14x128xf32> to vector<1x1x14x128xf32>
    tpu.vector_store %arg6[%c0_190, %289, %c0_191, %c0_192], %292 {strides = array<i32>} : memref<1x14x14x128xf32, #tpu.memory_space<vmem>>, vector<1x1x14x128xf32>,
    %cst_193 = arith.constant dense<0.000000e+00> : vector<128xf32>
    %293 = vector.multi_reduction <add>, %288, %cst_193 [0] : vector<14x128xf32> to vector<128xf32>
    %294 = vector.shape_cast %293 : vector<128xf32> to vector<1x128xf32>
    %295 = arith.addf %238, %294 : vector<1x128xf32>
    %c5_i32 = arith.constant 5 : i32
    %c0_194 = arith.constant 0 : index
    %c0_195 = arith.constant 0 : index
    %c0_196 = arith.constant 0 : index
    %296 = arith.index_cast %c5_i32 : i32 to index
    %c0_197 = arith.constant 0 : index
    %c0_198 = arith.constant 0 : index
    %297 = vector.load %arg1[%c0_194, %c0_195, %c0_196, %296, %c0_197, %c0_198] : memref<2x2x1x15x16x128xf32, #tpu.memory_space<vmem>>, vector<1x1x1x1x16x128xf32>
    %298 = vector.shape_cast %297 : vector<1x1x1x1x16x128xf32> to vector<16x128xf32>
    %c0_199 = arith.constant 0 : index
    %c1_200 = arith.constant 1 : index
    %c0_201 = arith.constant 0 : index
    %299 = arith.index_cast %c5_i32 : i32 to index
    %c0_202 = arith.constant 0 : index
    %c0_203 = arith.constant 0 : index
    %300 = vector.load %arg1[%c0_199, %c1_200, %c0_201, %299, %c0_202, %c0_203] : memref<2x2x1x15x16x128xf32, #tpu.memory_space<vmem>>, vector<1x1x1x1x16x128xf32>
    %301 = vector.shape_cast %300 : vector<1x1x1x1x16x128xf32> to vector<16x128xf32>
    %c1_204 = arith.constant 1 : index
    %c0_205 = arith.constant 0 : index
    %c0_206 = arith.constant 0 : index
    %302 = arith.index_cast %c5_i32 : i32 to index
    %c0_207 = arith.constant 0 : index
    %c0_208 = arith.constant 0 : index
    %303 = vector.load %arg1[%c1_204, %c0_205, %c0_206, %302, %c0_207, %c0_208] : memref<2x2x1x15x16x128xf32, #tpu.memory_space<vmem>>, vector<1x1x1x1x16x128xf32>
    %304 = vector.shape_cast %303 : vector<1x1x1x1x16x128xf32> to vector<16x128xf32>
    %c1_209 = arith.constant 1 : index
    %c1_210 = arith.constant 1 : index
    %c0_211 = arith.constant 0 : index
    %305 = arith.index_cast %c5_i32 : i32 to index
    %c0_212 = arith.constant 0 : index
    %c0_213 = arith.constant 0 : index
    %306 = vector.load %arg1[%c1_209, %c1_210, %c0_211, %305, %c0_212, %c0_213] : memref<2x2x1x15x16x128xf32, #tpu.memory_space<vmem>>, vector<1x1x1x1x16x128xf32>
    %307 = vector.shape_cast %306 : vector<1x1x1x1x16x128xf32> to vector<16x128xf32>
    %c1_i32_214 = arith.constant 1 : i32
    %308 = arith.addi %c5_i32, %c1_i32_214 : i32
    %c0_215 = arith.constant 0 : index
    %c0_216 = arith.constant 0 : index
    %c0_217 = arith.constant 0 : index
    %309 = arith.index_cast %308 : i32 to index
    %c0_218 = arith.constant 0 : index
    %c0_219 = arith.constant 0 : index
    %310 = vector.load %arg1[%c0_215, %c0_216, %c0_217, %309, %c0_218, %c0_219] : memref<2x2x1x15x16x128xf32, #tpu.memory_space<vmem>>, vector<1x1x1x1x16x128xf32>
    %311 = vector.shape_cast %310 : vector<1x1x1x1x16x128xf32> to vector<16x128xf32>
    %c1_i32_220 = arith.constant 1 : i32
    %312 = arith.addi %c5_i32, %c1_i32_220 : i32
    %c0_221 = arith.constant 0 : index
    %c1_222 = arith.constant 1 : index
    %c0_223 = arith.constant 0 : index
    %313 = arith.index_cast %312 : i32 to index
    %c0_224 = arith.constant 0 : index
    %c0_225 = arith.constant 0 : index
    %314 = vector.load %arg1[%c0_221, %c1_222, %c0_223, %313, %c0_224, %c0_225] : memref<2x2x1x15x16x128xf32, #tpu.memory_space<vmem>>, vector<1x1x1x1x16x128xf32>
    %315 = vector.shape_cast %314 : vector<1x1x1x1x16x128xf32> to vector<16x128xf32>
    %c15_i32_226 = arith.constant 15 : i32
    %316 = tpu.dynamic_rotate %298 by %c15_i32_226 dim 0 : vector<16x128xf32>, i32 -> vector<16x128xf32>
    %c15_i32_227 = arith.constant 15 : i32
    %317 = tpu.dynamic_rotate %304 by %c15_i32_227 dim 0 : vector<16x128xf32>, i32 -> vector<16x128xf32>
    %c15_i32_228 = arith.constant 15 : i32
    %318 = tpu.dynamic_rotate %311 by %c15_i32_228 dim 0 : vector<16x128xf32>, i32 -> vector<16x128xf32>
    %319 = vector.broadcast %1 : vector<1x128xf32> to vector<16x128xf32>
    %320 = arith.mulf %298, %319 : vector<16x128xf32>
    %321 = vector.broadcast %2 : vector<1x128xf32> to vector<16x128xf32>
    %322 = arith.mulf %301, %321 : vector<16x128xf32>
    %323 = arith.addf %320, %322 : vector<16x128xf32>
    %324 = vector.broadcast %3 : vector<1x128xf32> to vector<16x128xf32>
    %325 = arith.mulf %316, %324 : vector<16x128xf32>
    %326 = arith.addf %323, %325 : vector<16x128xf32>
    %327 = vector.broadcast %4 : vector<1x128xf32> to vector<16x128xf32>
    %328 = arith.mulf %304, %327 : vector<16x128xf32>
    %329 = arith.addf %326, %328 : vector<16x128xf32>
    %330 = vector.broadcast %5 : vector<1x128xf32> to vector<16x128xf32>
    %331 = arith.mulf %307, %330 : vector<16x128xf32>
    %332 = arith.addf %329, %331 : vector<16x128xf32>
    %333 = vector.broadcast %6 : vector<1x128xf32> to vector<16x128xf32>
    %334 = arith.mulf %317, %333 : vector<16x128xf32>
    %335 = arith.addf %332, %334 : vector<16x128xf32>
    %336 = vector.broadcast %7 : vector<1x128xf32> to vector<16x128xf32>
    %337 = arith.mulf %311, %336 : vector<16x128xf32>
    %338 = arith.addf %335, %337 : vector<16x128xf32>
    %339 = vector.broadcast %8 : vector<1x128xf32> to vector<16x128xf32>
    %340 = arith.mulf %315, %339 : vector<16x128xf32>
    %341 = arith.addf %338, %340 : vector<16x128xf32>
    %342 = vector.broadcast %9 : vector<1x128xf32> to vector<16x128xf32>
    %343 = arith.mulf %318, %342 : vector<16x128xf32>
    %344 = arith.addf %341, %343 : vector<16x128xf32>
    %345 = vector.extract_strided_slice %344 {offsets = [0, 0], sizes = [14, 128], strides = [1, 1]} : vector<16x128xf32> to vector<14x128xf32>
    %c0_229 = arith.constant 0 : index
    %346 = arith.index_cast %c5_i32 : i32 to index
    %c0_230 = arith.constant 0 : index
    %c0_231 = arith.constant 0 : index
    %347 = vector.load %arg6[%c0_229, %346, %c0_230, %c0_231] : memref<1x14x14x128xf32, #tpu.memory_space<vmem>>, vector<1x1x14x128xf32>
    %348 = vector.shape_cast %347 : vector<1x1x14x128xf32> to vector<14x128xf32>
    %349 = vector.shape_cast %345 : vector<14x128xf32> to vector<1x1x14x128xf32>
    tpu.vector_store %arg6[%c0_229, %346, %c0_230, %c0_231], %349 {strides = array<i32>} : memref<1x14x14x128xf32, #tpu.memory_space<vmem>>, vector<1x1x14x128xf32>,
    %cst_232 = arith.constant dense<0.000000e+00> : vector<128xf32>
    %350 = vector.multi_reduction <add>, %345, %cst_232 [0] : vector<14x128xf32> to vector<128xf32>
    %351 = vector.shape_cast %350 : vector<128xf32> to vector<1x128xf32>
    %352 = arith.addf %295, %351 : vector<1x128xf32>
    %c6_i32 = arith.constant 6 : i32
    %c0_233 = arith.constant 0 : index
    %c0_234 = arith.constant 0 : index
    %c0_235 = arith.constant 0 : index
    %353 = arith.index_cast %c6_i32 : i32 to index
    %c0_236 = arith.constant 0 : index
    %c0_237 = arith.constant 0 : index
    %354 = vector.load %arg1[%c0_233, %c0_234, %c0_235, %353, %c0_236, %c0_237] : memref<2x2x1x15x16x128xf32, #tpu.memory_space<vmem>>, vector<1x1x1x1x16x128xf32>
    %355 = vector.shape_cast %354 : vector<1x1x1x1x16x128xf32> to vector<16x128xf32>
    %c0_238 = arith.constant 0 : index
    %c1_239 = arith.constant 1 : index
    %c0_240 = arith.constant 0 : index
    %356 = arith.index_cast %c6_i32 : i32 to index
    %c0_241 = arith.constant 0 : index
    %c0_242 = arith.constant 0 : index
    %357 = vector.load %arg1[%c0_238, %c1_239, %c0_240, %356, %c0_241, %c0_242] : memref<2x2x1x15x16x128xf32, #tpu.memory_space<vmem>>, vector<1x1x1x1x16x128xf32>
    %358 = vector.shape_cast %357 : vector<1x1x1x1x16x128xf32> to vector<16x128xf32>
    %c1_243 = arith.constant 1 : index
    %c0_244 = arith.constant 0 : index
    %c0_245 = arith.constant 0 : index
    %359 = arith.index_cast %c6_i32 : i32 to index
    %c0_246 = arith.constant 0 : index
    %c0_247 = arith.constant 0 : index
    %360 = vector.load %arg1[%c1_243, %c0_244, %c0_245, %359, %c0_246, %c0_247] : memref<2x2x1x15x16x128xf32, #tpu.memory_space<vmem>>, vector<1x1x1x1x16x128xf32>
    %361 = vector.shape_cast %360 : vector<1x1x1x1x16x128xf32> to vector<16x128xf32>
    %c1_248 = arith.constant 1 : index
    %c1_249 = arith.constant 1 : index
    %c0_250 = arith.constant 0 : index
    %362 = arith.index_cast %c6_i32 : i32 to index
    %c0_251 = arith.constant 0 : index
    %c0_252 = arith.constant 0 : index
    %363 = vector.load %arg1[%c1_248, %c1_249, %c0_250, %362, %c0_251, %c0_252] : memref<2x2x1x15x16x128xf32, #tpu.memory_space<vmem>>, vector<1x1x1x1x16x128xf32>
    %364 = vector.shape_cast %363 : vector<1x1x1x1x16x128xf32> to vector<16x128xf32>
    %c1_i32_253 = arith.constant 1 : i32
    %365 = arith.addi %c6_i32, %c1_i32_253 : i32
    %c0_254 = arith.constant 0 : index
    %c0_255 = arith.constant 0 : index
    %c0_256 = arith.constant 0 : index
    %366 = arith.index_cast %365 : i32 to index
    %c0_257 = arith.constant 0 : index
    %c0_258 = arith.constant 0 : index
    %367 = vector.load %arg1[%c0_254, %c0_255, %c0_256, %366, %c0_257, %c0_258] : memref<2x2x1x15x16x128xf32, #tpu.memory_space<vmem>>, vector<1x1x1x1x16x128xf32>
    %368 = vector.shape_cast %367 : vector<1x1x1x1x16x128xf32> to vector<16x128xf32>
    %c1_i32_259 = arith.constant 1 : i32
    %369 = arith.addi %c6_i32, %c1_i32_259 : i32
    %c0_260 = arith.constant 0 : index
    %c1_261 = arith.constant 1 : index
    %c0_262 = arith.constant 0 : index
    %370 = arith.index_cast %369 : i32 to index
    %c0_263 = arith.constant 0 : index
    %c0_264 = arith.constant 0 : index
    %371 = vector.load %arg1[%c0_260, %c1_261, %c0_262, %370, %c0_263, %c0_264] : memref<2x2x1x15x16x128xf32, #tpu.memory_space<vmem>>, vector<1x1x1x1x16x128xf32>
    %372 = vector.shape_cast %371 : vector<1x1x1x1x16x128xf32> to vector<16x128xf32>
    %c15_i32_265 = arith.constant 15 : i32
    %373 = tpu.dynamic_rotate %355 by %c15_i32_265 dim 0 : vector<16x128xf32>, i32 -> vector<16x128xf32>
    %c15_i32_266 = arith.constant 15 : i32
    %374 = tpu.dynamic_rotate %361 by %c15_i32_266 dim 0 : vector<16x128xf32>, i32 -> vector<16x128xf32>
    %c15_i32_267 = arith.constant 15 : i32
    %375 = tpu.dynamic_rotate %368 by %c15_i32_267 dim 0 : vector<16x128xf32>, i32 -> vector<16x128xf32>
    %376 = vector.broadcast %1 : vector<1x128xf32> to vector<16x128xf32>
    %377 = arith.mulf %355, %376 : vector<16x128xf32>
    %378 = vector.broadcast %2 : vector<1x128xf32> to vector<16x128xf32>
    %379 = arith.mulf %358, %378 : vector<16x128xf32>
    %380 = arith.addf %377, %379 : vector<16x128xf32>
    %381 = vector.broadcast %3 : vector<1x128xf32> to vector<16x128xf32>
    %382 = arith.mulf %373, %381 : vector<16x128xf32>
    %383 = arith.addf %380, %382 : vector<16x128xf32>
    %384 = vector.broadcast %4 : vector<1x128xf32> to vector<16x128xf32>
    %385 = arith.mulf %361, %384 : vector<16x128xf32>
    %386 = arith.addf %383, %385 : vector<16x128xf32>
    %387 = vector.broadcast %5 : vector<1x128xf32> to vector<16x128xf32>
    %388 = arith.mulf %364, %387 : vector<16x128xf32>
    %389 = arith.addf %386, %388 : vector<16x128xf32>
    %390 = vector.broadcast %6 : vector<1x128xf32> to vector<16x128xf32>
    %391 = arith.mulf %374, %390 : vector<16x128xf32>
    %392 = arith.addf %389, %391 : vector<16x128xf32>
    %393 = vector.broadcast %7 : vector<1x128xf32> to vector<16x128xf32>
    %394 = arith.mulf %368, %393 : vector<16x128xf32>
    %395 = arith.addf %392, %394 : vector<16x128xf32>
    %396 = vector.broadcast %8 : vector<1x128xf32> to vector<16x128xf32>
    %397 = arith.mulf %372, %396 : vector<16x128xf32>
    %398 = arith.addf %395, %397 : vector<16x128xf32>
    %399 = vector.broadcast %9 : vector<1x128xf32> to vector<16x128xf32>
    %400 = arith.mulf %375, %399 : vector<16x128xf32>
    %401 = arith.addf %398, %400 : vector<16x128xf32>
    %402 = vector.extract_strided_slice %401 {offsets = [0, 0], sizes = [14, 128], strides = [1, 1]} : vector<16x128xf32> to vector<14x128xf32>
    %c0_268 = arith.constant 0 : index
    %403 = arith.index_cast %c6_i32 : i32 to index
    %c0_269 = arith.constant 0 : index
    %c0_270 = arith.constant 0 : index
    %404 = vector.load %arg6[%c0_268, %403, %c0_269, %c0_270] : memref<1x14x14x128xf32, #tpu.memory_space<vmem>>, vector<1x1x14x128xf32>
    %405 = vector.shape_cast %404 : vector<1x1x14x128xf32> to vector<14x128xf32>
    %406 = vector.shape_cast %402 : vector<14x128xf32> to vector<1x1x14x128xf32>
    tpu.vector_store %arg6[%c0_268, %403, %c0_269, %c0_270], %406 {strides = array<i32>} : memref<1x14x14x128xf32, #tpu.memory_space<vmem>>, vector<1x1x14x128xf32>,
    %cst_271 = arith.constant dense<0.000000e+00> : vector<128xf32>
    %407 = vector.multi_reduction <add>, %402, %cst_271 [0] : vector<14x128xf32> to vector<128xf32>
    %408 = vector.shape_cast %407 : vector<128xf32> to vector<1x128xf32>
    %409 = arith.addf %352, %408 : vector<1x128xf32>
    %c7_i32 = arith.constant 7 : i32
    %c0_272 = arith.constant 0 : index
    %c0_273 = arith.constant 0 : index
    %c0_274 = arith.constant 0 : index
    %410 = arith.index_cast %c7_i32 : i32 to index
    %c0_275 = arith.constant 0 : index
    %c0_276 = arith.constant 0 : index
    %411 = vector.load %arg1[%c0_272, %c0_273, %c0_274, %410, %c0_275, %c0_276] : memref<2x2x1x15x16x128xf32, #tpu.memory_space<vmem>>, vector<1x1x1x1x16x128xf32>
    %412 = vector.shape_cast %411 : vector<1x1x1x1x16x128xf32> to vector<16x128xf32>
    %c0_277 = arith.constant 0 : index
    %c1_278 = arith.constant 1 : index
    %c0_279 = arith.constant 0 : index
    %413 = arith.index_cast %c7_i32 : i32 to index
    %c0_280 = arith.constant 0 : index
    %c0_281 = arith.constant 0 : index
    %414 = vector.load %arg1[%c0_277, %c1_278, %c0_279, %413, %c0_280, %c0_281] : memref<2x2x1x15x16x128xf32, #tpu.memory_space<vmem>>, vector<1x1x1x1x16x128xf32>
    %415 = vector.shape_cast %414 : vector<1x1x1x1x16x128xf32> to vector<16x128xf32>
    %c1_282 = arith.constant 1 : index
    %c0_283 = arith.constant 0 : index
    %c0_284 = arith.constant 0 : index
    %416 = arith.index_cast %c7_i32 : i32 to index
    %c0_285 = arith.constant 0 : index
    %c0_286 = arith.constant 0 : index
    %417 = vector.load %arg1[%c1_282, %c0_283, %c0_284, %416, %c0_285, %c0_286] : memref<2x2x1x15x16x128xf32, #tpu.memory_space<vmem>>, vector<1x1x1x1x16x128xf32>
    %418 = vector.shape_cast %417 : vector<1x1x1x1x16x128xf32> to vector<16x128xf32>
    %c1_287 = arith.constant 1 : index
    %c1_288 = arith.constant 1 : index
    %c0_289 = arith.constant 0 : index
    %419 = arith.index_cast %c7_i32 : i32 to index
    %c0_290 = arith.constant 0 : index
    %c0_291 = arith.constant 0 : index
    %420 = vector.load %arg1[%c1_287, %c1_288, %c0_289, %419, %c0_290, %c0_291] : memref<2x2x1x15x16x128xf32, #tpu.memory_space<vmem>>, vector<1x1x1x1x16x128xf32>
    %421 = vector.shape_cast %420 : vector<1x1x1x1x16x128xf32> to vector<16x128xf32>
    %c1_i32_292 = arith.constant 1 : i32
    %422 = arith.addi %c7_i32, %c1_i32_292 : i32
    %c0_293 = arith.constant 0 : index
    %c0_294 = arith.constant 0 : index
    %c0_295 = arith.constant 0 : index
    %423 = arith.index_cast %422 : i32 to index
    %c0_296 = arith.constant 0 : index
    %c0_297 = arith.constant 0 : index
    %424 = vector.load %arg1[%c0_293, %c0_294, %c0_295, %423, %c0_296, %c0_297] : memref<2x2x1x15x16x128xf32, #tpu.memory_space<vmem>>, vector<1x1x1x1x16x128xf32>
    %425 = vector.shape_cast %424 : vector<1x1x1x1x16x128xf32> to vector<16x128xf32>
    %c1_i32_298 = arith.constant 1 : i32
    %426 = arith.addi %c7_i32, %c1_i32_298 : i32
    %c0_299 = arith.constant 0 : index
    %c1_300 = arith.constant 1 : index
    %c0_301 = arith.constant 0 : index
    %427 = arith.index_cast %426 : i32 to index
    %c0_302 = arith.constant 0 : index
    %c0_303 = arith.constant 0 : index
    %428 = vector.load %arg1[%c0_299, %c1_300, %c0_301, %427, %c0_302, %c0_303] : memref<2x2x1x15x16x128xf32, #tpu.memory_space<vmem>>, vector<1x1x1x1x16x128xf32>
    %429 = vector.shape_cast %428 : vector<1x1x1x1x16x128xf32> to vector<16x128xf32>
    %c15_i32_304 = arith.constant 15 : i32
    %430 = tpu.dynamic_rotate %412 by %c15_i32_304 dim 0 : vector<16x128xf32>, i32 -> vector<16x128xf32>
    %c15_i32_305 = arith.constant 15 : i32
    %431 = tpu.dynamic_rotate %418 by %c15_i32_305 dim 0 : vector<16x128xf32>, i32 -> vector<16x128xf32>
    %c15_i32_306 = arith.constant 15 : i32
    %432 = tpu.dynamic_rotate %425 by %c15_i32_306 dim 0 : vector<16x128xf32>, i32 -> vector<16x128xf32>
    %433 = vector.broadcast %1 : vector<1x128xf32> to vector<16x128xf32>
    %434 = arith.mulf %412, %433 : vector<16x128xf32>
    %435 = vector.broadcast %2 : vector<1x128xf32> to vector<16x128xf32>
    %436 = arith.mulf %415, %435 : vector<16x128xf32>
    %437 = arith.addf %434, %436 : vector<16x128xf32>
    %438 = vector.broadcast %3 : vector<1x128xf32> to vector<16x128xf32>
    %439 = arith.mulf %430, %438 : vector<16x128xf32>
    %440 = arith.addf %437, %439 : vector<16x128xf32>
    %441 = vector.broadcast %4 : vector<1x128xf32> to vector<16x128xf32>
    %442 = arith.mulf %418, %441 : vector<16x128xf32>
    %443 = arith.addf %440, %442 : vector<16x128xf32>
    %444 = vector.broadcast %5 : vector<1x128xf32> to vector<16x128xf32>
    %445 = arith.mulf %421, %444 : vector<16x128xf32>
    %446 = arith.addf %443, %445 : vector<16x128xf32>
    %447 = vector.broadcast %6 : vector<1x128xf32> to vector<16x128xf32>
    %448 = arith.mulf %431, %447 : vector<16x128xf32>
    %449 = arith.addf %446, %448 : vector<16x128xf32>
    %450 = vector.broadcast %7 : vector<1x128xf32> to vector<16x128xf32>
    %451 = arith.mulf %425, %450 : vector<16x128xf32>
    %452 = arith.addf %449, %451 : vector<16x128xf32>
    %453 = vector.broadcast %8 : vector<1x128xf32> to vector<16x128xf32>
    %454 = arith.mulf %429, %453 : vector<16x128xf32>
    %455 = arith.addf %452, %454 : vector<16x128xf32>
    %456 = vector.broadcast %9 : vector<1x128xf32> to vector<16x128xf32>
    %457 = arith.mulf %432, %456 : vector<16x128xf32>
    %458 = arith.addf %455, %457 : vector<16x128xf32>
    %459 = vector.extract_strided_slice %458 {offsets = [0, 0], sizes = [14, 128], strides = [1, 1]} : vector<16x128xf32> to vector<14x128xf32>
    %c0_307 = arith.constant 0 : index
    %460 = arith.index_cast %c7_i32 : i32 to index
    %c0_308 = arith.constant 0 : index
    %c0_309 = arith.constant 0 : index
    %461 = vector.load %arg6[%c0_307, %460, %c0_308, %c0_309] : memref<1x14x14x128xf32, #tpu.memory_space<vmem>>, vector<1x1x14x128xf32>
    %462 = vector.shape_cast %461 : vector<1x1x14x128xf32> to vector<14x128xf32>
    %463 = vector.shape_cast %459 : vector<14x128xf32> to vector<1x1x14x128xf32>
    tpu.vector_store %arg6[%c0_307, %460, %c0_308, %c0_309], %463 {strides = array<i32>} : memref<1x14x14x128xf32, #tpu.memory_space<vmem>>, vector<1x1x14x128xf32>,
    %cst_310 = arith.constant dense<0.000000e+00> : vector<128xf32>
    %464 = vector.multi_reduction <add>, %459, %cst_310 [0] : vector<14x128xf32> to vector<128xf32>
    %465 = vector.shape_cast %464 : vector<128xf32> to vector<1x128xf32>
    %466 = arith.addf %409, %465 : vector<1x128xf32>
    %c8_i32 = arith.constant 8 : i32
    %c0_311 = arith.constant 0 : index
    %c0_312 = arith.constant 0 : index
    %c0_313 = arith.constant 0 : index
    %467 = arith.index_cast %c8_i32 : i32 to index
    %c0_314 = arith.constant 0 : index
    %c0_315 = arith.constant 0 : index
    %468 = vector.load %arg1[%c0_311, %c0_312, %c0_313, %467, %c0_314, %c0_315] : memref<2x2x1x15x16x128xf32, #tpu.memory_space<vmem>>, vector<1x1x1x1x16x128xf32>
    %469 = vector.shape_cast %468 : vector<1x1x1x1x16x128xf32> to vector<16x128xf32>
    %c0_316 = arith.constant 0 : index
    %c1_317 = arith.constant 1 : index
    %c0_318 = arith.constant 0 : index
    %470 = arith.index_cast %c8_i32 : i32 to index
    %c0_319 = arith.constant 0 : index
    %c0_320 = arith.constant 0 : index
    %471 = vector.load %arg1[%c0_316, %c1_317, %c0_318, %470, %c0_319, %c0_320] : memref<2x2x1x15x16x128xf32, #tpu.memory_space<vmem>>, vector<1x1x1x1x16x128xf32>
    %472 = vector.shape_cast %471 : vector<1x1x1x1x16x128xf32> to vector<16x128xf32>
    %c1_321 = arith.constant 1 : index
    %c0_322 = arith.constant 0 : index
    %c0_323 = arith.constant 0 : index
    %473 = arith.index_cast %c8_i32 : i32 to index
    %c0_324 = arith.constant 0 : index
    %c0_325 = arith.constant 0 : index
    %474 = vector.load %arg1[%c1_321, %c0_322, %c0_323, %473, %c0_324, %c0_325] : memref<2x2x1x15x16x128xf32, #tpu.memory_space<vmem>>, vector<1x1x1x1x16x128xf32>
    %475 = vector.shape_cast %474 : vector<1x1x1x1x16x128xf32> to vector<16x128xf32>
    %c1_326 = arith.constant 1 : index
    %c1_327 = arith.constant 1 : index
    %c0_328 = arith.constant 0 : index
    %476 = arith.index_cast %c8_i32 : i32 to index
    %c0_329 = arith.constant 0 : index
    %c0_330 = arith.constant 0 : index
    %477 = vector.load %arg1[%c1_326, %c1_327, %c0_328, %476, %c0_329, %c0_330] : memref<2x2x1x15x16x128xf32, #tpu.memory_space<vmem>>, vector<1x1x1x1x16x128xf32>
    %478 = vector.shape_cast %477 : vector<1x1x1x1x16x128xf32> to vector<16x128xf32>
    %c1_i32_331 = arith.constant 1 : i32
    %479 = arith.addi %c8_i32, %c1_i32_331 : i32
    %c0_332 = arith.constant 0 : index
    %c0_333 = arith.constant 0 : index
    %c0_334 = arith.constant 0 : index
    %480 = arith.index_cast %479 : i32 to index
    %c0_335 = arith.constant 0 : index
    %c0_336 = arith.constant 0 : index
    %481 = vector.load %arg1[%c0_332, %c0_333, %c0_334, %480, %c0_335, %c0_336] : memref<2x2x1x15x16x128xf32, #tpu.memory_space<vmem>>, vector<1x1x1x1x16x128xf32>
    %482 = vector.shape_cast %481 : vector<1x1x1x1x16x128xf32> to vector<16x128xf32>
    %c1_i32_337 = arith.constant 1 : i32
    %483 = arith.addi %c8_i32, %c1_i32_337 : i32
    %c0_338 = arith.constant 0 : index
    %c1_339 = arith.constant 1 : index
    %c0_340 = arith.constant 0 : index
    %484 = arith.index_cast %483 : i32 to index
    %c0_341 = arith.constant 0 : index
    %c0_342 = arith.constant 0 : index
    %485 = vector.load %arg1[%c0_338, %c1_339, %c0_340, %484, %c0_341, %c0_342] : memref<2x2x1x15x16x128xf32, #tpu.memory_space<vmem>>, vector<1x1x1x1x16x128xf32>
    %486 = vector.shape_cast %485 : vector<1x1x1x1x16x128xf32> to vector<16x128xf32>
    %c15_i32_343 = arith.constant 15 : i32
    %487 = tpu.dynamic_rotate %469 by %c15_i32_343 dim 0 : vector<16x128xf32>, i32 -> vector<16x128xf32>
    %c15_i32_344 = arith.constant 15 : i32
    %488 = tpu.dynamic_rotate %475 by %c15_i32_344 dim 0 : vector<16x128xf32>, i32 -> vector<16x128xf32>
    %c15_i32_345 = arith.constant 15 : i32
    %489 = tpu.dynamic_rotate %482 by %c15_i32_345 dim 0 : vector<16x128xf32>, i32 -> vector<16x128xf32>
    %490 = vector.broadcast %1 : vector<1x128xf32> to vector<16x128xf32>
    %491 = arith.mulf %469, %490 : vector<16x128xf32>
    %492 = vector.broadcast %2 : vector<1x128xf32> to vector<16x128xf32>
    %493 = arith.mulf %472, %492 : vector<16x128xf32>
    %494 = arith.addf %491, %493 : vector<16x128xf32>
    %495 = vector.broadcast %3 : vector<1x128xf32> to vector<16x128xf32>
    %496 = arith.mulf %487, %495 : vector<16x128xf32>
    %497 = arith.addf %494, %496 : vector<16x128xf32>
    %498 = vector.broadcast %4 : vector<1x128xf32> to vector<16x128xf32>
    %499 = arith.mulf %475, %498 : vector<16x128xf32>
    %500 = arith.addf %497, %499 : vector<16x128xf32>
    %501 = vector.broadcast %5 : vector<1x128xf32> to vector<16x128xf32>
    %502 = arith.mulf %478, %501 : vector<16x128xf32>
    %503 = arith.addf %500, %502 : vector<16x128xf32>
    %504 = vector.broadcast %6 : vector<1x128xf32> to vector<16x128xf32>
    %505 = arith.mulf %488, %504 : vector<16x128xf32>
    %506 = arith.addf %503, %505 : vector<16x128xf32>
    %507 = vector.broadcast %7 : vector<1x128xf32> to vector<16x128xf32>
    %508 = arith.mulf %482, %507 : vector<16x128xf32>
    %509 = arith.addf %506, %508 : vector<16x128xf32>
    %510 = vector.broadcast %8 : vector<1x128xf32> to vector<16x128xf32>
    %511 = arith.mulf %486, %510 : vector<16x128xf32>
    %512 = arith.addf %509, %511 : vector<16x128xf32>
    %513 = vector.broadcast %9 : vector<1x128xf32> to vector<16x128xf32>
    %514 = arith.mulf %489, %513 : vector<16x128xf32>
    %515 = arith.addf %512, %514 : vector<16x128xf32>
    %516 = vector.extract_strided_slice %515 {offsets = [0, 0], sizes = [14, 128], strides = [1, 1]} : vector<16x128xf32> to vector<14x128xf32>
    %c0_346 = arith.constant 0 : index
    %517 = arith.index_cast %c8_i32 : i32 to index
    %c0_347 = arith.constant 0 : index
    %c0_348 = arith.constant 0 : index
    %518 = vector.load %arg6[%c0_346, %517, %c0_347, %c0_348] : memref<1x14x14x128xf32, #tpu.memory_space<vmem>>, vector<1x1x14x128xf32>
    %519 = vector.shape_cast %518 : vector<1x1x14x128xf32> to vector<14x128xf32>
    %520 = vector.shape_cast %516 : vector<14x128xf32> to vector<1x1x14x128xf32>
    tpu.vector_store %arg6[%c0_346, %517, %c0_347, %c0_348], %520 {strides = array<i32>} : memref<1x14x14x128xf32, #tpu.memory_space<vmem>>, vector<1x1x14x128xf32>,
    %cst_349 = arith.constant dense<0.000000e+00> : vector<128xf32>
    %521 = vector.multi_reduction <add>, %516, %cst_349 [0] : vector<14x128xf32> to vector<128xf32>
    %522 = vector.shape_cast %521 : vector<128xf32> to vector<1x128xf32>
    %523 = arith.addf %466, %522 : vector<1x128xf32>
    %c9_i32 = arith.constant 9 : i32
    %c0_350 = arith.constant 0 : index
    %c0_351 = arith.constant 0 : index
    %c0_352 = arith.constant 0 : index
    %524 = arith.index_cast %c9_i32 : i32 to index
    %c0_353 = arith.constant 0 : index
    %c0_354 = arith.constant 0 : index
    %525 = vector.load %arg1[%c0_350, %c0_351, %c0_352, %524, %c0_353, %c0_354] : memref<2x2x1x15x16x128xf32, #tpu.memory_space<vmem>>, vector<1x1x1x1x16x128xf32>
    %526 = vector.shape_cast %525 : vector<1x1x1x1x16x128xf32> to vector<16x128xf32>
    %c0_355 = arith.constant 0 : index
    %c1_356 = arith.constant 1 : index
    %c0_357 = arith.constant 0 : index
    %527 = arith.index_cast %c9_i32 : i32 to index
    %c0_358 = arith.constant 0 : index
    %c0_359 = arith.constant 0 : index
    %528 = vector.load %arg1[%c0_355, %c1_356, %c0_357, %527, %c0_358, %c0_359] : memref<2x2x1x15x16x128xf32, #tpu.memory_space<vmem>>, vector<1x1x1x1x16x128xf32>
    %529 = vector.shape_cast %528 : vector<1x1x1x1x16x128xf32> to vector<16x128xf32>
    %c1_360 = arith.constant 1 : index
    %c0_361 = arith.constant 0 : index
    %c0_362 = arith.constant 0 : index
    %530 = arith.index_cast %c9_i32 : i32 to index
    %c0_363 = arith.constant 0 : index
    %c0_364 = arith.constant 0 : index
    %531 = vector.load %arg1[%c1_360, %c0_361, %c0_362, %530, %c0_363, %c0_364] : memref<2x2x1x15x16x128xf32, #tpu.memory_space<vmem>>, vector<1x1x1x1x16x128xf32>
    %532 = vector.shape_cast %531 : vector<1x1x1x1x16x128xf32> to vector<16x128xf32>
    %c1_365 = arith.constant 1 : index
    %c1_366 = arith.constant 1 : index
    %c0_367 = arith.constant 0 : index
    %533 = arith.index_cast %c9_i32 : i32 to index
    %c0_368 = arith.constant 0 : index
    %c0_369 = arith.constant 0 : index
    %534 = vector.load %arg1[%c1_365, %c1_366, %c0_367, %533, %c0_368, %c0_369] : memref<2x2x1x15x16x128xf32, #tpu.memory_space<vmem>>, vector<1x1x1x1x16x128xf32>
    %535 = vector.shape_cast %534 : vector<1x1x1x1x16x128xf32> to vector<16x128xf32>
    %c1_i32_370 = arith.constant 1 : i32
    %536 = arith.addi %c9_i32, %c1_i32_370 : i32
    %c0_371 = arith.constant 0 : index
    %c0_372 = arith.constant 0 : index
    %c0_373 = arith.constant 0 : index
    %537 = arith.index_cast %536 : i32 to index
    %c0_374 = arith.constant 0 : index
    %c0_375 = arith.constant 0 : index
    %538 = vector.load %arg1[%c0_371, %c0_372, %c0_373, %537, %c0_374, %c0_375] : memref<2x2x1x15x16x128xf32, #tpu.memory_space<vmem>>, vector<1x1x1x1x16x128xf32>
    %539 = vector.shape_cast %538 : vector<1x1x1x1x16x128xf32> to vector<16x128xf32>
    %c1_i32_376 = arith.constant 1 : i32
    %540 = arith.addi %c9_i32, %c1_i32_376 : i32
    %c0_377 = arith.constant 0 : index
    %c1_378 = arith.constant 1 : index
    %c0_379 = arith.constant 0 : index
    %541 = arith.index_cast %540 : i32 to index
    %c0_380 = arith.constant 0 : index
    %c0_381 = arith.constant 0 : index
    %542 = vector.load %arg1[%c0_377, %c1_378, %c0_379, %541, %c0_380, %c0_381] : memref<2x2x1x15x16x128xf32, #tpu.memory_space<vmem>>, vector<1x1x1x1x16x128xf32>
    %543 = vector.shape_cast %542 : vector<1x1x1x1x16x128xf32> to vector<16x128xf32>
    %c15_i32_382 = arith.constant 15 : i32
    %544 = tpu.dynamic_rotate %526 by %c15_i32_382 dim 0 : vector<16x128xf32>, i32 -> vector<16x128xf32>
    %c15_i32_383 = arith.constant 15 : i32
    %545 = tpu.dynamic_rotate %532 by %c15_i32_383 dim 0 : vector<16x128xf32>, i32 -> vector<16x128xf32>
    %c15_i32_384 = arith.constant 15 : i32
    %546 = tpu.dynamic_rotate %539 by %c15_i32_384 dim 0 : vector<16x128xf32>, i32 -> vector<16x128xf32>
    %547 = vector.broadcast %1 : vector<1x128xf32> to vector<16x128xf32>
    %548 = arith.mulf %526, %547 : vector<16x128xf32>
    %549 = vector.broadcast %2 : vector<1x128xf32> to vector<16x128xf32>
    %550 = arith.mulf %529, %549 : vector<16x128xf32>
    %551 = arith.addf %548, %550 : vector<16x128xf32>
    %552 = vector.broadcast %3 : vector<1x128xf32> to vector<16x128xf32>
    %553 = arith.mulf %544, %552 : vector<16x128xf32>
    %554 = arith.addf %551, %553 : vector<16x128xf32>
    %555 = vector.broadcast %4 : vector<1x128xf32> to vector<16x128xf32>
    %556 = arith.mulf %532, %555 : vector<16x128xf32>
    %557 = arith.addf %554, %556 : vector<16x128xf32>
    %558 = vector.broadcast %5 : vector<1x128xf32> to vector<16x128xf32>
    %559 = arith.mulf %535, %558 : vector<16x128xf32>
    %560 = arith.addf %557, %559 : vector<16x128xf32>
    %561 = vector.broadcast %6 : vector<1x128xf32> to vector<16x128xf32>
    %562 = arith.mulf %545, %561 : vector<16x128xf32>
    %563 = arith.addf %560, %562 : vector<16x128xf32>
    %564 = vector.broadcast %7 : vector<1x128xf32> to vector<16x128xf32>
    %565 = arith.mulf %539, %564 : vector<16x128xf32>
    %566 = arith.addf %563, %565 : vector<16x128xf32>
    %567 = vector.broadcast %8 : vector<1x128xf32> to vector<16x128xf32>
    %568 = arith.mulf %543, %567 : vector<16x128xf32>
    %569 = arith.addf %566, %568 : vector<16x128xf32>
    %570 = vector.broadcast %9 : vector<1x128xf32> to vector<16x128xf32>
    %571 = arith.mulf %546, %570 : vector<16x128xf32>
    %572 = arith.addf %569, %571 : vector<16x128xf32>
    %573 = vector.extract_strided_slice %572 {offsets = [0, 0], sizes = [14, 128], strides = [1, 1]} : vector<16x128xf32> to vector<14x128xf32>
    %c0_385 = arith.constant 0 : index
    %574 = arith.index_cast %c9_i32 : i32 to index
    %c0_386 = arith.constant 0 : index
    %c0_387 = arith.constant 0 : index
    %575 = vector.load %arg6[%c0_385, %574, %c0_386, %c0_387] : memref<1x14x14x128xf32, #tpu.memory_space<vmem>>, vector<1x1x14x128xf32>
    %576 = vector.shape_cast %575 : vector<1x1x14x128xf32> to vector<14x128xf32>
    %577 = vector.shape_cast %573 : vector<14x128xf32> to vector<1x1x14x128xf32>
    tpu.vector_store %arg6[%c0_385, %574, %c0_386, %c0_387], %577 {strides = array<i32>} : memref<1x14x14x128xf32, #tpu.memory_space<vmem>>, vector<1x1x14x128xf32>,
    %cst_388 = arith.constant dense<0.000000e+00> : vector<128xf32>
    %578 = vector.multi_reduction <add>, %573, %cst_388 [0] : vector<14x128xf32> to vector<128xf32>
    %579 = vector.shape_cast %578 : vector<128xf32> to vector<1x128xf32>
    %580 = arith.addf %523, %579 : vector<1x128xf32>
    %c10_i32 = arith.constant 10 : i32
    %c0_389 = arith.constant 0 : index
    %c0_390 = arith.constant 0 : index
    %c0_391 = arith.constant 0 : index
    %581 = arith.index_cast %c10_i32 : i32 to index
    %c0_392 = arith.constant 0 : index
    %c0_393 = arith.constant 0 : index
    %582 = vector.load %arg1[%c0_389, %c0_390, %c0_391, %581, %c0_392, %c0_393] : memref<2x2x1x15x16x128xf32, #tpu.memory_space<vmem>>, vector<1x1x1x1x16x128xf32>
    %583 = vector.shape_cast %582 : vector<1x1x1x1x16x128xf32> to vector<16x128xf32>
    %c0_394 = arith.constant 0 : index
    %c1_395 = arith.constant 1 : index
    %c0_396 = arith.constant 0 : index
    %584 = arith.index_cast %c10_i32 : i32 to index
    %c0_397 = arith.constant 0 : index
    %c0_398 = arith.constant 0 : index
    %585 = vector.load %arg1[%c0_394, %c1_395, %c0_396, %584, %c0_397, %c0_398] : memref<2x2x1x15x16x128xf32, #tpu.memory_space<vmem>>, vector<1x1x1x1x16x128xf32>
    %586 = vector.shape_cast %585 : vector<1x1x1x1x16x128xf32> to vector<16x128xf32>
    %c1_399 = arith.constant 1 : index
    %c0_400 = arith.constant 0 : index
    %c0_401 = arith.constant 0 : index
    %587 = arith.index_cast %c10_i32 : i32 to index
    %c0_402 = arith.constant 0 : index
    %c0_403 = arith.constant 0 : index
    %588 = vector.load %arg1[%c1_399, %c0_400, %c0_401, %587, %c0_402, %c0_403] : memref<2x2x1x15x16x128xf32, #tpu.memory_space<vmem>>, vector<1x1x1x1x16x128xf32>
    %589 = vector.shape_cast %588 : vector<1x1x1x1x16x128xf32> to vector<16x128xf32>
    %c1_404 = arith.constant 1 : index
    %c1_405 = arith.constant 1 : index
    %c0_406 = arith.constant 0 : index
    %590 = arith.index_cast %c10_i32 : i32 to index
    %c0_407 = arith.constant 0 : index
    %c0_408 = arith.constant 0 : index
    %591 = vector.load %arg1[%c1_404, %c1_405, %c0_406, %590, %c0_407, %c0_408] : memref<2x2x1x15x16x128xf32, #tpu.memory_space<vmem>>, vector<1x1x1x1x16x128xf32>
    %592 = vector.shape_cast %591 : vector<1x1x1x1x16x128xf32> to vector<16x128xf32>
    %c1_i32_409 = arith.constant 1 : i32
    %593 = arith.addi %c10_i32, %c1_i32_409 : i32
    %c0_410 = arith.constant 0 : index
    %c0_411 = arith.constant 0 : index
    %c0_412 = arith.constant 0 : index
    %594 = arith.index_cast %593 : i32 to index
    %c0_413 = arith.constant 0 : index
    %c0_414 = arith.constant 0 : index
    %595 = vector.load %arg1[%c0_410, %c0_411, %c0_412, %594, %c0_413, %c0_414] : memref<2x2x1x15x16x128xf32, #tpu.memory_space<vmem>>, vector<1x1x1x1x16x128xf32>
    %596 = vector.shape_cast %595 : vector<1x1x1x1x16x128xf32> to vector<16x128xf32>
    %c1_i32_415 = arith.constant 1 : i32
    %597 = arith.addi %c10_i32, %c1_i32_415 : i32
    %c0_416 = arith.constant 0 : index
    %c1_417 = arith.constant 1 : index
    %c0_418 = arith.constant 0 : index
    %598 = arith.index_cast %597 : i32 to index
    %c0_419 = arith.constant 0 : index
    %c0_420 = arith.constant 0 : index
    %599 = vector.load %arg1[%c0_416, %c1_417, %c0_418, %598, %c0_419, %c0_420] : memref<2x2x1x15x16x128xf32, #tpu.memory_space<vmem>>, vector<1x1x1x1x16x128xf32>
    %600 = vector.shape_cast %599 : vector<1x1x1x1x16x128xf32> to vector<16x128xf32>
    %c15_i32_421 = arith.constant 15 : i32
    %601 = tpu.dynamic_rotate %583 by %c15_i32_421 dim 0 : vector<16x128xf32>, i32 -> vector<16x128xf32>
    %c15_i32_422 = arith.constant 15 : i32
    %602 = tpu.dynamic_rotate %589 by %c15_i32_422 dim 0 : vector<16x128xf32>, i32 -> vector<16x128xf32>
    %c15_i32_423 = arith.constant 15 : i32
    %603 = tpu.dynamic_rotate %596 by %c15_i32_423 dim 0 : vector<16x128xf32>, i32 -> vector<16x128xf32>
    %604 = vector.broadcast %1 : vector<1x128xf32> to vector<16x128xf32>
    %605 = arith.mulf %583, %604 : vector<16x128xf32>
    %606 = vector.broadcast %2 : vector<1x128xf32> to vector<16x128xf32>
    %607 = arith.mulf %586, %606 : vector<16x128xf32>
    %608 = arith.addf %605, %607 : vector<16x128xf32>
    %609 = vector.broadcast %3 : vector<1x128xf32> to vector<16x128xf32>
    %610 = arith.mulf %601, %609 : vector<16x128xf32>
    %611 = arith.addf %608, %610 : vector<16x128xf32>
    %612 = vector.broadcast %4 : vector<1x128xf32> to vector<16x128xf32>
    %613 = arith.mulf %589, %612 : vector<16x128xf32>
    %614 = arith.addf %611, %613 : vector<16x128xf32>
    %615 = vector.broadcast %5 : vector<1x128xf32> to vector<16x128xf32>
    %616 = arith.mulf %592, %615 : vector<16x128xf32>
    %617 = arith.addf %614, %616 : vector<16x128xf32>
    %618 = vector.broadcast %6 : vector<1x128xf32> to vector<16x128xf32>
    %619 = arith.mulf %602, %618 : vector<16x128xf32>
    %620 = arith.addf %617, %619 : vector<16x128xf32>
    %621 = vector.broadcast %7 : vector<1x128xf32> to vector<16x128xf32>
    %622 = arith.mulf %596, %621 : vector<16x128xf32>
    %623 = arith.addf %620, %622 : vector<16x128xf32>
    %624 = vector.broadcast %8 : vector<1x128xf32> to vector<16x128xf32>
    %625 = arith.mulf %600, %624 : vector<16x128xf32>
    %626 = arith.addf %623, %625 : vector<16x128xf32>
    %627 = vector.broadcast %9 : vector<1x128xf32> to vector<16x128xf32>
    %628 = arith.mulf %603, %627 : vector<16x128xf32>
    %629 = arith.addf %626, %628 : vector<16x128xf32>
    %630 = vector.extract_strided_slice %629 {offsets = [0, 0], sizes = [14, 128], strides = [1, 1]} : vector<16x128xf32> to vector<14x128xf32>
    %c0_424 = arith.constant 0 : index
    %631 = arith.index_cast %c10_i32 : i32 to index
    %c0_425 = arith.constant 0 : index
    %c0_426 = arith.constant 0 : index
    %632 = vector.load %arg6[%c0_424, %631, %c0_425, %c0_426] : memref<1x14x14x128xf32, #tpu.memory_space<vmem>>, vector<1x1x14x128xf32>
    %633 = vector.shape_cast %632 : vector<1x1x14x128xf32> to vector<14x128xf32>
    %634 = vector.shape_cast %630 : vector<14x128xf32> to vector<1x1x14x128xf32>
    tpu.vector_store %arg6[%c0_424, %631, %c0_425, %c0_426], %634 {strides = array<i32>} : memref<1x14x14x128xf32, #tpu.memory_space<vmem>>, vector<1x1x14x128xf32>,
    %cst_427 = arith.constant dense<0.000000e+00> : vector<128xf32>
    %635 = vector.multi_reduction <add>, %630, %cst_427 [0] : vector<14x128xf32> to vector<128xf32>
    %636 = vector.shape_cast %635 : vector<128xf32> to vector<1x128xf32>
    %637 = arith.addf %580, %636 : vector<1x128xf32>
    %c11_i32 = arith.constant 11 : i32
    %c0_428 = arith.constant 0 : index
    %c0_429 = arith.constant 0 : index
    %c0_430 = arith.constant 0 : index
    %638 = arith.index_cast %c11_i32 : i32 to index
    %c0_431 = arith.constant 0 : index
    %c0_432 = arith.constant 0 : index
    %639 = vector.load %arg1[%c0_428, %c0_429, %c0_430, %638, %c0_431, %c0_432] : memref<2x2x1x15x16x128xf32, #tpu.memory_space<vmem>>, vector<1x1x1x1x16x128xf32>
    %640 = vector.shape_cast %639 : vector<1x1x1x1x16x128xf32> to vector<16x128xf32>
    %c0_433 = arith.constant 0 : index
    %c1_434 = arith.constant 1 : index
    %c0_435 = arith.constant 0 : index
    %641 = arith.index_cast %c11_i32 : i32 to index
    %c0_436 = arith.constant 0 : index
    %c0_437 = arith.constant 0 : index
    %642 = vector.load %arg1[%c0_433, %c1_434, %c0_435, %641, %c0_436, %c0_437] : memref<2x2x1x15x16x128xf32, #tpu.memory_space<vmem>>, vector<1x1x1x1x16x128xf32>
    %643 = vector.shape_cast %642 : vector<1x1x1x1x16x128xf32> to vector<16x128xf32>
    %c1_438 = arith.constant 1 : index
    %c0_439 = arith.constant 0 : index
    %c0_440 = arith.constant 0 : index
    %644 = arith.index_cast %c11_i32 : i32 to index
    %c0_441 = arith.constant 0 : index
    %c0_442 = arith.constant 0 : index
    %645 = vector.load %arg1[%c1_438, %c0_439, %c0_440, %644, %c0_441, %c0_442] : memref<2x2x1x15x16x128xf32, #tpu.memory_space<vmem>>, vector<1x1x1x1x16x128xf32>
    %646 = vector.shape_cast %645 : vector<1x1x1x1x16x128xf32> to vector<16x128xf32>
    %c1_443 = arith.constant 1 : index
    %c1_444 = arith.constant 1 : index
    %c0_445 = arith.constant 0 : index
    %647 = arith.index_cast %c11_i32 : i32 to index
    %c0_446 = arith.constant 0 : index
    %c0_447 = arith.constant 0 : index
    %648 = vector.load %arg1[%c1_443, %c1_444, %c0_445, %647, %c0_446, %c0_447] : memref<2x2x1x15x16x128xf32, #tpu.memory_space<vmem>>, vector<1x1x1x1x16x128xf32>
    %649 = vector.shape_cast %648 : vector<1x1x1x1x16x128xf32> to vector<16x128xf32>
    %c1_i32_448 = arith.constant 1 : i32
    %650 = arith.addi %c11_i32, %c1_i32_448 : i32
    %c0_449 = arith.constant 0 : index
    %c0_450 = arith.constant 0 : index
    %c0_451 = arith.constant 0 : index
    %651 = arith.index_cast %650 : i32 to index
    %c0_452 = arith.constant 0 : index
    %c0_453 = arith.constant 0 : index
    %652 = vector.load %arg1[%c0_449, %c0_450, %c0_451, %651, %c0_452, %c0_453] : memref<2x2x1x15x16x128xf32, #tpu.memory_space<vmem>>, vector<1x1x1x1x16x128xf32>
    %653 = vector.shape_cast %652 : vector<1x1x1x1x16x128xf32> to vector<16x128xf32>
    %c1_i32_454 = arith.constant 1 : i32
    %654 = arith.addi %c11_i32, %c1_i32_454 : i32
    %c0_455 = arith.constant 0 : index
    %c1_456 = arith.constant 1 : index
    %c0_457 = arith.constant 0 : index
    %655 = arith.index_cast %654 : i32 to index
    %c0_458 = arith.constant 0 : index
    %c0_459 = arith.constant 0 : index
    %656 = vector.load %arg1[%c0_455, %c1_456, %c0_457, %655, %c0_458, %c0_459] : memref<2x2x1x15x16x128xf32, #tpu.memory_space<vmem>>, vector<1x1x1x1x16x128xf32>
    %657 = vector.shape_cast %656 : vector<1x1x1x1x16x128xf32> to vector<16x128xf32>
    %c15_i32_460 = arith.constant 15 : i32
    %658 = tpu.dynamic_rotate %640 by %c15_i32_460 dim 0 : vector<16x128xf32>, i32 -> vector<16x128xf32>
    %c15_i32_461 = arith.constant 15 : i32
    %659 = tpu.dynamic_rotate %646 by %c15_i32_461 dim 0 : vector<16x128xf32>, i32 -> vector<16x128xf32>
    %c15_i32_462 = arith.constant 15 : i32
    %660 = tpu.dynamic_rotate %653 by %c15_i32_462 dim 0 : vector<16x128xf32>, i32 -> vector<16x128xf32>
    %661 = vector.broadcast %1 : vector<1x128xf32> to vector<16x128xf32>
    %662 = arith.mulf %640, %661 : vector<16x128xf32>
    %663 = vector.broadcast %2 : vector<1x128xf32> to vector<16x128xf32>
    %664 = arith.mulf %643, %663 : vector<16x128xf32>
    %665 = arith.addf %662, %664 : vector<16x128xf32>
    %666 = vector.broadcast %3 : vector<1x128xf32> to vector<16x128xf32>
    %667 = arith.mulf %658, %666 : vector<16x128xf32>
    %668 = arith.addf %665, %667 : vector<16x128xf32>
    %669 = vector.broadcast %4 : vector<1x128xf32> to vector<16x128xf32>
    %670 = arith.mulf %646, %669 : vector<16x128xf32>
    %671 = arith.addf %668, %670 : vector<16x128xf32>
    %672 = vector.broadcast %5 : vector<1x128xf32> to vector<16x128xf32>
    %673 = arith.mulf %649, %672 : vector<16x128xf32>
    %674 = arith.addf %671, %673 : vector<16x128xf32>
    %675 = vector.broadcast %6 : vector<1x128xf32> to vector<16x128xf32>
    %676 = arith.mulf %659, %675 : vector<16x128xf32>
    %677 = arith.addf %674, %676 : vector<16x128xf32>
    %678 = vector.broadcast %7 : vector<1x128xf32> to vector<16x128xf32>
    %679 = arith.mulf %653, %678 : vector<16x128xf32>
    %680 = arith.addf %677, %679 : vector<16x128xf32>
    %681 = vector.broadcast %8 : vector<1x128xf32> to vector<16x128xf32>
    %682 = arith.mulf %657, %681 : vector<16x128xf32>
    %683 = arith.addf %680, %682 : vector<16x128xf32>
    %684 = vector.broadcast %9 : vector<1x128xf32> to vector<16x128xf32>
    %685 = arith.mulf %660, %684 : vector<16x128xf32>
    %686 = arith.addf %683, %685 : vector<16x128xf32>
    %687 = vector.extract_strided_slice %686 {offsets = [0, 0], sizes = [14, 128], strides = [1, 1]} : vector<16x128xf32> to vector<14x128xf32>
    %c0_463 = arith.constant 0 : index
    %688 = arith.index_cast %c11_i32 : i32 to index
    %c0_464 = arith.constant 0 : index
    %c0_465 = arith.constant 0 : index
    %689 = vector.load %arg6[%c0_463, %688, %c0_464, %c0_465] : memref<1x14x14x128xf32, #tpu.memory_space<vmem>>, vector<1x1x14x128xf32>
    %690 = vector.shape_cast %689 : vector<1x1x14x128xf32> to vector<14x128xf32>
    %691 = vector.shape_cast %687 : vector<14x128xf32> to vector<1x1x14x128xf32>
    tpu.vector_store %arg6[%c0_463, %688, %c0_464, %c0_465], %691 {strides = array<i32>} : memref<1x14x14x128xf32, #tpu.memory_space<vmem>>, vector<1x1x14x128xf32>,
    %cst_466 = arith.constant dense<0.000000e+00> : vector<128xf32>
    %692 = vector.multi_reduction <add>, %687, %cst_466 [0] : vector<14x128xf32> to vector<128xf32>
    %693 = vector.shape_cast %692 : vector<128xf32> to vector<1x128xf32>
    %694 = arith.addf %637, %693 : vector<1x128xf32>
    %c12_i32 = arith.constant 12 : i32
    %c0_467 = arith.constant 0 : index
    %c0_468 = arith.constant 0 : index
    %c0_469 = arith.constant 0 : index
    %695 = arith.index_cast %c12_i32 : i32 to index
    %c0_470 = arith.constant 0 : index
    %c0_471 = arith.constant 0 : index
    %696 = vector.load %arg1[%c0_467, %c0_468, %c0_469, %695, %c0_470, %c0_471] : memref<2x2x1x15x16x128xf32, #tpu.memory_space<vmem>>, vector<1x1x1x1x16x128xf32>
    %697 = vector.shape_cast %696 : vector<1x1x1x1x16x128xf32> to vector<16x128xf32>
    %c0_472 = arith.constant 0 : index
    %c1_473 = arith.constant 1 : index
    %c0_474 = arith.constant 0 : index
    %698 = arith.index_cast %c12_i32 : i32 to index
    %c0_475 = arith.constant 0 : index
    %c0_476 = arith.constant 0 : index
    %699 = vector.load %arg1[%c0_472, %c1_473, %c0_474, %698, %c0_475, %c0_476] : memref<2x2x1x15x16x128xf32, #tpu.memory_space<vmem>>, vector<1x1x1x1x16x128xf32>
    %700 = vector.shape_cast %699 : vector<1x1x1x1x16x128xf32> to vector<16x128xf32>
    %c1_477 = arith.constant 1 : index
    %c0_478 = arith.constant 0 : index
    %c0_479 = arith.constant 0 : index
    %701 = arith.index_cast %c12_i32 : i32 to index
    %c0_480 = arith.constant 0 : index
    %c0_481 = arith.constant 0 : index
    %702 = vector.load %arg1[%c1_477, %c0_478, %c0_479, %701, %c0_480, %c0_481] : memref<2x2x1x15x16x128xf32, #tpu.memory_space<vmem>>, vector<1x1x1x1x16x128xf32>
    %703 = vector.shape_cast %702 : vector<1x1x1x1x16x128xf32> to vector<16x128xf32>
    %c1_482 = arith.constant 1 : index
    %c1_483 = arith.constant 1 : index
    %c0_484 = arith.constant 0 : index
    %704 = arith.index_cast %c12_i32 : i32 to index
    %c0_485 = arith.constant 0 : index
    %c0_486 = arith.constant 0 : index
    %705 = vector.load %arg1[%c1_482, %c1_483, %c0_484, %704, %c0_485, %c0_486] : memref<2x2x1x15x16x128xf32, #tpu.memory_space<vmem>>, vector<1x1x1x1x16x128xf32>
    %706 = vector.shape_cast %705 : vector<1x1x1x1x16x128xf32> to vector<16x128xf32>
    %c1_i32_487 = arith.constant 1 : i32
    %707 = arith.addi %c12_i32, %c1_i32_487 : i32
    %c0_488 = arith.constant 0 : index
    %c0_489 = arith.constant 0 : index
    %c0_490 = arith.constant 0 : index
    %708 = arith.index_cast %707 : i32 to index
    %c0_491 = arith.constant 0 : index
    %c0_492 = arith.constant 0 : index
    %709 = vector.load %arg1[%c0_488, %c0_489, %c0_490, %708, %c0_491, %c0_492] : memref<2x2x1x15x16x128xf32, #tpu.memory_space<vmem>>, vector<1x1x1x1x16x128xf32>
    %710 = vector.shape_cast %709 : vector<1x1x1x1x16x128xf32> to vector<16x128xf32>
    %c1_i32_493 = arith.constant 1 : i32
    %711 = arith.addi %c12_i32, %c1_i32_493 : i32
    %c0_494 = arith.constant 0 : index
    %c1_495 = arith.constant 1 : index
    %c0_496 = arith.constant 0 : index
    %712 = arith.index_cast %711 : i32 to index
    %c0_497 = arith.constant 0 : index
    %c0_498 = arith.constant 0 : index
    %713 = vector.load %arg1[%c0_494, %c1_495, %c0_496, %712, %c0_497, %c0_498] : memref<2x2x1x15x16x128xf32, #tpu.memory_space<vmem>>, vector<1x1x1x1x16x128xf32>
    %714 = vector.shape_cast %713 : vector<1x1x1x1x16x128xf32> to vector<16x128xf32>
    %c15_i32_499 = arith.constant 15 : i32
    %715 = tpu.dynamic_rotate %697 by %c15_i32_499 dim 0 : vector<16x128xf32>, i32 -> vector<16x128xf32>
    %c15_i32_500 = arith.constant 15 : i32
    %716 = tpu.dynamic_rotate %703 by %c15_i32_500 dim 0 : vector<16x128xf32>, i32 -> vector<16x128xf32>
    %c15_i32_501 = arith.constant 15 : i32
    %717 = tpu.dynamic_rotate %710 by %c15_i32_501 dim 0 : vector<16x128xf32>, i32 -> vector<16x128xf32>
    %718 = vector.broadcast %1 : vector<1x128xf32> to vector<16x128xf32>
    %719 = arith.mulf %697, %718 : vector<16x128xf32>
    %720 = vector.broadcast %2 : vector<1x128xf32> to vector<16x128xf32>
    %721 = arith.mulf %700, %720 : vector<16x128xf32>
    %722 = arith.addf %719, %721 : vector<16x128xf32>
    %723 = vector.broadcast %3 : vector<1x128xf32> to vector<16x128xf32>
    %724 = arith.mulf %715, %723 : vector<16x128xf32>
    %725 = arith.addf %722, %724 : vector<16x128xf32>
    %726 = vector.broadcast %4 : vector<1x128xf32> to vector<16x128xf32>
    %727 = arith.mulf %703, %726 : vector<16x128xf32>
    %728 = arith.addf %725, %727 : vector<16x128xf32>
    %729 = vector.broadcast %5 : vector<1x128xf32> to vector<16x128xf32>
    %730 = arith.mulf %706, %729 : vector<16x128xf32>
    %731 = arith.addf %728, %730 : vector<16x128xf32>
    %732 = vector.broadcast %6 : vector<1x128xf32> to vector<16x128xf32>
    %733 = arith.mulf %716, %732 : vector<16x128xf32>
    %734 = arith.addf %731, %733 : vector<16x128xf32>
    %735 = vector.broadcast %7 : vector<1x128xf32> to vector<16x128xf32>
    %736 = arith.mulf %710, %735 : vector<16x128xf32>
    %737 = arith.addf %734, %736 : vector<16x128xf32>
    %738 = vector.broadcast %8 : vector<1x128xf32> to vector<16x128xf32>
    %739 = arith.mulf %714, %738 : vector<16x128xf32>
    %740 = arith.addf %737, %739 : vector<16x128xf32>
    %741 = vector.broadcast %9 : vector<1x128xf32> to vector<16x128xf32>
    %742 = arith.mulf %717, %741 : vector<16x128xf32>
    %743 = arith.addf %740, %742 : vector<16x128xf32>
    %744 = vector.extract_strided_slice %743 {offsets = [0, 0], sizes = [14, 128], strides = [1, 1]} : vector<16x128xf32> to vector<14x128xf32>
    %c0_502 = arith.constant 0 : index
    %745 = arith.index_cast %c12_i32 : i32 to index
    %c0_503 = arith.constant 0 : index
    %c0_504 = arith.constant 0 : index
    %746 = vector.load %arg6[%c0_502, %745, %c0_503, %c0_504] : memref<1x14x14x128xf32, #tpu.memory_space<vmem>>, vector<1x1x14x128xf32>
    %747 = vector.shape_cast %746 : vector<1x1x14x128xf32> to vector<14x128xf32>
    %748 = vector.shape_cast %744 : vector<14x128xf32> to vector<1x1x14x128xf32>
    tpu.vector_store %arg6[%c0_502, %745, %c0_503, %c0_504], %748 {strides = array<i32>} : memref<1x14x14x128xf32, #tpu.memory_space<vmem>>, vector<1x1x14x128xf32>,
    %cst_505 = arith.constant dense<0.000000e+00> : vector<128xf32>
    %749 = vector.multi_reduction <add>, %744, %cst_505 [0] : vector<14x128xf32> to vector<128xf32>
    %750 = vector.shape_cast %749 : vector<128xf32> to vector<1x128xf32>
    %751 = arith.addf %694, %750 : vector<1x128xf32>
    %c13_i32 = arith.constant 13 : i32
    %c0_506 = arith.constant 0 : index
    %c0_507 = arith.constant 0 : index
    %c0_508 = arith.constant 0 : index
    %752 = arith.index_cast %c13_i32 : i32 to index
    %c0_509 = arith.constant 0 : index
    %c0_510 = arith.constant 0 : index
    %753 = vector.load %arg1[%c0_506, %c0_507, %c0_508, %752, %c0_509, %c0_510] : memref<2x2x1x15x16x128xf32, #tpu.memory_space<vmem>>, vector<1x1x1x1x16x128xf32>
    %754 = vector.shape_cast %753 : vector<1x1x1x1x16x128xf32> to vector<16x128xf32>
    %c0_511 = arith.constant 0 : index
    %c1_512 = arith.constant 1 : index
    %c0_513 = arith.constant 0 : index
    %755 = arith.index_cast %c13_i32 : i32 to index
    %c0_514 = arith.constant 0 : index
    %c0_515 = arith.constant 0 : index
    %756 = vector.load %arg1[%c0_511, %c1_512, %c0_513, %755, %c0_514, %c0_515] : memref<2x2x1x15x16x128xf32, #tpu.memory_space<vmem>>, vector<1x1x1x1x16x128xf32>
    %757 = vector.shape_cast %756 : vector<1x1x1x1x16x128xf32> to vector<16x128xf32>
    %c1_516 = arith.constant 1 : index
    %c0_517 = arith.constant 0 : index
    %c0_518 = arith.constant 0 : index
    %758 = arith.index_cast %c13_i32 : i32 to index
    %c0_519 = arith.constant 0 : index
    %c0_520 = arith.constant 0 : index
    %759 = vector.load %arg1[%c1_516, %c0_517, %c0_518, %758, %c0_519, %c0_520] : memref<2x2x1x15x16x128xf32, #tpu.memory_space<vmem>>, vector<1x1x1x1x16x128xf32>
    %760 = vector.shape_cast %759 : vector<1x1x1x1x16x128xf32> to vector<16x128xf32>
    %c1_521 = arith.constant 1 : index
    %c1_522 = arith.constant 1 : index
    %c0_523 = arith.constant 0 : index
    %761 = arith.index_cast %c13_i32 : i32 to index
    %c0_524 = arith.constant 0 : index
    %c0_525 = arith.constant 0 : index
    %762 = vector.load %arg1[%c1_521, %c1_522, %c0_523, %761, %c0_524, %c0_525] : memref<2x2x1x15x16x128xf32, #tpu.memory_space<vmem>>, vector<1x1x1x1x16x128xf32>
    %763 = vector.shape_cast %762 : vector<1x1x1x1x16x128xf32> to vector<16x128xf32>
    %c1_i32_526 = arith.constant 1 : i32
    %764 = arith.addi %c13_i32, %c1_i32_526 : i32
    %c0_527 = arith.constant 0 : index
    %c0_528 = arith.constant 0 : index
    %c0_529 = arith.constant 0 : index
    %765 = arith.index_cast %764 : i32 to index
    %c0_530 = arith.constant 0 : index
    %c0_531 = arith.constant 0 : index
    %766 = vector.load %arg1[%c0_527, %c0_528, %c0_529, %765, %c0_530, %c0_531] : memref<2x2x1x15x16x128xf32, #tpu.memory_space<vmem>>, vector<1x1x1x1x16x128xf32>
    %767 = vector.shape_cast %766 : vector<1x1x1x1x16x128xf32> to vector<16x128xf32>
    %c1_i32_532 = arith.constant 1 : i32
    %768 = arith.addi %c13_i32, %c1_i32_532 : i32
    %c0_533 = arith.constant 0 : index
    %c1_534 = arith.constant 1 : index
    %c0_535 = arith.constant 0 : index
    %769 = arith.index_cast %768 : i32 to index
    %c0_536 = arith.constant 0 : index
    %c0_537 = arith.constant 0 : index
    %770 = vector.load %arg1[%c0_533, %c1_534, %c0_535, %769, %c0_536, %c0_537] : memref<2x2x1x15x16x128xf32, #tpu.memory_space<vmem>>, vector<1x1x1x1x16x128xf32>
    %771 = vector.shape_cast %770 : vector<1x1x1x1x16x128xf32> to vector<16x128xf32>
    %c15_i32_538 = arith.constant 15 : i32
    %772 = tpu.dynamic_rotate %754 by %c15_i32_538 dim 0 : vector<16x128xf32>, i32 -> vector<16x128xf32>
    %c15_i32_539 = arith.constant 15 : i32
    %773 = tpu.dynamic_rotate %760 by %c15_i32_539 dim 0 : vector<16x128xf32>, i32 -> vector<16x128xf32>
    %c15_i32_540 = arith.constant 15 : i32
    %774 = tpu.dynamic_rotate %767 by %c15_i32_540 dim 0 : vector<16x128xf32>, i32 -> vector<16x128xf32>
    %775 = vector.broadcast %1 : vector<1x128xf32> to vector<16x128xf32>
    %776 = arith.mulf %754, %775 : vector<16x128xf32>
    %777 = vector.broadcast %2 : vector<1x128xf32> to vector<16x128xf32>
    %778 = arith.mulf %757, %777 : vector<16x128xf32>
    %779 = arith.addf %776, %778 : vector<16x128xf32>
    %780 = vector.broadcast %3 : vector<1x128xf32> to vector<16x128xf32>
    %781 = arith.mulf %772, %780 : vector<16x128xf32>
    %782 = arith.addf %779, %781 : vector<16x128xf32>
    %783 = vector.broadcast %4 : vector<1x128xf32> to vector<16x128xf32>
    %784 = arith.mulf %760, %783 : vector<16x128xf32>
    %785 = arith.addf %782, %784 : vector<16x128xf32>
    %786 = vector.broadcast %5 : vector<1x128xf32> to vector<16x128xf32>
    %787 = arith.mulf %763, %786 : vector<16x128xf32>
    %788 = arith.addf %785, %787 : vector<16x128xf32>
    %789 = vector.broadcast %6 : vector<1x128xf32> to vector<16x128xf32>
    %790 = arith.mulf %773, %789 : vector<16x128xf32>
    %791 = arith.addf %788, %790 : vector<16x128xf32>
    %792 = vector.broadcast %7 : vector<1x128xf32> to vector<16x128xf32>
    %793 = arith.mulf %767, %792 : vector<16x128xf32>
    %794 = arith.addf %791, %793 : vector<16x128xf32>
    %795 = vector.broadcast %8 : vector<1x128xf32> to vector<16x128xf32>
    %796 = arith.mulf %771, %795 : vector<16x128xf32>
    %797 = arith.addf %794, %796 : vector<16x128xf32>
    %798 = vector.broadcast %9 : vector<1x128xf32> to vector<16x128xf32>
    %799 = arith.mulf %774, %798 : vector<16x128xf32>
    %800 = arith.addf %797, %799 : vector<16x128xf32>
    %801 = vector.extract_strided_slice %800 {offsets = [0, 0], sizes = [14, 128], strides = [1, 1]} : vector<16x128xf32> to vector<14x128xf32>
    %c0_541 = arith.constant 0 : index
    %802 = arith.index_cast %c13_i32 : i32 to index
    %c0_542 = arith.constant 0 : index
    %c0_543 = arith.constant 0 : index
    %803 = vector.load %arg6[%c0_541, %802, %c0_542, %c0_543] : memref<1x14x14x128xf32, #tpu.memory_space<vmem>>, vector<1x1x14x128xf32>
    %804 = vector.shape_cast %803 : vector<1x1x14x128xf32> to vector<14x128xf32>
    %805 = vector.shape_cast %801 : vector<14x128xf32> to vector<1x1x14x128xf32>
    tpu.vector_store %arg6[%c0_541, %802, %c0_542, %c0_543], %805 {strides = array<i32>} : memref<1x14x14x128xf32, #tpu.memory_space<vmem>>, vector<1x1x14x128xf32>,
    %cst_544 = arith.constant dense<0.000000e+00> : vector<128xf32>
    %806 = vector.multi_reduction <add>, %801, %cst_544 [0] : vector<14x128xf32> to vector<128xf32>
    %807 = vector.shape_cast %806 : vector<128xf32> to vector<1x128xf32>
    %808 = arith.addf %751, %807 : vector<1x128xf32>
    %c14_i32 = arith.constant 14 : i32
    %cst_545 = arith.constant 0.00510204071 : f32
    %809 = vector.broadcast %cst_545 : f32 to vector<1x128xf32>
    %810 = arith.mulf %808, %809 : vector<1x128xf32>
    %cst_546 = arith.constant 0.000000e+00 : f32
    %811 = vector.broadcast %cst_546 : f32 to vector<1x128xf32>
    %c0_i32_547 = arith.constant 0 : i32
    %c0_548 = arith.constant 0 : index
    %812 = arith.index_cast %c0_i32_547 : i32 to index
    %c0_549 = arith.constant 0 : index
    %c0_550 = arith.constant 0 : index
    %813 = vector.load %arg6[%c0_548, %812, %c0_549, %c0_550] : memref<1x14x14x128xf32, #tpu.memory_space<vmem>>, vector<1x1x14x128xf32>
    %814 = vector.shape_cast %813 : vector<1x1x14x128xf32> to vector<14x128xf32>
    %815 = vector.broadcast %810 : vector<1x128xf32> to vector<14x128xf32>
    %816 = arith.subf %814, %815 : vector<14x128xf32>
    %817 = arith.mulf %816, %816 : vector<14x128xf32>
    %cst_551 = arith.constant dense<0.000000e+00> : vector<128xf32>
    %818 = vector.multi_reduction <add>, %817, %cst_551 [0] : vector<14x128xf32> to vector<128xf32>
    %819 = vector.shape_cast %818 : vector<128xf32> to vector<1x128xf32>
    %820 = arith.addf %811, %819 : vector<1x128xf32>
    %c1_i32_552 = arith.constant 1 : i32
    %c0_553 = arith.constant 0 : index
    %821 = arith.index_cast %c1_i32_552 : i32 to index
    %c0_554 = arith.constant 0 : index
    %c0_555 = arith.constant 0 : index
    %822 = vector.load %arg6[%c0_553, %821, %c0_554, %c0_555] : memref<1x14x14x128xf32, #tpu.memory_space<vmem>>, vector<1x1x14x128xf32>
    %823 = vector.shape_cast %822 : vector<1x1x14x128xf32> to vector<14x128xf32>
    %824 = vector.broadcast %810 : vector<1x128xf32> to vector<14x128xf32>
    %825 = arith.subf %823, %824 : vector<14x128xf32>
    %826 = arith.mulf %825, %825 : vector<14x128xf32>
    %cst_556 = arith.constant dense<0.000000e+00> : vector<128xf32>
    %827 = vector.multi_reduction <add>, %826, %cst_556 [0] : vector<14x128xf32> to vector<128xf32>
    %828 = vector.shape_cast %827 : vector<128xf32> to vector<1x128xf32>
    %829 = arith.addf %820, %828 : vector<1x128xf32>
    %c2_i32_557 = arith.constant 2 : i32
    %c0_558 = arith.constant 0 : index
    %830 = arith.index_cast %c2_i32_557 : i32 to index
    %c0_559 = arith.constant 0 : index
    %c0_560 = arith.constant 0 : index
    %831 = vector.load %arg6[%c0_558, %830, %c0_559, %c0_560] : memref<1x14x14x128xf32, #tpu.memory_space<vmem>>, vector<1x1x14x128xf32>
    %832 = vector.shape_cast %831 : vector<1x1x14x128xf32> to vector<14x128xf32>
    %833 = vector.broadcast %810 : vector<1x128xf32> to vector<14x128xf32>
    %834 = arith.subf %832, %833 : vector<14x128xf32>
    %835 = arith.mulf %834, %834 : vector<14x128xf32>
    %cst_561 = arith.constant dense<0.000000e+00> : vector<128xf32>
    %836 = vector.multi_reduction <add>, %835, %cst_561 [0] : vector<14x128xf32> to vector<128xf32>
    %837 = vector.shape_cast %836 : vector<128xf32> to vector<1x128xf32>
    %838 = arith.addf %829, %837 : vector<1x128xf32>
    %c3_i32_562 = arith.constant 3 : i32
    %c0_563 = arith.constant 0 : index
    %839 = arith.index_cast %c3_i32_562 : i32 to index
    %c0_564 = arith.constant 0 : index
    %c0_565 = arith.constant 0 : index
    %840 = vector.load %arg6[%c0_563, %839, %c0_564, %c0_565] : memref<1x14x14x128xf32, #tpu.memory_space<vmem>>, vector<1x1x14x128xf32>
    %841 = vector.shape_cast %840 : vector<1x1x14x128xf32> to vector<14x128xf32>
    %842 = vector.broadcast %810 : vector<1x128xf32> to vector<14x128xf32>
    %843 = arith.subf %841, %842 : vector<14x128xf32>
    %844 = arith.mulf %843, %843 : vector<14x128xf32>
    %cst_566 = arith.constant dense<0.000000e+00> : vector<128xf32>
    %845 = vector.multi_reduction <add>, %844, %cst_566 [0] : vector<14x128xf32> to vector<128xf32>
    %846 = vector.shape_cast %845 : vector<128xf32> to vector<1x128xf32>
    %847 = arith.addf %838, %846 : vector<1x128xf32>
    %c4_i32_567 = arith.constant 4 : i32
    %c0_568 = arith.constant 0 : index
    %848 = arith.index_cast %c4_i32_567 : i32 to index
    %c0_569 = arith.constant 0 : index
    %c0_570 = arith.constant 0 : index
    %849 = vector.load %arg6[%c0_568, %848, %c0_569, %c0_570] : memref<1x14x14x128xf32, #tpu.memory_space<vmem>>, vector<1x1x14x128xf32>
    %850 = vector.shape_cast %849 : vector<1x1x14x128xf32> to vector<14x128xf32>
    %851 = vector.broadcast %810 : vector<1x128xf32> to vector<14x128xf32>
    %852 = arith.subf %850, %851 : vector<14x128xf32>
    %853 = arith.mulf %852, %852 : vector<14x128xf32>
    %cst_571 = arith.constant dense<0.000000e+00> : vector<128xf32>
    %854 = vector.multi_reduction <add>, %853, %cst_571 [0] : vector<14x128xf32> to vector<128xf32>
    %855 = vector.shape_cast %854 : vector<128xf32> to vector<1x128xf32>
    %856 = arith.addf %847, %855 : vector<1x128xf32>
    %c5_i32_572 = arith.constant 5 : i32
    %c0_573 = arith.constant 0 : index
    %857 = arith.index_cast %c5_i32_572 : i32 to index
    %c0_574 = arith.constant 0 : index
    %c0_575 = arith.constant 0 : index
    %858 = vector.load %arg6[%c0_573, %857, %c0_574, %c0_575] : memref<1x14x14x128xf32, #tpu.memory_space<vmem>>, vector<1x1x14x128xf32>
    %859 = vector.shape_cast %858 : vector<1x1x14x128xf32> to vector<14x128xf32>
    %860 = vector.broadcast %810 : vector<1x128xf32> to vector<14x128xf32>
    %861 = arith.subf %859, %860 : vector<14x128xf32>
    %862 = arith.mulf %861, %861 : vector<14x128xf32>
    %cst_576 = arith.constant dense<0.000000e+00> : vector<128xf32>
    %863 = vector.multi_reduction <add>, %862, %cst_576 [0] : vector<14x128xf32> to vector<128xf32>
    %864 = vector.shape_cast %863 : vector<128xf32> to vector<1x128xf32>
    %865 = arith.addf %856, %864 : vector<1x128xf32>
    %c6_i32_577 = arith.constant 6 : i32
    %c0_578 = arith.constant 0 : index
    %866 = arith.index_cast %c6_i32_577 : i32 to index
    %c0_579 = arith.constant 0 : index
    %c0_580 = arith.constant 0 : index
    %867 = vector.load %arg6[%c0_578, %866, %c0_579, %c0_580] : memref<1x14x14x128xf32, #tpu.memory_space<vmem>>, vector<1x1x14x128xf32>
    %868 = vector.shape_cast %867 : vector<1x1x14x128xf32> to vector<14x128xf32>
    %869 = vector.broadcast %810 : vector<1x128xf32> to vector<14x128xf32>
    %870 = arith.subf %868, %869 : vector<14x128xf32>
    %871 = arith.mulf %870, %870 : vector<14x128xf32>
    %cst_581 = arith.constant dense<0.000000e+00> : vector<128xf32>
    %872 = vector.multi_reduction <add>, %871, %cst_581 [0] : vector<14x128xf32> to vector<128xf32>
    %873 = vector.shape_cast %872 : vector<128xf32> to vector<1x128xf32>
    %874 = arith.addf %865, %873 : vector<1x128xf32>
    %c7_i32_582 = arith.constant 7 : i32
    %c0_583 = arith.constant 0 : index
    %875 = arith.index_cast %c7_i32_582 : i32 to index
    %c0_584 = arith.constant 0 : index
    %c0_585 = arith.constant 0 : index
    %876 = vector.load %arg6[%c0_583, %875, %c0_584, %c0_585] : memref<1x14x14x128xf32, #tpu.memory_space<vmem>>, vector<1x1x14x128xf32>
    %877 = vector.shape_cast %876 : vector<1x1x14x128xf32> to vector<14x128xf32>
    %878 = vector.broadcast %810 : vector<1x128xf32> to vector<14x128xf32>
    %879 = arith.subf %877, %878 : vector<14x128xf32>
    %880 = arith.mulf %879, %879 : vector<14x128xf32>
    %cst_586 = arith.constant dense<0.000000e+00> : vector<128xf32>
    %881 = vector.multi_reduction <add>, %880, %cst_586 [0] : vector<14x128xf32> to vector<128xf32>
    %882 = vector.shape_cast %881 : vector<128xf32> to vector<1x128xf32>
    %883 = arith.addf %874, %882 : vector<1x128xf32>
    %c8_i32_587 = arith.constant 8 : i32
    %c0_588 = arith.constant 0 : index
    %884 = arith.index_cast %c8_i32_587 : i32 to index
    %c0_589 = arith.constant 0 : index
    %c0_590 = arith.constant 0 : index
    %885 = vector.load %arg6[%c0_588, %884, %c0_589, %c0_590] : memref<1x14x14x128xf32, #tpu.memory_space<vmem>>, vector<1x1x14x128xf32>
    %886 = vector.shape_cast %885 : vector<1x1x14x128xf32> to vector<14x128xf32>
    %887 = vector.broadcast %810 : vector<1x128xf32> to vector<14x128xf32>
    %888 = arith.subf %886, %887 : vector<14x128xf32>
    %889 = arith.mulf %888, %888 : vector<14x128xf32>
    %cst_591 = arith.constant dense<0.000000e+00> : vector<128xf32>
    %890 = vector.multi_reduction <add>, %889, %cst_591 [0] : vector<14x128xf32> to vector<128xf32>
    %891 = vector.shape_cast %890 : vector<128xf32> to vector<1x128xf32>
    %892 = arith.addf %883, %891 : vector<1x128xf32>
    %c9_i32_592 = arith.constant 9 : i32
    %c0_593 = arith.constant 0 : index
    %893 = arith.index_cast %c9_i32_592 : i32 to index
    %c0_594 = arith.constant 0 : index
    %c0_595 = arith.constant 0 : index
    %894 = vector.load %arg6[%c0_593, %893, %c0_594, %c0_595] : memref<1x14x14x128xf32, #tpu.memory_space<vmem>>, vector<1x1x14x128xf32>
    %895 = vector.shape_cast %894 : vector<1x1x14x128xf32> to vector<14x128xf32>
    %896 = vector.broadcast %810 : vector<1x128xf32> to vector<14x128xf32>
    %897 = arith.subf %895, %896 : vector<14x128xf32>
    %898 = arith.mulf %897, %897 : vector<14x128xf32>
    %cst_596 = arith.constant dense<0.000000e+00> : vector<128xf32>
    %899 = vector.multi_reduction <add>, %898, %cst_596 [0] : vector<14x128xf32> to vector<128xf32>
    %900 = vector.shape_cast %899 : vector<128xf32> to vector<1x128xf32>
    %901 = arith.addf %892, %900 : vector<1x128xf32>
    %c10_i32_597 = arith.constant 10 : i32
    %c0_598 = arith.constant 0 : index
    %902 = arith.index_cast %c10_i32_597 : i32 to index
    %c0_599 = arith.constant 0 : index
    %c0_600 = arith.constant 0 : index
    %903 = vector.load %arg6[%c0_598, %902, %c0_599, %c0_600] : memref<1x14x14x128xf32, #tpu.memory_space<vmem>>, vector<1x1x14x128xf32>
    %904 = vector.shape_cast %903 : vector<1x1x14x128xf32> to vector<14x128xf32>
    %905 = vector.broadcast %810 : vector<1x128xf32> to vector<14x128xf32>
    %906 = arith.subf %904, %905 : vector<14x128xf32>
    %907 = arith.mulf %906, %906 : vector<14x128xf32>
    %cst_601 = arith.constant dense<0.000000e+00> : vector<128xf32>
    %908 = vector.multi_reduction <add>, %907, %cst_601 [0] : vector<14x128xf32> to vector<128xf32>
    %909 = vector.shape_cast %908 : vector<128xf32> to vector<1x128xf32>
    %910 = arith.addf %901, %909 : vector<1x128xf32>
    %c11_i32_602 = arith.constant 11 : i32
    %c0_603 = arith.constant 0 : index
    %911 = arith.index_cast %c11_i32_602 : i32 to index
    %c0_604 = arith.constant 0 : index
    %c0_605 = arith.constant 0 : index
    %912 = vector.load %arg6[%c0_603, %911, %c0_604, %c0_605] : memref<1x14x14x128xf32, #tpu.memory_space<vmem>>, vector<1x1x14x128xf32>
    %913 = vector.shape_cast %912 : vector<1x1x14x128xf32> to vector<14x128xf32>
    %914 = vector.broadcast %810 : vector<1x128xf32> to vector<14x128xf32>
    %915 = arith.subf %913, %914 : vector<14x128xf32>
    %916 = arith.mulf %915, %915 : vector<14x128xf32>
    %cst_606 = arith.constant dense<0.000000e+00> : vector<128xf32>
    %917 = vector.multi_reduction <add>, %916, %cst_606 [0] : vector<14x128xf32> to vector<128xf32>
    %918 = vector.shape_cast %917 : vector<128xf32> to vector<1x128xf32>
    %919 = arith.addf %910, %918 : vector<1x128xf32>
    %c12_i32_607 = arith.constant 12 : i32
    %c0_608 = arith.constant 0 : index
    %920 = arith.index_cast %c12_i32_607 : i32 to index
    %c0_609 = arith.constant 0 : index
    %c0_610 = arith.constant 0 : index
    %921 = vector.load %arg6[%c0_608, %920, %c0_609, %c0_610] : memref<1x14x14x128xf32, #tpu.memory_space<vmem>>, vector<1x1x14x128xf32>
    %922 = vector.shape_cast %921 : vector<1x1x14x128xf32> to vector<14x128xf32>
    %923 = vector.broadcast %810 : vector<1x128xf32> to vector<14x128xf32>
    %924 = arith.subf %922, %923 : vector<14x128xf32>
    %925 = arith.mulf %924, %924 : vector<14x128xf32>
    %cst_611 = arith.constant dense<0.000000e+00> : vector<128xf32>
    %926 = vector.multi_reduction <add>, %925, %cst_611 [0] : vector<14x128xf32> to vector<128xf32>
    %927 = vector.shape_cast %926 : vector<128xf32> to vector<1x128xf32>
    %928 = arith.addf %919, %927 : vector<1x128xf32>
    %c13_i32_612 = arith.constant 13 : i32
    %c0_613 = arith.constant 0 : index
    %929 = arith.index_cast %c13_i32_612 : i32 to index
    %c0_614 = arith.constant 0 : index
    %c0_615 = arith.constant 0 : index
    %930 = vector.load %arg6[%c0_613, %929, %c0_614, %c0_615] : memref<1x14x14x128xf32, #tpu.memory_space<vmem>>, vector<1x1x14x128xf32>
    %931 = vector.shape_cast %930 : vector<1x1x14x128xf32> to vector<14x128xf32>
    %932 = vector.broadcast %810 : vector<1x128xf32> to vector<14x128xf32>
    %933 = arith.subf %931, %932 : vector<14x128xf32>
    %934 = arith.mulf %933, %933 : vector<14x128xf32>
    %cst_616 = arith.constant dense<0.000000e+00> : vector<128xf32>
    %935 = vector.multi_reduction <add>, %934, %cst_616 [0] : vector<14x128xf32> to vector<128xf32>
    %936 = vector.shape_cast %935 : vector<128xf32> to vector<1x128xf32>
    %937 = arith.addf %928, %936 : vector<1x128xf32>
    %c14_i32_617 = arith.constant 14 : i32
    %cst_618 = arith.constant 0.00510204071 : f32
    %938 = vector.broadcast %cst_618 : f32 to vector<1x128xf32>
    %939 = arith.mulf %937, %938 : vector<1x128xf32>
    %cst_619 = arith.constant 9.99999974E-6 : f32
    %940 = vector.broadcast %cst_619 : f32 to vector<1x128xf32>
    %941 = arith.addf %939, %940 : vector<1x128xf32>
    %942 = math.rsqrt %941 : vector<1x128xf32>
    %c0_620 = arith.constant 0 : index
    %c0_621 = arith.constant 0 : index
    %943 = vector.load %arg3[%c0_620, %c0_621] : memref<1x128xf32, #tpu.memory_space<vmem>>, vector<1x128xf32>
    %944 = arith.mulf %943, %942 : vector<1x128xf32>
    %c0_622 = arith.constant 0 : index
    %c0_623 = arith.constant 0 : index
    %945 = vector.load %arg4[%c0_622, %c0_623] : memref<1x128xf32, #tpu.memory_space<vmem>>, vector<1x128xf32>
    %946 = arith.mulf %810, %944 : vector<1x128xf32>
    %947 = arith.subf %945, %946 : vector<1x128xf32>
    %c0_i32_624 = arith.constant 0 : i32
    %c0_625 = arith.constant 0 : index
    %948 = arith.index_cast %c0_i32_624 : i32 to index
    %c0_626 = arith.constant 0 : index
    %c0_627 = arith.constant 0 : index
    %949 = vector.load %arg6[%c0_625, %948, %c0_626, %c0_627] : memref<1x14x14x128xf32, #tpu.memory_space<vmem>>, vector<1x1x14x128xf32>
    %950 = vector.shape_cast %949 : vector<1x1x14x128xf32> to vector<14x128xf32>
    %951 = vector.broadcast %944 : vector<1x128xf32> to vector<14x128xf32>
    %952 = arith.mulf %950, %951 : vector<14x128xf32>
    %953 = vector.broadcast %947 : vector<1x128xf32> to vector<14x128xf32>
    %954 = arith.addf %952, %953 : vector<14x128xf32>
    %c0_628 = arith.constant 0 : index
    %955 = arith.index_cast %c0_i32_624 : i32 to index
    %c0_629 = arith.constant 0 : index
    %c0_630 = arith.constant 0 : index
    %956 = vector.load %arg5[%c0_628, %955, %c0_629, %c0_630] : memref<1x14x14x128xf32, #tpu.memory_space<vmem>>, vector<1x1x14x128xf32>
    %957 = vector.shape_cast %956 : vector<1x1x14x128xf32> to vector<14x128xf32>
    %958 = vector.shape_cast %954 : vector<14x128xf32> to vector<1x1x14x128xf32>
    tpu.vector_store %arg5[%c0_628, %955, %c0_629, %c0_630], %958 {strides = array<i32>} : memref<1x14x14x128xf32, #tpu.memory_space<vmem>>, vector<1x1x14x128xf32>,
    %c1_i32_631 = arith.constant 1 : i32
    %c0_632 = arith.constant 0 : index
    %959 = arith.index_cast %c1_i32_631 : i32 to index
    %c0_633 = arith.constant 0 : index
    %c0_634 = arith.constant 0 : index
    %960 = vector.load %arg6[%c0_632, %959, %c0_633, %c0_634] : memref<1x14x14x128xf32, #tpu.memory_space<vmem>>, vector<1x1x14x128xf32>
    %961 = vector.shape_cast %960 : vector<1x1x14x128xf32> to vector<14x128xf32>
    %962 = vector.broadcast %944 : vector<1x128xf32> to vector<14x128xf32>
    %963 = arith.mulf %961, %962 : vector<14x128xf32>
    %964 = vector.broadcast %947 : vector<1x128xf32> to vector<14x128xf32>
    %965 = arith.addf %963, %964 : vector<14x128xf32>
    %c0_635 = arith.constant 0 : index
    %966 = arith.index_cast %c1_i32_631 : i32 to index
    %c0_636 = arith.constant 0 : index
    %c0_637 = arith.constant 0 : index
    %967 = vector.load %arg5[%c0_635, %966, %c0_636, %c0_637] : memref<1x14x14x128xf32, #tpu.memory_space<vmem>>, vector<1x1x14x128xf32>
    %968 = vector.shape_cast %967 : vector<1x1x14x128xf32> to vector<14x128xf32>
    %969 = vector.shape_cast %965 : vector<14x128xf32> to vector<1x1x14x128xf32>
    tpu.vector_store %arg5[%c0_635, %966, %c0_636, %c0_637], %969 {strides = array<i32>} : memref<1x14x14x128xf32, #tpu.memory_space<vmem>>, vector<1x1x14x128xf32>,
    %c2_i32_638 = arith.constant 2 : i32
    %c0_639 = arith.constant 0 : index
    %970 = arith.index_cast %c2_i32_638 : i32 to index
    %c0_640 = arith.constant 0 : index
    %c0_641 = arith.constant 0 : index
    %971 = vector.load %arg6[%c0_639, %970, %c0_640, %c0_641] : memref<1x14x14x128xf32, #tpu.memory_space<vmem>>, vector<1x1x14x128xf32>
    %972 = vector.shape_cast %971 : vector<1x1x14x128xf32> to vector<14x128xf32>
    %973 = vector.broadcast %944 : vector<1x128xf32> to vector<14x128xf32>
    %974 = arith.mulf %972, %973 : vector<14x128xf32>
    %975 = vector.broadcast %947 : vector<1x128xf32> to vector<14x128xf32>
    %976 = arith.addf %974, %975 : vector<14x128xf32>
    %c0_642 = arith.constant 0 : index
    %977 = arith.index_cast %c2_i32_638 : i32 to index
    %c0_643 = arith.constant 0 : index
    %c0_644 = arith.constant 0 : index
    %978 = vector.load %arg5[%c0_642, %977, %c0_643, %c0_644] : memref<1x14x14x128xf32, #tpu.memory_space<vmem>>, vector<1x1x14x128xf32>
    %979 = vector.shape_cast %978 : vector<1x1x14x128xf32> to vector<14x128xf32>
    %980 = vector.shape_cast %976 : vector<14x128xf32> to vector<1x1x14x128xf32>
    tpu.vector_store %arg5[%c0_642, %977, %c0_643, %c0_644], %980 {strides = array<i32>} : memref<1x14x14x128xf32, #tpu.memory_space<vmem>>, vector<1x1x14x128xf32>,
    %c3_i32_645 = arith.constant 3 : i32
    %c0_646 = arith.constant 0 : index
    %981 = arith.index_cast %c3_i32_645 : i32 to index
    %c0_647 = arith.constant 0 : index
    %c0_648 = arith.constant 0 : index
    %982 = vector.load %arg6[%c0_646, %981, %c0_647, %c0_648] : memref<1x14x14x128xf32, #tpu.memory_space<vmem>>, vector<1x1x14x128xf32>
    %983 = vector.shape_cast %982 : vector<1x1x14x128xf32> to vector<14x128xf32>
    %984 = vector.broadcast %944 : vector<1x128xf32> to vector<14x128xf32>
    %985 = arith.mulf %983, %984 : vector<14x128xf32>
    %986 = vector.broadcast %947 : vector<1x128xf32> to vector<14x128xf32>
    %987 = arith.addf %985, %986 : vector<14x128xf32>
    %c0_649 = arith.constant 0 : index
    %988 = arith.index_cast %c3_i32_645 : i32 to index
    %c0_650 = arith.constant 0 : index
    %c0_651 = arith.constant 0 : index
    %989 = vector.load %arg5[%c0_649, %988, %c0_650, %c0_651] : memref<1x14x14x128xf32, #tpu.memory_space<vmem>>, vector<1x1x14x128xf32>
    %990 = vector.shape_cast %989 : vector<1x1x14x128xf32> to vector<14x128xf32>
    %991 = vector.shape_cast %987 : vector<14x128xf32> to vector<1x1x14x128xf32>
    tpu.vector_store %arg5[%c0_649, %988, %c0_650, %c0_651], %991 {strides = array<i32>} : memref<1x14x14x128xf32, #tpu.memory_space<vmem>>, vector<1x1x14x128xf32>,
    %c4_i32_652 = arith.constant 4 : i32
    %c0_653 = arith.constant 0 : index
    %992 = arith.index_cast %c4_i32_652 : i32 to index
    %c0_654 = arith.constant 0 : index
    %c0_655 = arith.constant 0 : index
    %993 = vector.load %arg6[%c0_653, %992, %c0_654, %c0_655] : memref<1x14x14x128xf32, #tpu.memory_space<vmem>>, vector<1x1x14x128xf32>
    %994 = vector.shape_cast %993 : vector<1x1x14x128xf32> to vector<14x128xf32>
    %995 = vector.broadcast %944 : vector<1x128xf32> to vector<14x128xf32>
    %996 = arith.mulf %994, %995 : vector<14x128xf32>
    %997 = vector.broadcast %947 : vector<1x128xf32> to vector<14x128xf32>
    %998 = arith.addf %996, %997 : vector<14x128xf32>
    %c0_656 = arith.constant 0 : index
    %999 = arith.index_cast %c4_i32_652 : i32 to index
    %c0_657 = arith.constant 0 : index
    %c0_658 = arith.constant 0 : index
    %1000 = vector.load %arg5[%c0_656, %999, %c0_657, %c0_658] : memref<1x14x14x128xf32, #tpu.memory_space<vmem>>, vector<1x1x14x128xf32>
    %1001 = vector.shape_cast %1000 : vector<1x1x14x128xf32> to vector<14x128xf32>
    %1002 = vector.shape_cast %998 : vector<14x128xf32> to vector<1x1x14x128xf32>
    tpu.vector_store %arg5[%c0_656, %999, %c0_657, %c0_658], %1002 {strides = array<i32>} : memref<1x14x14x128xf32, #tpu.memory_space<vmem>>, vector<1x1x14x128xf32>,
    %c5_i32_659 = arith.constant 5 : i32
    %c0_660 = arith.constant 0 : index
    %1003 = arith.index_cast %c5_i32_659 : i32 to index
    %c0_661 = arith.constant 0 : index
    %c0_662 = arith.constant 0 : index
    %1004 = vector.load %arg6[%c0_660, %1003, %c0_661, %c0_662] : memref<1x14x14x128xf32, #tpu.memory_space<vmem>>, vector<1x1x14x128xf32>
    %1005 = vector.shape_cast %1004 : vector<1x1x14x128xf32> to vector<14x128xf32>
    %1006 = vector.broadcast %944 : vector<1x128xf32> to vector<14x128xf32>
    %1007 = arith.mulf %1005, %1006 : vector<14x128xf32>
    %1008 = vector.broadcast %947 : vector<1x128xf32> to vector<14x128xf32>
    %1009 = arith.addf %1007, %1008 : vector<14x128xf32>
    %c0_663 = arith.constant 0 : index
    %1010 = arith.index_cast %c5_i32_659 : i32 to index
    %c0_664 = arith.constant 0 : index
    %c0_665 = arith.constant 0 : index
    %1011 = vector.load %arg5[%c0_663, %1010, %c0_664, %c0_665] : memref<1x14x14x128xf32, #tpu.memory_space<vmem>>, vector<1x1x14x128xf32>
    %1012 = vector.shape_cast %1011 : vector<1x1x14x128xf32> to vector<14x128xf32>
    %1013 = vector.shape_cast %1009 : vector<14x128xf32> to vector<1x1x14x128xf32>
    tpu.vector_store %arg5[%c0_663, %1010, %c0_664, %c0_665], %1013 {strides = array<i32>} : memref<1x14x14x128xf32, #tpu.memory_space<vmem>>, vector<1x1x14x128xf32>,
    %c6_i32_666 = arith.constant 6 : i32
    %c0_667 = arith.constant 0 : index
    %1014 = arith.index_cast %c6_i32_666 : i32 to index
    %c0_668 = arith.constant 0 : index
    %c0_669 = arith.constant 0 : index
    %1015 = vector.load %arg6[%c0_667, %1014, %c0_668, %c0_669] : memref<1x14x14x128xf32, #tpu.memory_space<vmem>>, vector<1x1x14x128xf32>
    %1016 = vector.shape_cast %1015 : vector<1x1x14x128xf32> to vector<14x128xf32>
    %1017 = vector.broadcast %944 : vector<1x128xf32> to vector<14x128xf32>
    %1018 = arith.mulf %1016, %1017 : vector<14x128xf32>
    %1019 = vector.broadcast %947 : vector<1x128xf32> to vector<14x128xf32>
    %1020 = arith.addf %1018, %1019 : vector<14x128xf32>
    %c0_670 = arith.constant 0 : index
    %1021 = arith.index_cast %c6_i32_666 : i32 to index
    %c0_671 = arith.constant 0 : index
    %c0_672 = arith.constant 0 : index
    %1022 = vector.load %arg5[%c0_670, %1021, %c0_671, %c0_672] : memref<1x14x14x128xf32, #tpu.memory_space<vmem>>, vector<1x1x14x128xf32>
    %1023 = vector.shape_cast %1022 : vector<1x1x14x128xf32> to vector<14x128xf32>
    %1024 = vector.shape_cast %1020 : vector<14x128xf32> to vector<1x1x14x128xf32>
    tpu.vector_store %arg5[%c0_670, %1021, %c0_671, %c0_672], %1024 {strides = array<i32>} : memref<1x14x14x128xf32, #tpu.memory_space<vmem>>, vector<1x1x14x128xf32>,
    %c7_i32_673 = arith.constant 7 : i32
    %c0_674 = arith.constant 0 : index
    %1025 = arith.index_cast %c7_i32_673 : i32 to index
    %c0_675 = arith.constant 0 : index
    %c0_676 = arith.constant 0 : index
    %1026 = vector.load %arg6[%c0_674, %1025, %c0_675, %c0_676] : memref<1x14x14x128xf32, #tpu.memory_space<vmem>>, vector<1x1x14x128xf32>
    %1027 = vector.shape_cast %1026 : vector<1x1x14x128xf32> to vector<14x128xf32>
    %1028 = vector.broadcast %944 : vector<1x128xf32> to vector<14x128xf32>
    %1029 = arith.mulf %1027, %1028 : vector<14x128xf32>
    %1030 = vector.broadcast %947 : vector<1x128xf32> to vector<14x128xf32>
    %1031 = arith.addf %1029, %1030 : vector<14x128xf32>
    %c0_677 = arith.constant 0 : index
    %1032 = arith.index_cast %c7_i32_673 : i32 to index
    %c0_678 = arith.constant 0 : index
    %c0_679 = arith.constant 0 : index
    %1033 = vector.load %arg5[%c0_677, %1032, %c0_678, %c0_679] : memref<1x14x14x128xf32, #tpu.memory_space<vmem>>, vector<1x1x14x128xf32>
    %1034 = vector.shape_cast %1033 : vector<1x1x14x128xf32> to vector<14x128xf32>
    %1035 = vector.shape_cast %1031 : vector<14x128xf32> to vector<1x1x14x128xf32>
    tpu.vector_store %arg5[%c0_677, %1032, %c0_678, %c0_679], %1035 {strides = array<i32>} : memref<1x14x14x128xf32, #tpu.memory_space<vmem>>, vector<1x1x14x128xf32>,
    %c8_i32_680 = arith.constant 8 : i32
    %c0_681 = arith.constant 0 : index
    %1036 = arith.index_cast %c8_i32_680 : i32 to index
    %c0_682 = arith.constant 0 : index
    %c0_683 = arith.constant 0 : index
    %1037 = vector.load %arg6[%c0_681, %1036, %c0_682, %c0_683] : memref<1x14x14x128xf32, #tpu.memory_space<vmem>>, vector<1x1x14x128xf32>
    %1038 = vector.shape_cast %1037 : vector<1x1x14x128xf32> to vector<14x128xf32>
    %1039 = vector.broadcast %944 : vector<1x128xf32> to vector<14x128xf32>
    %1040 = arith.mulf %1038, %1039 : vector<14x128xf32>
    %1041 = vector.broadcast %947 : vector<1x128xf32> to vector<14x128xf32>
    %1042 = arith.addf %1040, %1041 : vector<14x128xf32>
    %c0_684 = arith.constant 0 : index
    %1043 = arith.index_cast %c8_i32_680 : i32 to index
    %c0_685 = arith.constant 0 : index
    %c0_686 = arith.constant 0 : index
    %1044 = vector.load %arg5[%c0_684, %1043, %c0_685, %c0_686] : memref<1x14x14x128xf32, #tpu.memory_space<vmem>>, vector<1x1x14x128xf32>
    %1045 = vector.shape_cast %1044 : vector<1x1x14x128xf32> to vector<14x128xf32>
    %1046 = vector.shape_cast %1042 : vector<14x128xf32> to vector<1x1x14x128xf32>
    tpu.vector_store %arg5[%c0_684, %1043, %c0_685, %c0_686], %1046 {strides = array<i32>} : memref<1x14x14x128xf32, #tpu.memory_space<vmem>>, vector<1x1x14x128xf32>,
    %c9_i32_687 = arith.constant 9 : i32
    %c0_688 = arith.constant 0 : index
    %1047 = arith.index_cast %c9_i32_687 : i32 to index
    %c0_689 = arith.constant 0 : index
    %c0_690 = arith.constant 0 : index
    %1048 = vector.load %arg6[%c0_688, %1047, %c0_689, %c0_690] : memref<1x14x14x128xf32, #tpu.memory_space<vmem>>, vector<1x1x14x128xf32>
    %1049 = vector.shape_cast %1048 : vector<1x1x14x128xf32> to vector<14x128xf32>
    %1050 = vector.broadcast %944 : vector<1x128xf32> to vector<14x128xf32>
    %1051 = arith.mulf %1049, %1050 : vector<14x128xf32>
    %1052 = vector.broadcast %947 : vector<1x128xf32> to vector<14x128xf32>
    %1053 = arith.addf %1051, %1052 : vector<14x128xf32>
    %c0_691 = arith.constant 0 : index
    %1054 = arith.index_cast %c9_i32_687 : i32 to index
    %c0_692 = arith.constant 0 : index
    %c0_693 = arith.constant 0 : index
    %1055 = vector.load %arg5[%c0_691, %1054, %c0_692, %c0_693] : memref<1x14x14x128xf32, #tpu.memory_space<vmem>>, vector<1x1x14x128xf32>
    %1056 = vector.shape_cast %1055 : vector<1x1x14x128xf32> to vector<14x128xf32>
    %1057 = vector.shape_cast %1053 : vector<14x128xf32> to vector<1x1x14x128xf32>
    tpu.vector_store %arg5[%c0_691, %1054, %c0_692, %c0_693], %1057 {strides = array<i32>} : memref<1x14x14x128xf32, #tpu.memory_space<vmem>>, vector<1x1x14x128xf32>,
    %c10_i32_694 = arith.constant 10 : i32
    %c0_695 = arith.constant 0 : index
    %1058 = arith.index_cast %c10_i32_694 : i32 to index
    %c0_696 = arith.constant 0 : index
    %c0_697 = arith.constant 0 : index
    %1059 = vector.load %arg6[%c0_695, %1058, %c0_696, %c0_697] : memref<1x14x14x128xf32, #tpu.memory_space<vmem>>, vector<1x1x14x128xf32>
    %1060 = vector.shape_cast %1059 : vector<1x1x14x128xf32> to vector<14x128xf32>
    %1061 = vector.broadcast %944 : vector<1x128xf32> to vector<14x128xf32>
    %1062 = arith.mulf %1060, %1061 : vector<14x128xf32>
    %1063 = vector.broadcast %947 : vector<1x128xf32> to vector<14x128xf32>
    %1064 = arith.addf %1062, %1063 : vector<14x128xf32>
    %c0_698 = arith.constant 0 : index
    %1065 = arith.index_cast %c10_i32_694 : i32 to index
    %c0_699 = arith.constant 0 : index
    %c0_700 = arith.constant 0 : index
    %1066 = vector.load %arg5[%c0_698, %1065, %c0_699, %c0_700] : memref<1x14x14x128xf32, #tpu.memory_space<vmem>>, vector<1x1x14x128xf32>
    %1067 = vector.shape_cast %1066 : vector<1x1x14x128xf32> to vector<14x128xf32>
    %1068 = vector.shape_cast %1064 : vector<14x128xf32> to vector<1x1x14x128xf32>
    tpu.vector_store %arg5[%c0_698, %1065, %c0_699, %c0_700], %1068 {strides = array<i32>} : memref<1x14x14x128xf32, #tpu.memory_space<vmem>>, vector<1x1x14x128xf32>,
    %c11_i32_701 = arith.constant 11 : i32
    %c0_702 = arith.constant 0 : index
    %1069 = arith.index_cast %c11_i32_701 : i32 to index
    %c0_703 = arith.constant 0 : index
    %c0_704 = arith.constant 0 : index
    %1070 = vector.load %arg6[%c0_702, %1069, %c0_703, %c0_704] : memref<1x14x14x128xf32, #tpu.memory_space<vmem>>, vector<1x1x14x128xf32>
    %1071 = vector.shape_cast %1070 : vector<1x1x14x128xf32> to vector<14x128xf32>
    %1072 = vector.broadcast %944 : vector<1x128xf32> to vector<14x128xf32>
    %1073 = arith.mulf %1071, %1072 : vector<14x128xf32>
    %1074 = vector.broadcast %947 : vector<1x128xf32> to vector<14x128xf32>
    %1075 = arith.addf %1073, %1074 : vector<14x128xf32>
    %c0_705 = arith.constant 0 : index
    %1076 = arith.index_cast %c11_i32_701 : i32 to index
    %c0_706 = arith.constant 0 : index
    %c0_707 = arith.constant 0 : index
    %1077 = vector.load %arg5[%c0_705, %1076, %c0_706, %c0_707] : memref<1x14x14x128xf32, #tpu.memory_space<vmem>>, vector<1x1x14x128xf32>
    %1078 = vector.shape_cast %1077 : vector<1x1x14x128xf32> to vector<14x128xf32>
    %1079 = vector.shape_cast %1075 : vector<14x128xf32> to vector<1x1x14x128xf32>
    tpu.vector_store %arg5[%c0_705, %1076, %c0_706, %c0_707], %1079 {strides = array<i32>} : memref<1x14x14x128xf32, #tpu.memory_space<vmem>>, vector<1x1x14x128xf32>,
    %c12_i32_708 = arith.constant 12 : i32
    %c0_709 = arith.constant 0 : index
    %1080 = arith.index_cast %c12_i32_708 : i32 to index
    %c0_710 = arith.constant 0 : index
    %c0_711 = arith.constant 0 : index
    %1081 = vector.load %arg6[%c0_709, %1080, %c0_710, %c0_711] : memref<1x14x14x128xf32, #tpu.memory_space<vmem>>, vector<1x1x14x128xf32>
    %1082 = vector.shape_cast %1081 : vector<1x1x14x128xf32> to vector<14x128xf32>
    %1083 = vector.broadcast %944 : vector<1x128xf32> to vector<14x128xf32>
    %1084 = arith.mulf %1082, %1083 : vector<14x128xf32>
    %1085 = vector.broadcast %947 : vector<1x128xf32> to vector<14x128xf32>
    %1086 = arith.addf %1084, %1085 : vector<14x128xf32>
    %c0_712 = arith.constant 0 : index
    %1087 = arith.index_cast %c12_i32_708 : i32 to index
    %c0_713 = arith.constant 0 : index
    %c0_714 = arith.constant 0 : index
    %1088 = vector.load %arg5[%c0_712, %1087, %c0_713, %c0_714] : memref<1x14x14x128xf32, #tpu.memory_space<vmem>>, vector<1x1x14x128xf32>
    %1089 = vector.shape_cast %1088 : vector<1x1x14x128xf32> to vector<14x128xf32>
    %1090 = vector.shape_cast %1086 : vector<14x128xf32> to vector<1x1x14x128xf32>
    tpu.vector_store %arg5[%c0_712, %1087, %c0_713, %c0_714], %1090 {strides = array<i32>} : memref<1x14x14x128xf32, #tpu.memory_space<vmem>>, vector<1x1x14x128xf32>,
    %c13_i32_715 = arith.constant 13 : i32
    %c0_716 = arith.constant 0 : index
    %1091 = arith.index_cast %c13_i32_715 : i32 to index
    %c0_717 = arith.constant 0 : index
    %c0_718 = arith.constant 0 : index
    %1092 = vector.load %arg6[%c0_716, %1091, %c0_717, %c0_718] : memref<1x14x14x128xf32, #tpu.memory_space<vmem>>, vector<1x1x14x128xf32>
    %1093 = vector.shape_cast %1092 : vector<1x1x14x128xf32> to vector<14x128xf32>
    %1094 = vector.broadcast %944 : vector<1x128xf32> to vector<14x128xf32>
    %1095 = arith.mulf %1093, %1094 : vector<14x128xf32>
    %1096 = vector.broadcast %947 : vector<1x128xf32> to vector<14x128xf32>
    %1097 = arith.addf %1095, %1096 : vector<14x128xf32>
    %c0_719 = arith.constant 0 : index
    %1098 = arith.index_cast %c13_i32_715 : i32 to index
    %c0_720 = arith.constant 0 : index
    %c0_721 = arith.constant 0 : index
    %1099 = vector.load %arg5[%c0_719, %1098, %c0_720, %c0_721] : memref<1x14x14x128xf32, #tpu.memory_space<vmem>>, vector<1x1x14x128xf32>
    %1100 = vector.shape_cast %1099 : vector<1x1x14x128xf32> to vector<14x128xf32>
    %1101 = vector.shape_cast %1097 : vector<14x128xf32> to vector<1x1x14x128xf32>
    tpu.vector_store %arg5[%c0_719, %1098, %c0_720, %c0_721], %1101 {strides = array<i32>} : memref<1x14x14x128xf32, #tpu.memory_space<vmem>>, vector<1x1x14x128xf32>,
    %c14_i32_722 = arith.constant 14 : i32
    return
  }
  func.func @transform_0(%arg0: i32) -> (i32, i32, i32, i32, i32, i32) {
    %c0_i32 = arith.constant 0 : i32
    %c0_i32_0 = arith.constant 0 : i32
    %c0_i32_1 = arith.constant 0 : i32
    %c0_i32_2 = arith.constant 0 : i32
    %c0_i32_3 = arith.constant 0 : i32
    %c0_i32_4 = arith.constant 0 : i32
    return %c0_i32, %c0_i32_0, %c0_i32_1, %c0_i32_2, %c0_i32_3, %arg0 : i32, i32, i32, i32, i32, i32
  }
  func.func @transform_1(%arg0: i32) -> (i32, i32) {
    %c0_i32 = arith.constant 0 : i32
    %c0_i32_0 = arith.constant 0 : i32
    return %c0_i32, %arg0 : i32, i32
  }
  func.func @transform_2(%arg0: i32) -> (i32, i32) {
    %c0_i32 = arith.constant 0 : i32
    %c0_i32_0 = arith.constant 0 : i32
    return %c0_i32, %arg0 : i32, i32
  }
  func.func @transform_3(%arg0: i32) -> (i32, i32) {
    %c0_i32 = arith.constant 0 : i32
    %c0_i32_0 = arith.constant 0 : i32
    return %c0_i32, %arg0 : i32, i32
  }
  func.func @transform_4(%arg0: i32) -> (i32, i32, i32, i32) {
    %c0_i32 = arith.constant 0 : i32
    %c0_i32_0 = arith.constant 0 : i32
    %c0_i32_1 = arith.constant 0 : i32
    %c0_i32_2 = arith.constant 0 : i32
    return %c0_i32, %c0_i32_0, %c0_i32_1, %arg0 : i32, i32, i32, i32
  }
}

</mosaic_0001>

<bundles_post_ra>
// kernel: dwconv3x3s2_bn.1
= control target key start
LH: loop header
LB: loop body
LE: loop exit
PB: predicated region body
PF: predicated region fallthrough
CT: control target
= control target key end

     0   :  { %s2746_s15 = smov 0   ;;  %s2748_s16 = smov 0   ;;  %s4247_s0 = inlined_call_operand.vmem [shape: f32[2,2,1,15,16,256], index: 0, kind: input, shape index: {}]   ;;  %s4248_s1 = inlined_call_operand.vmem [shape: f32[9,256], index: 1, kind: input, shape index: {}]   ;;  %s4249_s2 = inlined_call_operand.vmem [shape: f32[1,256], index: 2, kind: input, shape index: {}]   ;;  %s4250_s3 = inlined_call_operand.vmem [shape: f32[1,256], index: 3, kind: input, shape index: {}]   ;;  %s4251_s4 = inlined_call_operand.vmem [shape: f32[1,14,14,256], index: 4, kind: output, shape index: {}]  }
   0x1   :  { %s2750_s17 = smov 0  }
   0x2 LB: > { %s2762_s18 = sadd.s32 4294967295, %s2719_s17   ;;  %s2765_s19 = sadd.s32 1, %s2719_s17   ;;  %s2719_s17 = sphi %s2750_s17, %s4288_s17   ;;  %s2715_s16 = sphi %s2748_s16, %s4287_s16   ;;  %s2711_s15 = sphi %s2746_s15, %s4286_s15  }
   0x3   : > { %s18_s20 = ssub.s32 %s2719_s17, %s2765_s19  ;;  %s21_s21 = sadd.s32 1, %s2715_s16 }
   0x4   : > { %p19_p0 = scmp.eq.s32.totalorder %s18_s20, 0  ;;  %p28_p1 = scmp.ne.s32.totalorder %s2715_s16, %s2711_s15 }
   0x5   : > { %p29_p2 = scmp.eq.s32.totalorder %s2719_s17, 0  ;;  %p136_p3 = scmp.eq.s32.totalorder %s2762_s18, 1 }
   0x6   : > { %s2775_s22 = scalar_select %p19_p0, %s2715_s16, %s21_s21  }
   0x7   : > { %p2777_p4 = por %p29_p2, %p28_p1  ;;  %p2781_p5 = por %p136_p3, %p28_p1 }
   0x8   : > { %p2464_p6 = scmp.ge.s32.totalorder %s2719_s17, 2 }
   0xa   : > { %158 = sbr.rel (%p2464_p6) target bundleno = 88 (0x58), region = 16 }
  0x11   : > { %161 = sbr.rel (!%p2777_p4) target bundleno = 81 (0x51), region = 20  ;;  %s163_s25 = sand.u32 (%p2777_p4), 1, %s2715_s16  }
  0x12   : > { %s2465_s26 = sshll.u32 (%p2777_p4), %s2719_s17, 3  ;;  %s2666_s27 = smul.u32 (%p2777_p4), 960, %s163_s25 }
  0x13   : > { %s2793_s30 = scalar_lea.vmem (%p2777_p4), %s4247_s0, %s2465_s26 }
  0x14   : > { %v433_v0 = vld [vmem:[%s2793_s30] sm:$0xff] (%p2777_p4)  ;;  %v435_v1 = vld [vmem:[%s2793_s30 + $0x10] sm:$0xff] (%p2777_p4)  ;;  %s2801_s5 = scalar_lea.vmem (%p2777_p4), [#allocation3], %s2666_s27 }
  0x15   : > { %v437_v2 = vld [vmem:[%s2793_s30 + $0x20] sm:$0xff] (%p2777_p4)  ;;  %v439_v3 = vld [vmem:[%s2793_s30 + $0x30] sm:$0xff] (%p2777_p4)  ;;  %434 = vst [vmem:[%s2801_s5] sm:$0xff] (%p2777_p4), %v433_v0  ;;  %436 = vst [vmem:[%s2801_s5 + $0x8] sm:$0xff] (%p2777_p4), %v435_v1 }
  0x16   : > { %v441_v4 = vld [vmem:[%s2793_s30 + $0x40] sm:$0xff] (%p2777_p4)  ;;  %v443_v5 = vld [vmem:[%s2793_s30 + $0x50] sm:$0xff] (%p2777_p4)  ;;  %438 = vst [vmem:[%s2801_s5 + $0x10] sm:$0xff] (%p2777_p4), %v437_v2  ;;  %440 = vst [vmem:[%s2801_s5 + $0x18] sm:$0xff] (%p2777_p4), %v439_v3 }
  0x17   : > { %442 = vst [vmem:[%s2801_s5 + $0x20] sm:$0xff] (%p2777_p4), %v441_v4  ;;  %444 = vst [vmem:[%s2801_s5 + $0x28] sm:$0xff] (%p2777_p4), %v443_v5  ;;  %v445_v6 = vld [vmem:[%s2793_s30 + $0x60] sm:$0xff] (%p2777_p4)  ;;  %v447_v7 = vld [vmem:[%s2793_s30 + $0x70] sm:$0xff] (%p2777_p4) }
  0x18   : > { %v449_v8 = vld [vmem:[%s2793_s30 + $0x80] sm:$0xff]  ;;  %446 = vst [vmem:[%s2801_s5 + $0x30] sm:$0xff] %v445_v6  ;;  %448 = vst [vmem:[%s2801_s5 + $0x38] sm:$0xff] %v447_v7  ;;  %v451_v9 = vld [vmem:[%s2793_s30 + $0x90] sm:$0xff] }
  0x19   : > { %450 = vst [vmem:[%s2801_s5 + $0x40] sm:$0xff] %v449_v8  ;;  %v453_v10 = vld [vmem:[%s2793_s30 + $0xa0] sm:$0xff]  ;;  %v455_v11 = vld [vmem:[%s2793_s30 + $0xb0] sm:$0xff]  ;;  %452 = vst [vmem:[%s2801_s5 + $0x48] sm:$0xff] %v451_v9 }
  0x1a   : > { %454 = vst [vmem:[%s2801_s5 + $0x50] sm:$0xff] %v453_v10  ;;  %456 = vst [vmem:[%s2801_s5 + $0x58] sm:$0xff] %v455_v11  ;;  %v457_v12 = vld [vmem:[%s2793_s30 + $0xc0] sm:$0xff]  ;;  %v459_v13 = vld [vmem:[%s2793_s30 + $0xd0] sm:$0xff] }
  0x1b   : > { %v461_v14 = vld [vmem:[%s2793_s30 + $0xe0] sm:$0xff]  ;;  %458 = vst [vmem:[%s2801_s5 + $0x60] sm:$0xff] %v457_v12  ;;  %460 = vst [vmem:[%s2801_s5 + $0x68] sm:$0xff] %v459_v13  ;;  %v463_v15 = vld [vmem:[%s2793_s30 + $0xf0] sm:$0xff] }
  0x1c   : > { %462 = vst [vmem:[%s2801_s5 + $0x70] sm:$0xff] %v461_v14  ;;  %v465_v16 = vld [vmem:[%s2793_s30 + $0x100] sm:$0xff]  ;;  %v467_v17 = vld [vmem:[%s2793_s30 + $0x110] sm:$0xff]  ;;  %464 = vst [vmem:[%s2801_s5 + $0x78] sm:$0xff] %v463_v15 }
  0x1d   : > { %466 = vst [vmem:[%s2801_s5 + $0x80] sm:$0xff] %v465_v16  ;;  %468 = vst [vmem:[%s2801_s5 + $0x88] sm:$0xff] %v467_v17  ;;  %v469_v18 = vld [vmem:[%s2793_s30 + $0x120] sm:$0xff]  ;;  %v471_v19 = vld [vmem:[%s2793_s30 + $0x130] sm:$0xff] }
  0x1e   : > { %v473_v20 = vld [vmem:[%s2793_s30 + $0x140] sm:$0xff]  ;;  %470 = vst [vmem:[%s2801_s5 + $0x90] sm:$0xff] %v469_v18  ;;  %472 = vst [vmem:[%s2801_s5 + $0x98] sm:$0xff] %v471_v19  ;;  %v475_v21 = vld [vmem:[%s2793_s30 + $0x150] sm:$0xff] }
  0x1f   : > { %474 = vst [vmem:[%s2801_s5 + $0xa0] sm:$0xff] %v473_v20  ;;  %v477_v22 = vld [vmem:[%s2793_s30 + $0x160] sm:$0xff]  ;;  %v479_v23 = vld [vmem:[%s2793_s30 + $0x170] sm:$0xff]  ;;  %476 = vst [vmem:[%s2801_s5 + $0xa8] sm:$0xff] %v475_v21 }
  0x20   : > { %478 = vst [vmem:[%s2801_s5 + $0xb0] sm:$0xff] %v477_v22  ;;  %480 = vst [vmem:[%s2801_s5 + $0xb8] sm:$0xff] %v479_v23  ;;  %v481_v24 = vld [vmem:[%s2793_s30 + $0x180] sm:$0xff]  ;;  %v483_v25 = vld [vmem:[%s2793_s30 + $0x190] sm:$0xff] }
  0x21   : > { %v485_v26 = vld [vmem:[%s2793_s30 + $0x1a0] sm:$0xff]  ;;  %482 = vst [vmem:[%s2801_s5 + $0xc0] sm:$0xff] %v481_v24  ;;  %484 = vst [vmem:[%s2801_s5 + $0xc8] sm:$0xff] %v483_v25  ;;  %v487_v27 = vld [vmem:[%s2793_s30 + $0x1b0] sm:$0xff] }
  0x22   : > { %486 = vst [vmem:[%s2801_s5 + $0xd0] sm:$0xff] %v485_v26  ;;  %v489_v28 = vld [vmem:[%s2793_s30 + $0x1c0] sm:$0xff]  ;;  %v491_v29 = vld [vmem:[%s2793_s30 + $0x1d0] sm:$0xff]  ;;  %488 = vst [vmem:[%s2801_s5 + $0xd8] sm:$0xff] %v487_v27 }
  0x23   : > { %490 = vst [vmem:[%s2801_s5 + $0xe0] sm:$0xff] %v489_v28  ;;  %492 = vst [vmem:[%s2801_s5 + $0xe8] sm:$0xff] %v491_v29  ;;  %v493_v30 = vld [vmem:[%s2793_s30 + $0x1e0] sm:$0xff]  ;;  %v495_v31 = vld [vmem:[%s2793_s30 + $0x1f0] sm:$0xff] }
  0x24   : > { %v497_v32 = vld [vmem:[%s2793_s30 + $0x200] sm:$0xff]  ;;  %494 = vst [vmem:[%s2801_s5 + $0xf0] sm:$0xff] %v493_v30  ;;  %496 = vst [vmem:[%s2801_s5 + $0xf8] sm:$0xff] %v495_v31  ;;  %v499_v33 = vld [vmem:[%s2793_s30 + $0x210] sm:$0xff] }
  0x25   : > { %498 = vst [vmem:[%s2801_s5 + $0x100] sm:$0xff] %v497_v32  ;;  %v501_v34 = vld [vmem:[%s2793_s30 + $0x220] sm:$0xff]  ;;  %v503_v35 = vld [vmem:[%s2793_s30 + $0x230] sm:$0xff]  ;;  %500 = vst [vmem:[%s2801_s5 + $0x108] sm:$0xff] %v499_v33 }
  0x26   : > { %502 = vst [vmem:[%s2801_s5 + $0x110] sm:$0xff] %v501_v34  ;;  %504 = vst [vmem:[%s2801_s5 + $0x118] sm:$0xff] %v503_v35  ;;  %v505_v36 = vld [vmem:[%s2793_s30 + $0x240] sm:$0xff]  ;;  %v507_v37 = vld [vmem:[%s2793_s30 + $0x250] sm:$0xff] }
  0x27   : > { %v509_v38 = vld [vmem:[%s2793_s30 + $0x260] sm:$0xff]  ;;  %506 = vst [vmem:[%s2801_s5 + $0x120] sm:$0xff] %v505_v36  ;;  %508 = vst [vmem:[%s2801_s5 + $0x128] sm:$0xff] %v507_v37  ;;  %v511_v39 = vld [vmem:[%s2793_s30 + $0x270] sm:$0xff] }
  0x28   : > { %510 = vst [vmem:[%s2801_s5 + $0x130] sm:$0xff] %v509_v38  ;;  %v513_v40 = vld [vmem:[%s2793_s30 + $0x280] sm:$0xff]  ;;  %v515_v41 = vld [vmem:[%s2793_s30 + $0x290] sm:$0xff]  ;;  %512 = vst [vmem:[%s2801_s5 + $0x138] sm:$0xff] %v511_v39 }
  0x29   : > { %514 = vst [vmem:[%s2801_s5 + $0x140] sm:$0xff] %v513_v40  ;;  %516 = vst [vmem:[%s2801_s5 + $0x148] sm:$0xff] %v515_v41  ;;  %v517_v42 = vld [vmem:[%s2793_s30 + $0x2a0] sm:$0xff]  ;;  %v519_v43 = vld [vmem:[%s2793_s30 + $0x2b0] sm:$0xff] }
  0x2a   : > { %v521_v44 = vld [vmem:[%s2793_s30 + $0x2c0] sm:$0xff]  ;;  %518 = vst [vmem:[%s2801_s5 + $0x150] sm:$0xff] %v517_v42  ;;  %520 = vst [vmem:[%s2801_s5 + $0x158] sm:$0xff] %v519_v43  ;;  %v523_v45 = vld [vmem:[%s2793_s30 + $0x2d0] sm:$0xff] }
  0x2b   : > { %522 = vst [vmem:[%s2801_s5 + $0x160] sm:$0xff] %v521_v44  ;;  %v525_v46 = vld [vmem:[%s2793_s30 + $0x2e0] sm:$0xff]  ;;  %v527_v47 = vld [vmem:[%s2793_s30 + $0x2f0] sm:$0xff]  ;;  %524 = vst [vmem:[%s2801_s5 + $0x168] sm:$0xff] %v523_v45 }
  0x2c   : > { %526 = vst [vmem:[%s2801_s5 + $0x170] sm:$0xff] %v525_v46  ;;  %528 = vst [vmem:[%s2801_s5 + $0x178] sm:$0xff] %v527_v47  ;;  %v529_v48 = vld [vmem:[%s2793_s30 + $0x300] sm:$0xff]  ;;  %v531_v49 = vld [vmem:[%s2793_s30 + $0x310] sm:$0xff] }
  0x2d   : > { %v533_v50 = vld [vmem:[%s2793_s30 + $0x320] sm:$0xff]  ;;  %530 = vst [vmem:[%s2801_s5 + $0x180] sm:$0xff] %v529_v48  ;;  %532 = vst [vmem:[%s2801_s5 + $0x188] sm:$0xff] %v531_v49  ;;  %v535_v51 = vld [vmem:[%s2793_s30 + $0x330] sm:$0xff] }
  0x2e   : > { %534 = vst [vmem:[%s2801_s5 + $0x190] sm:$0xff] %v533_v50  ;;  %v537_v52 = vld [vmem:[%s2793_s30 + $0x340] sm:$0xff]  ;;  %v539_v53 = vld [vmem:[%s2793_s30 + $0x350] sm:$0xff]  ;;  %536 = vst [vmem:[%s2801_s5 + $0x198] sm:$0xff] %v535_v51 }
  0x2f   : > { %538 = vst [vmem:[%s2801_s5 + $0x1a0] sm:$0xff] %v537_v52  ;;  %540 = vst [vmem:[%s2801_s5 + $0x1a8] sm:$0xff] %v539_v53  ;;  %v541_v54 = vld [vmem:[%s2793_s30 + $0x360] sm:$0xff]  ;;  %v543_v55 = vld [vmem:[%s2793_s30 + $0x370] sm:$0xff] }
  0x30   : > { %v545_v56 = vld [vmem:[%s2793_s30 + $0x380] sm:$0xff]  ;;  %542 = vst [vmem:[%s2801_s5 + $0x1b0] sm:$0xff] %v541_v54  ;;  %544 = vst [vmem:[%s2801_s5 + $0x1b8] sm:$0xff] %v543_v55  ;;  %v547_v57 = vld [vmem:[%s2793_s30 + $0x390] sm:$0xff] }
  0x31   : > { %546 = vst [vmem:[%s2801_s5 + $0x1c0] sm:$0xff] %v545_v56  ;;  %v549_v58 = vld [vmem:[%s2793_s30 + $0x3a0] sm:$0xff]  ;;  %v551_v59 = vld [vmem:[%s2793_s30 + $0x3b0] sm:$0xff]  ;;  %548 = vst [vmem:[%s2801_s5 + $0x1c8] sm:$0xff] %v547_v57 }
  0x32   : > { %550 = vst [vmem:[%s2801_s5 + $0x1d0] sm:$0xff] %v549_v58  ;;  %552 = vst [vmem:[%s2801_s5 + $0x1d8] sm:$0xff] %v551_v59  ;;  %v553_v60 = vld [vmem:[%s2793_s30 + $0x3c0] sm:$0xff]  ;;  %v555_v61 = vld [vmem:[%s2793_s30 + $0x3d0] sm:$0xff] }
  0x33   : > { %v557_v62 = vld [vmem:[%s2793_s30 + $0x3e0] sm:$0xff]  ;;  %554 = vst [vmem:[%s2801_s5 + $0x1e0] sm:$0xff] %v553_v60  ;;  %556 = vst [vmem:[%s2801_s5 + $0x1e8] sm:$0xff] %v555_v61  ;;  %v559_v63 = vld [vmem:[%s2793_s30 + $0x3f0] sm:$0xff] }
  0x34   : > { %558 = vst [vmem:[%s2801_s5 + $0x1f0] sm:$0xff] %v557_v62  ;;  %v561_v0 = vld [vmem:[%s2793_s30 + $0x400] sm:$0xff]  ;;  %v563_v1 = vld [vmem:[%s2793_s30 + $0x410] sm:$0xff]  ;;  %560 = vst [vmem:[%s2801_s5 + $0x1f8] sm:$0xff] %v559_v63 }
  0x35   : > { %562 = vst [vmem:[%s2801_s5 + $0x200] sm:$0xff] %v561_v0  ;;  %564 = vst [vmem:[%s2801_s5 + $0x208] sm:$0xff] %v563_v1  ;;  %v565_v2 = vld [vmem:[%s2793_s30 + $0x420] sm:$0xff]  ;;  %v567_v3 = vld [vmem:[%s2793_s30 + $0x430] sm:$0xff] }
  0x36   : > { %v569_v4 = vld [vmem:[%s2793_s30 + $0x440] sm:$0xff]  ;;  %566 = vst [vmem:[%s2801_s5 + $0x210] sm:$0xff] %v565_v2  ;;  %568 = vst [vmem:[%s2801_s5 + $0x218] sm:$0xff] %v567_v3  ;;  %v571_v5 = vld [vmem:[%s2793_s30 + $0x450] sm:$0xff] }
  0x37   : > { %570 = vst [vmem:[%s2801_s5 + $0x220] sm:$0xff] %v569_v4  ;;  %v573_v6 = vld [vmem:[%s2793_s30 + $0x460] sm:$0xff]  ;;  %v575_v7 = vld [vmem:[%s2793_s30 + $0x470] sm:$0xff]  ;;  %572 = vst [vmem:[%s2801_s5 + $0x228] sm:$0xff] %v571_v5 }
  0x38   : > { %574 = vst [vmem:[%s2801_s5 + $0x230] sm:$0xff] %v573_v6  ;;  %576 = vst [vmem:[%s2801_s5 + $0x238] sm:$0xff] %v575_v7  ;;  %v577_v8 = vld [vmem:[%s2793_s30 + $0x480] sm:$0xff]  ;;  %v579_v9 = vld [vmem:[%s2793_s30 + $0x490] sm:$0xff] }
  0x39   : > { %v581_v10 = vld [vmem:[%s2793_s30 + $0x4a0] sm:$0xff]  ;;  %578 = vst [vmem:[%s2801_s5 + $0x240] sm:$0xff] %v577_v8  ;;  %580 = vst [vmem:[%s2801_s5 + $0x248] sm:$0xff] %v579_v9  ;;  %v583_v11 = vld [vmem:[%s2793_s30 + $0x4b0] sm:$0xff] }
  0x3a   : > { %582 = vst [vmem:[%s2801_s5 + $0x250] sm:$0xff] %v581_v10  ;;  %v585_v12 = vld [vmem:[%s2793_s30 + $0x4c0] sm:$0xff]  ;;  %v587_v13 = vld [vmem:[%s2793_s30 + $0x4d0] sm:$0xff]  ;;  %584 = vst [vmem:[%s2801_s5 + $0x258] sm:$0xff] %v583_v11 }
  0x3b   : > { %586 = vst [vmem:[%s2801_s5 + $0x260] sm:$0xff] %v585_v12  ;;  %588 = vst [vmem:[%s2801_s5 + $0x268] sm:$0xff] %v587_v13  ;;  %v589_v14 = vld [vmem:[%s2793_s30 + $0x4e0] sm:$0xff]  ;;  %v591_v15 = vld [vmem:[%s2793_s30 + $0x4f0] sm:$0xff] }
  0x3c   : > { %v593_v16 = vld [vmem:[%s2793_s30 + $0x500] sm:$0xff]  ;;  %590 = vst [vmem:[%s2801_s5 + $0x270] sm:$0xff] %v589_v14  ;;  %592 = vst [vmem:[%s2801_s5 + $0x278] sm:$0xff] %v591_v15  ;;  %v595_v17 = vld [vmem:[%s2793_s30 + $0x510] sm:$0xff] }
  0x3d   : > { %594 = vst [vmem:[%s2801_s5 + $0x280] sm:$0xff] %v593_v16  ;;  %v597_v18 = vld [vmem:[%s2793_s30 + $0x520] sm:$0xff]  ;;  %v599_v19 = vld [vmem:[%s2793_s30 + $0x530] sm:$0xff]  ;;  %596 = vst [vmem:[%s2801_s5 + $0x288] sm:$0xff] %v595_v17 }
  0x3e   : > { %598 = vst [vmem:[%s2801_s5 + $0x290] sm:$0xff] %v597_v18  ;;  %600 = vst [vmem:[%s2801_s5 + $0x298] sm:$0xff] %v599_v19  ;;  %v601_v20 = vld [vmem:[%s2793_s30 + $0x540] sm:$0xff]  ;;  %v603_v21 = vld [vmem:[%s2793_s30 + $0x550] sm:$0xff] }
  0x3f   : > { %v605_v22 = vld [vmem:[%s2793_s30 + $0x560] sm:$0xff]  ;;  %602 = vst [vmem:[%s2801_s5 + $0x2a0] sm:$0xff] %v601_v20  ;;  %604 = vst [vmem:[%s2801_s5 + $0x2a8] sm:$0xff] %v603_v21  ;;  %v607_v23 = vld [vmem:[%s2793_s30 + $0x570] sm:$0xff] }
  0x40   : > { %606 = vst [vmem:[%s2801_s5 + $0x2b0] sm:$0xff] %v605_v22  ;;  %v609_v24 = vld [vmem:[%s2793_s30 + $0x580] sm:$0xff]  ;;  %v611_v25 = vld [vmem:[%s2793_s30 + $0x590] sm:$0xff]  ;;  %608 = vst [vmem:[%s2801_s5 + $0x2b8] sm:$0xff] %v607_v23 }
  0x41   : > { %610 = vst [vmem:[%s2801_s5 + $0x2c0] sm:$0xff] %v609_v24  ;;  %612 = vst [vmem:[%s2801_s5 + $0x2c8] sm:$0xff] %v611_v25  ;;  %v613_v26 = vld [vmem:[%s2793_s30 + $0x5a0] sm:$0xff]  ;;  %v615_v27 = vld [vmem:[%s2793_s30 + $0x5b0] sm:$0xff] }
  0x42   : > { %v617_v28 = vld [vmem:[%s2793_s30 + $0x5c0] sm:$0xff]  ;;  %614 = vst [vmem:[%s2801_s5 + $0x2d0] sm:$0xff] %v613_v26  ;;  %616 = vst [vmem:[%s2801_s5 + $0x2d8] sm:$0xff] %v615_v27  ;;  %v619_v29 = vld [vmem:[%s2793_s30 + $0x5d0] sm:$0xff] }
  0x43   : > { %618 = vst [vmem:[%s2801_s5 + $0x2e0] sm:$0xff] %v617_v28  ;;  %v621_v30 = vld [vmem:[%s2793_s30 + $0x5e0] sm:$0xff]  ;;  %v623_v31 = vld [vmem:[%s2793_s30 + $0x5f0] sm:$0xff]  ;;  %620 = vst [vmem:[%s2801_s5 + $0x2e8] sm:$0xff] %v619_v29 }
  0x44   : > { %622 = vst [vmem:[%s2801_s5 + $0x2f0] sm:$0xff] %v621_v30  ;;  %624 = vst [vmem:[%s2801_s5 + $0x2f8] sm:$0xff] %v623_v31  ;;  %v625_v32 = vld [vmem:[%s2793_s30 + $0x600] sm:$0xff]  ;;  %v627_v33 = vld [vmem:[%s2793_s30 + $0x610] sm:$0xff] }
  0x45   : > { %v629_v34 = vld [vmem:[%s2793_s30 + $0x620] sm:$0xff]  ;;  %626 = vst [vmem:[%s2801_s5 + $0x300] sm:$0xff] %v625_v32  ;;  %628 = vst [vmem:[%s2801_s5 + $0x308] sm:$0xff] %v627_v33  ;;  %v631_v35 = vld [vmem:[%s2793_s30 + $0x630] sm:$0xff] }
  0x46   : > { %630 = vst [vmem:[%s2801_s5 + $0x310] sm:$0xff] %v629_v34  ;;  %v633_v36 = vld [vmem:[%s2793_s30 + $0x640] sm:$0xff]  ;;  %v635_v37 = vld [vmem:[%s2793_s30 + $0x650] sm:$0xff]  ;;  %632 = vst [vmem:[%s2801_s5 + $0x318] sm:$0xff] %v631_v35 }
  0x47   : > { %634 = vst [vmem:[%s2801_s5 + $0x320] sm:$0xff] %v633_v36  ;;  %636 = vst [vmem:[%s2801_s5 + $0x328] sm:$0xff] %v635_v37  ;;  %v637_v38 = vld [vmem:[%s2793_s30 + $0x660] sm:$0xff]  ;;  %v639_v39 = vld [vmem:[%s2793_s30 + $0x670] sm:$0xff] }
  0x48   : > { %v641_v40 = vld [vmem:[%s2793_s30 + $0x680] sm:$0xff]  ;;  %638 = vst [vmem:[%s2801_s5 + $0x330] sm:$0xff] %v637_v38  ;;  %640 = vst [vmem:[%s2801_s5 + $0x338] sm:$0xff] %v639_v39  ;;  %v643_v41 = vld [vmem:[%s2793_s30 + $0x690] sm:$0xff] }
  0x49   : > { %642 = vst [vmem:[%s2801_s5 + $0x340] sm:$0xff] %v641_v40  ;;  %v645_v42 = vld [vmem:[%s2793_s30 + $0x6a0] sm:$0xff]  ;;  %v647_v43 = vld [vmem:[%s2793_s30 + $0x6b0] sm:$0xff]  ;;  %644 = vst [vmem:[%s2801_s5 + $0x348] sm:$0xff] %v643_v41 }
  0x4a   : > { %646 = vst [vmem:[%s2801_s5 + $0x350] sm:$0xff] %v645_v42  ;;  %648 = vst [vmem:[%s2801_s5 + $0x358] sm:$0xff] %v647_v43  ;;  %v649_v44 = vld [vmem:[%s2793_s30 + $0x6c0] sm:$0xff]  ;;  %v651_v45 = vld [vmem:[%s2793_s30 + $0x6d0] sm:$0xff] }
  0x4b   : > { %v653_v46 = vld [vmem:[%s2793_s30 + $0x6e0] sm:$0xff]  ;;  %650 = vst [vmem:[%s2801_s5 + $0x360] sm:$0xff] %v649_v44  ;;  %652 = vst [vmem:[%s2801_s5 + $0x368] sm:$0xff] %v651_v45  ;;  %v655_v47 = vld [vmem:[%s2793_s30 + $0x6f0] sm:$0xff] }
  0x4c   : > { %654 = vst [vmem:[%s2801_s5 + $0x370] sm:$0xff] %v653_v46  ;;  %v657_v48 = vld [vmem:[%s2793_s30 + $0x700] sm:$0xff]  ;;  %v659_v49 = vld [vmem:[%s2793_s30 + $0x710] sm:$0xff]  ;;  %656 = vst [vmem:[%s2801_s5 + $0x378] sm:$0xff] %v655_v47 }
  0x4d   : > { %658 = vst [vmem:[%s2801_s5 + $0x380] sm:$0xff] %v657_v48  ;;  %660 = vst [vmem:[%s2801_s5 + $0x388] sm:$0xff] %v659_v49  ;;  %v661_v50 = vld [vmem:[%s2793_s30 + $0x720] sm:$0xff]  ;;  %v663_v51 = vld [vmem:[%s2793_s30 + $0x730] sm:$0xff] }
  0x4e   : > { %v665_v52 = vld [vmem:[%s2793_s30 + $0x740] sm:$0xff]  ;;  %662 = vst [vmem:[%s2801_s5 + $0x390] sm:$0xff] %v661_v50  ;;  %664 = vst [vmem:[%s2801_s5 + $0x398] sm:$0xff] %v663_v51  ;;  %v667_v53 = vld [vmem:[%s2793_s30 + $0x750] sm:$0xff] }
  0x4f   : > { %666 = vst [vmem:[%s2801_s5 + $0x3a0] sm:$0xff] %v665_v52  ;;  %v669_v54 = vld [vmem:[%s2793_s30 + $0x760] sm:$0xff]  ;;  %v671_v55 = vld [vmem:[%s2793_s30 + $0x770] sm:$0xff]  ;;  %668 = vst [vmem:[%s2801_s5 + $0x3a8] sm:$0xff] %v667_v53 }
  0x50   : > { %670 = vst [vmem:[%s2801_s5 + $0x3b0] sm:$0xff] %v669_v54  ;;  %672 = vst [vmem:[%s2801_s5 + $0x3b8] sm:$0xff] %v671_v55 }
  0x51 PF: > { %678 = sbr.rel (!%p2777_p4) target bundleno = 88 (0x58), region = 58  ;;  %s680_s6 = sand.u32 (%p2777_p4), 1, %s2715_s16  }
  0x52   : > { %s2467_s7 = sshll.u32 (%p2777_p4), %s2719_s17, 3  ;;  %s2466_s8 = sshll.u32 (%p2777_p4), %s680_s6, 4 }
  0x53   : > { %s684_s11 = scalar_lea.vmem (%p2777_p4), %s4248_s1, %s2467_s7  ;;  %s682_s12 = scalar_lea.vmem (%p2777_p4), [#allocation4], %s2466_s8 }
  0x54   : > { %v714_v56 = vld [vmem:[%s684_s11] sm:$0xff] (%p2777_p4)  ;;  %v716_v57 = vld [vmem:[%s684_s11 + $0x10] sm:$0xff] (%p2777_p4) }
  0x55   : > { %715 = vst [vmem:[%s682_s12] sm:$0xff] (%p2777_p4), %v714_v56  ;;  %717 = vst [vmem:[%s682_s12 + $0x8] sm:$0xff] (%p2777_p4), %v716_v57 }
  0x58 PF: > { %p2468_p7 = scmp.ge.s32.totalorder %s2719_s17, 1  ;;  %p734_p8 = scmp.lt.s32.totalorder %s2719_s17, 3 }
  0x5a   : > { %p735_p9 = pnand %p2468_p7, %p734_p8 }
  0x5b   : > { %s3047_s13 = sand.u32 (!%p735_p9), 1, %s2711_s15   ;;  %v809_v58 = vlaneseq (!%p735_p9)  ;;  %vm894_vm1 = vcmask (!%p735_p9), 1045504   ;;  %p782_p10 = scmp.lt.s32.totalorder (!%p735_p9), %s2762_s18, 1 }
  0x5c   : > { %738 = sbr.rel (%p735_p9) target bundleno = 413 (0x19d), region = 104  ;;  %s2469_s20 = sshll.u32 (!%p735_p9), %s3047_s13, 4 }
  0x5d   : > { %s2667_s14 = smul.u32 (!%p735_p9), 960, %s3047_s13  ;;  %v3051_v59 = vshrl.u32 (!%p735_p9), %v809_v58, 7  ;;  %s3053_s21 = scalar_lea.vmem (!%p735_p9), [#allocation4], %s2469_s20 }
  0x5e   : > { %v788_v60 = vld [vmem:[%s3053_s21] sm:$0xff] (!%p735_p9)  ;;  %v3151_v42 = vld [vmem:[%s3053_s21 + $0x8] ss:$0 sm:$0xff] (!%p735_p9)  ;;  %s2668_s30 = smul.u32 (!%p735_p9), 224, %s3047_s13 }
  0x5f   : > { %s3056_s23 = scalar_lea.vmem (!%p735_p9), [#allocation3], %s2667_s14  ;;  %vm811_vm0 = vcmp.lt.s32.totalorder (!%p735_p9), %v3051_v59, 7  ;;  %v3066_v63 = vsub.s32 (!%p735_p9), 0, %v3051_v59  ;;  %v830_v0 = vsub.s32 (!%p735_p9), 1, %v3051_v59  ;;  %v838_v6 = vsub.s32 (!%p735_p9), 2, %v3051_v59 }
  0x60   : > { %v3059_v61 = vld [vmem:[%s3056_s23] sm:$0xff] (!%p735_p9)  ;;  %v3062_v62 = vld [vmem:[%s3056_s23 + $0x8] sm:$0xff] (!%p735_p9)  ;;  %v2471_v1 = vld [vmem:[%s3056_s23 + $0xf8] sm:$0xff] (!%p735_p9)  ;;  %v846_v19 = vsub.s32 (!%p735_p9), 3, %v3051_v59  ;;  %v854_v23 = vsub.s32 (!%p735_p9), 4, %v3051_v59  ;;  %v862_v24 = vsub.s32 (!%p735_p9), 5, %v3051_v59 }
  0x61   : > { %v3071_v2 = vld [vmem:[%s3056_s23 + $0x1e0] sm:$0xff] (!%p735_p9)  ;;  %v3074_v3 = vld [vmem:[%s3056_s23 + $0x1e8] sm:$0xff] (!%p735_p9)  ;;  %v807_v4 = vrot.slane (!%p735_p9), %v3059_v61, 1  ;;  %v808_v5 = vrot.slane (!%p735_p9), %v3062_v62, 1  ;;  %v3080_v7 = vld [vmem:[%s3056_s23 + $0x10] sm:$0xff] (!%p735_p9)  ;;  %v3088_v11 = vrot.slane (!%p735_p9), %v788_v60, %v3066_v63  ;;  %v3090_v12 = vrot.slane (!%p735_p9), %v788_v60, %v830_v0  ;;  %s4105_s5 = scalar_lea.vmem (!%p735_p9), [#allocation5], %s2668_s30 }
  0x62   : > { %v3083_v8 = vld [vmem:[%s3056_s23 + $0x18] sm:$0xff] (!%p735_p9)  ;;  %v4264_v9 = vrot.slane (!%p735_p9), %v3071_v2, 1  ;;  %v815_v10 = vrot.slane (!%p735_p9), %v3074_v3, 1  ;;  %v4262_v14 = vrot.slane (!%p735_p9), %v3080_v7, 1  ;;  %v3100_v16 = vrot.slane (!%p735_p9), %v788_v60, %v838_v6  ;;  %v3107_v20 = vld [vmem:[%s3056_s23 + $0x1f0] sm:$0xff] (!%p735_p9)  ;;  %v3127_v31 = vld [vmem:[%s3056_s23 + $0x20] sm:$0xff] (!%p735_p9) }
  0x63   : > { %v813_v13 = vsel %vm811_vm0, %v808_v5, %v807_v4  ;;  %v4263_v15 = vrot.slane %v3083_v8, 1  ;;  %v827_v17 = vmul.f32 %v3088_v11, %v3062_v62  ;;  %v833_v18 = vmul.f32 %v2471_v1, %v3090_v12  ;;  %v2475_v25 = vld [vmem:[%s3056_s23 + $0x2d8] sm:$0xff]  ;;  %v3140_v35 = vld [vmem:[%s3056_s23 + $0x28] sm:$0xff]  ;;  %v3170_v54 = vld [vmem:[%s3056_s23 + $0x200] sm:$0xff]  ;;  %s783_s15 = scalar_select %p782_p10, %s2762_s18, 1 }
  0x64   : > { %v817_v21 = vsel %vm811_vm0, %v815_v10, %v4264_v9  ;;  %v841_v22 = vmul.f32 %v3100_v16, %v813_v13  ;;  %v3119_v27 = vrot.slane %v788_v60, %v846_v19  ;;  %v870_v28 = vsub.s32 6, %v3051_v59  ;;  %v3124_v30 = vld [vmem:[%s3056_s23 + $0x1f8] sm:$0xff]  ;;  %v2479_v37 = vld [vmem:[%s3056_s23 + $0x108] sm:$0xff]  ;;  %v3180_v0 = vld [vmem:[%s3056_s23 + $0x30] sm:$0xff]  ;;  %s2663_s6 = sshll.u32 (%p2781_p5), %s2762_s18, 3 }
  0x65   : > { %v835_v26 = vadd.f32 %v833_v18, %v827_v17  ;;  %v878_v29 = vsub.s32 7, %v3051_v59  ;;  %v821_v32 = vsel %vm811_vm0, %v4263_v15, %v4262_v14  ;;  %v3135_v33 = vrot.slane %v788_v60, %v854_v23  ;;  %v2488_v48 = vld [vmem:[%s3056_s23 + $0x2e8] sm:$0xff]  ;;  %v3183_v1 = vld [vmem:[%s3056_s23 + $0x38] sm:$0xff]  ;;  %s784_s26 = scalar_lea.vmem %s4249_s2, %s783_s15  ;;  %s787_s29 = scalar_lea.vmem %s4250_s3, %s783_s15 }
  0x66   : > { %v3137_v34 = vrot.slane %v788_v60, %v862_v24  ;;  %v4258_v36 = vrot.slane %v3107_v20, 1  ;;  %v849_v39 = vmul.f32 %v3074_v3, %v3119_v27  ;;  %v3146_v40 = vrot.slane %v788_v60, %v870_v28  ;;  %v3173_v55 = vld [vmem:[%s3056_s23 + $0x208] sm:$0xff]  ;;  %v2492_v6 = vld [vmem:[%s3056_s23 + $0x118] sm:$0xff]  ;;  %s4182_s9 = scalar_lea.vmem (%p2781_p5), %s4251_s4, %s2663_s6 }
  0x67   : > { %v843_v38 = vadd.f32 %v841_v22, %v835_v26  ;;  %v3148_v41 = vrot.slane %v788_v60, %v878_v29  ;;  %v857_v43 = vmul.f32 %v2475_v25, %v3135_v33  ;;  %v4259_v44 = vrot.slane %v3124_v30, 1 }
  0x68   : > { %v4254_v45 = vrot.slane %v3127_v31, 1  ;;  %v865_v47 = vmul.f32 %v3137_v34, %v817_v21  ;;  %v4257_v49 = vrot.slane %v3140_v35, 1  ;;  %v933_v51 = vmul.f32 %v3083_v8, %v3088_v11 }
  0x69   : > { %v851_v46 = vadd.f32 %v849_v39, %v843_v38  ;;  %v927_v50 = vsel %vm811_vm0, %v4259_v44, %v4258_v36  ;;  %v935_v52 = vmul.f32 %v2479_v37, %v3090_v12  ;;  %v939_v53 = vmul.f32 %v3100_v16, %v821_v32 }
  0x6a   : > { %v873_v57 = vmul.f32 %v3083_v8, %v3146_v40  ;;  %v881_v58 = vmul.f32 %v2479_v37, %v3148_v41  ;;  %v889_v60 = vmul.f32 %v3151_v42, %v821_v32  ;;  %v931_v13 = vsel %vm811_vm0, %v4257_v49, %v4254_v45  ;;  %v2500_v37 = vld [vmem:[%s3056_s23 + $0x2f8] sm:$0xff]  ;;  %v3265_v49 = vld [vmem:[%s3056_s23 + $0x50] sm:$0xff] }
  0x6b   : > { %v859_v56 = vadd.f32 %v857_v43, %v851_v46  ;;  %v937_v17 = vadd.f32 %v935_v52, %v933_v51  ;;  %v943_v18 = vmul.f32 %v3124_v30, %v3119_v27  ;;  %v947_v19 = vmul.f32 %v2488_v48, %v3135_v33  ;;  %v3212_v46 = vld [vmem:[%s3056_s23 + $0x210] sm:$0xff]  ;;  %v3219_v52 = vld [vmem:[%s3056_s23 + $0x218] sm:$0xff] }
  0x6c   : > { %v951_v22 = vmul.f32 %v927_v50, %v3137_v34  ;;  %v4252_v23 = vrot.slane %v3170_v54, 1  ;;  %v4253_v24 = vrot.slane %v3173_v55, 1  ;;  %v4255_v26 = vrot.slane %v3180_v0, 1 }
  0x6d   : > { %v867_v21 = vadd.f32 %v865_v47, %v859_v56  ;;  %v941_v25 = vadd.f32 %v939_v53, %v937_v17  ;;  %v4256_v28 = vrot.slane %v3183_v1, 1  ;;  %v1007_v29 = vmul.f32 %v3140_v35, %v3088_v11  ;;  %v3222_v53 = vld [vmem:[%s3056_s23 + $0x40] sm:$0xff] }
  0x6e   : > { %v1001_v38 = vsel %vm811_vm0, %v4253_v24, %v4252_v23  ;;  %v1009_v39 = vmul.f32 %v2492_v6, %v3090_v12  ;;  %v1013_v43 = vmul.f32 %v931_v13, %v3100_v16  ;;  %v955_v48 = vmul.f32 %v3140_v35, %v3146_v40 }
  0x6f   : > { %v875_v32 = vadd.f32 %v873_v57, %v867_v21  ;;  %v945_v47 = vadd.f32 %v943_v18, %v941_v25  ;;  %v959_v50 = vmul.f32 %v2492_v6, %v3148_v41  ;;  %v963_v51 = vmul.f32 %v3151_v42, %v931_v13  ;;  %v2504_v57 = vld [vmem:[%s3056_s23 + $0x128] sm:$0xff] }
  0x70   : > { %v1005_v17 = vsel %vm811_vm0, %v4256_v28, %v4255_v26  ;;  %v1011_v18 = vadd.f32 %v1009_v39, %v1007_v29  ;;  %v1017_v21 = vmul.f32 %v3173_v55, %v3119_v27  ;;  %v3234_v6 = vld [vmem:[%s3056_s23 + $0x48] sm:$0xff]  ;;  %v1021_v25 = vmul.f32 %v2500_v37, %v3135_v33 }
  0x71   : > { %v883_v56 = vadd.f32 %v881_v58, %v875_v32  ;;  %v949_v13 = vadd.f32 %v947_v19, %v945_v47  ;;  %v1025_v58 = vmul.f32 %v1001_v38, %v3137_v34  ;;  %v4260_v32 = vrot.slane %v3212_v46, 1  ;;  %v3262_v28 = vld [vmem:[%s3056_s23 + $0x228] sm:$0xff] }
  0x72   : > { %v1015_v24 = vadd.f32 %v1013_v43, %v1011_v18  ;;  %v4261_v45 = vrot.slane %v3219_v52, 1  ;;  %v4265_v29 = vrot.slane %v3222_v53, 1  ;;  %v1077_v26 = vrot.slane %v3234_v6, 1  ;;  %v2512_v43 = vld [vmem:[%s3056_s23 + $0x308] sm:$0xff] }
  0x73   : > { %v891_v23 = vadd.f32 %v889_v60, %v883_v56  ;;  %v953_v39 = vadd.f32 %v951_v22, %v949_v13  ;;  %v1081_v19 = vmul.f32 %v3183_v1, %v3088_v11  ;;  %v1083_v37 = vmul.f32 %v2504_v57, %v3090_v12 }
  0x74   : > { %v1019_v38 = vadd.f32 %v1017_v21, %v1015_v24  ;;  %v1029_v60 = vmul.f32 %v3183_v1, %v3146_v40  ;;  %v1075_v22 = vsel %vm811_vm0, %v4261_v45, %v4260_v32  ;;  %v1087_v47 = vmul.f32 %v1005_v17, %v3100_v16  ;;  %v3259_v21 = vld [vmem:[%s3056_s23 + $0x220] sm:$0xff] }
  0x75   : > { %893 = vst [vmem:[#allocation2 + $0x8] sm:$0x3f] %v891_v23  ;;  %v957_v56 = vadd.f32 %v955_v48, %v953_v39  ;;  %v1033_v18 = vmul.f32 %v2504_v57, %v3148_v41  ;;  %v1085_v13 = vadd.f32 %v1083_v37, %v1081_v19  ;;  %v1091_v24 = vmul.f32 %v3219_v52, %v3119_v27  ;;  %v3278_v57 = vld [vmem:[%s3056_s23 + $0x58] sm:$0xff] }
  0x76   : > { %v3268_v36 = vsel %vm894_vm1, %v891_v23, 0.0  ;;  %v1023_v44 = vadd.f32 %v1021_v25, %v1019_v38  ;;  %v1037_v32 = vmul.f32 %v3151_v42, %v1005_v17  ;;  %v1079_v48 = vsel %vm811_vm0, %v1077_v26, %v4265_v29  ;;  %v2516_v19 = vld [vmem:[%s3056_s23 + $0x138] sm:$0xff] }
  0x77   : > { %v961_v39 = vadd.f32 %v959_v50, %v957_v56  ;;  %v1089_v37 = vadd.f32 %v1087_v47, %v1085_v13  ;;  %v1095_v45 = vmul.f32 %v2512_v43, %v3135_v33  ;;  %v1099_v23 = vmul.f32 %v1075_v22, %v3137_v34  ;;  %v2524_v56 = vld [vmem:[%s3056_s23 + $0x318] sm:$0xff] }
  0x78   : > { %v1027_v25 = vadd.f32 %v1025_v58, %v1023_v44  ;;  %v4266_v17 = vrot.slane %v3259_v21, 1  ;;  %v4267_v38 = vrot.slane %v3262_v28, 1  ;;  %v1150_v14 = vrot.slane %v3265_v49, 1 }
  0x79   : > { %v965_v15 = vadd.f32 %v963_v51, %v961_v39  ;;  %v1093_v9 = vadd.f32 %v1091_v24, %v1089_v37  ;;  %v1151_v29 = vrot.slane %v3278_v57, 1  ;;  %v1155_v50 = vmul.f32 %v3234_v6, %v3088_v11 }
  0x7a   : > { %v1031_v47 = vadd.f32 %v1029_v60, %v1027_v25  ;;  %v1149_v44 = vsel %vm811_vm0, %v4267_v38, %v4266_v17  ;;  %v1157_v58 = vmul.f32 %v2516_v19, %v3090_v12  ;;  %v1161_v51 = vmul.f32 %v1079_v48, %v3100_v16  ;;  %v2470_v17 = vld [vmem:[%s3056_s23 + $0xf0] sm:$0xff] }
  0x7b   : > { %968 = vst [vmem:[#allocation2 + $0x18] sm:$0x3f] %v965_v15  ;;  %v1097_v43 = vadd.f32 %v1095_v45, %v1093_v9  ;;  %v1103_v22 = vmul.f32 %v3234_v6, %v3146_v40  ;;  %v1107_v13 = vmul.f32 %v2516_v19, %v3148_v41  ;;  %v1111_v60 = vmul.f32 %v3151_v42, %v1079_v48 }
  0x7c   : > { %v3303_v24 = vsel %vm894_vm1, %v965_v15, 0.0  ;;  %v1035_v39 = vadd.f32 %v1033_v18, %v1031_v47  ;;  %v1159_v37 = vadd.f32 %v1157_v58, %v1155_v50  ;;  %v1165_v25 = vmul.f32 %v3262_v28, %v3119_v27  ;;  %v3327_v47 = vld [vmem:[%s3056_s23 + $0x148] sm:$0xff]  ;;  %v2474_v58 = vld [vmem:[%s3056_s23 + $0x2d0] sm:$0xff] }
  0x7d   : > { %v1101_v38 = vadd.f32 %v1099_v23, %v1097_v43  ;;  %v3314_v9 = vsel %vm811_vm0, %v1151_v29, %v1150_v14  ;;  %v1169_v45 = vmul.f32 %v2524_v56, %v3135_v33  ;;  %v1173_v15 = vmul.f32 %v1149_v44, %v3137_v34  ;;  %v2478_v43 = vld [vmem:[%s3056_s23 + $0x100] sm:$0xff] }
  0x7e   : > { %v1039_v48 = vadd.f32 %v1037_v32, %v1035_v39  ;;  %v1163_v18 = vadd.f32 %v1161_v51, %v1159_v37  ;;  %v1177_v19 = vmul.f32 %v3278_v57, %v3146_v40  ;;  %v812_v23 = vsel %vm811_vm0, %v807_v4, %v808_v5 }
  0x7f   : > { %v1105_v50 = vadd.f32 %v1103_v22, %v1101_v38  ;;  %v4270_v32 = vrot.slane %v3071_v2, 1  ;;  %v826_v44 = vmul.f32 %v3088_v11, %v3059_v61  ;;  %v832_v62 = vmul.f32 %v2470_v17, %v3090_v12 }
  0x80   : > { %1042 = vst [vmem:[#allocation2 + $0x28] sm:$0x3f] %v1039_v48  ;;  %v1167_v51 = vadd.f32 %v1165_v25, %v1163_v18  ;;  %v1181_v4 = vmul.f32 %v3327_v47, %v3148_v41  ;;  %v1185_v5 = vmul.f32 %v3151_v42, %v3314_v9  ;;  %v840_v3 = vmul.f32 %v3100_v16, %v812_v23 }
  0x81   : > { %v816_v56 = vsel %vm811_vm0, %v4270_v32, %v815_v10  ;;  %v1109_v38 = vadd.f32 %v1107_v13, %v1105_v50  ;;  %v4271_v10 = vrot.slane %v3083_v8, 1  ;;  %v4272_v22 = vrot.slane %v3080_v7, 1 }
  0x82   : > { %v834_v17 = vadd.f32 %v832_v62, %v826_v44  ;;  %v848_v39 = vmul.f32 %v3071_v2, %v3119_v27  ;;  %v3354_v37 = vsel %vm894_vm1, %v1039_v48, 0.0  ;;  %v1171_v25 = vadd.f32 %v1169_v45, %v1167_v51  ;;  %v2487_v62 = vld [vmem:[%s3056_s23 + $0x2e0] sm:$0xff] }
  0x83   : > { %v820_v61 = vsel %vm811_vm0, %v4272_v22, %v4271_v10  ;;  %v856_v18 = vmul.f32 %v2474_v58, %v3135_v33  ;;  %v864_v13 = vmul.f32 %v3137_v34, %v816_v56  ;;  %v1113_v23 = vadd.f32 %v1111_v60, %v1109_v38  ;;  %v2491_v22 = vld [vmem:[%s3056_s23 + $0x110] sm:$0xff] }
  0x84   : > { %v842_v8 = vadd.f32 %v840_v3, %v834_v17  ;;  %v872_v50 = vmul.f32 %v3080_v7, %v3146_v40  ;;  %v4273_v32 = vrot.slane %v3124_v30, 1  ;;  %v4274_v44 = vrot.slane %v3107_v20, 1 }
  0x85   : > { %v1175_v48 = vadd.f32 %v1173_v15, %v1171_v25  ;;  %v932_v45 = vmul.f32 %v3080_v7, %v3088_v11  ;;  %v934_v58 = vmul.f32 %v2478_v43, %v3090_v12  ;;  %v938_v60 = vmul.f32 %v3100_v16, %v820_v61  ;;  %1116 = vst [vmem:[#allocation2 + $0x38] sm:$0x3f] %v1113_v23 }
  0x86   : > { %v926_v2 = vsel %vm811_vm0, %v4274_v44, %v4273_v32  ;;  %v850_v56 = vadd.f32 %v848_v39, %v842_v8  ;;  %v880_v51 = vmul.f32 %v2478_v43, %v3148_v41  ;;  %v888_v30 = vmul.f32 %v3151_v42, %v820_v61  ;;  %v2499_v44 = vld [vmem:[%s3056_s23 + $0x2f0] sm:$0xff] }
  0x87   : > { %v4275_v3 = vrot.slane %v3140_v35, 1  ;;  %v4276_v38 = vrot.slane %v3127_v31, 1  ;;  %v3380_v7 = vsel %vm894_vm1, %v1113_v23, 0.0  ;;  %v1179_v10 = vadd.f32 %v1177_v19, %v1175_v48 }
  0x88   : > { %v936_v17 = vadd.f32 %v934_v58, %v932_v45  ;;  %v942_v39 = vmul.f32 %v3107_v20, %v3119_v27  ;;  %v858_v25 = vadd.f32 %v856_v18, %v850_v56  ;;  %v946_v43 = vmul.f32 %v2487_v62, %v3135_v33 }
  0x89   : > { %v930_v15 = vsel %vm811_vm0, %v4276_v38, %v4275_v3  ;;  %v950_v61 = vmul.f32 %v926_v2, %v3137_v34  ;;  %v954_v35 = vmul.f32 %v3127_v31, %v3146_v40  ;;  %v1183_v8 = vadd.f32 %v1181_v4, %v1179_v10  ;;  %v2503_v3 = vld [vmem:[%s3056_s23 + $0x120] sm:$0xff] }
  0x8a   : > { %v940_v32 = vadd.f32 %v938_v60, %v936_v17  ;;  %v958_v23 = vmul.f32 %v2491_v22, %v3148_v41  ;;  %v1006_v19 = vmul.f32 %v3127_v31, %v3088_v11  ;;  %v866_v48 = vadd.f32 %v864_v13, %v858_v25 }
  0x8b   : > { %v4277_v20 = vrot.slane %v3173_v55, 1  ;;  %v4278_v18 = vrot.slane %v3170_v54, 1  ;;  %v1008_v62 = vmul.f32 %v2491_v22, %v3090_v12  ;;  %v1012_v45 = vmul.f32 %v930_v15, %v3100_v16 }
  0x8c   : > { %v1187_v4 = vadd.f32 %v1185_v5, %v1183_v8  ;;  %v944_v58 = vadd.f32 %v942_v39, %v940_v32  ;;  %v962_v60 = vmul.f32 %v3151_v42, %v930_v15  ;;  %v4279_v56 = vrot.slane %v3183_v1, 1  ;;  %v2511_v8 = vld [vmem:[%s3056_s23 + $0x300] sm:$0xff] }
  0x8d   : > { %v1000_v2 = vsel %vm811_vm0, %v4278_v18, %v4277_v20  ;;  %v4280_v31 = vrot.slane %v3180_v0, 1  ;;  %v874_v13 = vadd.f32 %v872_v50, %v866_v48  ;;  %v1010_v38 = vadd.f32 %v1008_v62, %v1006_v19  ;;  %v2515_v62 = vld [vmem:[%s3056_s23 + $0x130] sm:$0xff] }
  0x8e   : > { %v1016_v10 = vmul.f32 %v3170_v54, %v3119_v27  ;;  %v1020_v22 = vmul.f32 %v2499_v44, %v3135_v33  ;;  %1190 = vst [vmem:[#allocation2 + $0x48] sm:$0x3f] %v1187_v4  ;;  %v948_v5 = vadd.f32 %v946_v43, %v944_v58  ;;  %v1024_v17 = vmul.f32 %v1000_v2, %v3137_v34 }
  0x8f   : > { %v1004_v55 = vsel %vm811_vm0, %v4280_v31, %v4279_v56  ;;  %v1028_v1 = vmul.f32 %v3180_v0, %v3146_v40  ;;  %v1032_v15 = vmul.f32 %v2503_v3, %v3148_v41  ;;  %v3417_v39 = vsel %vm894_vm1, %v1187_v4, 0.0 }
  0x90   : > { %v882_v50 = vadd.f32 %v880_v51, %v874_v13  ;;  %v1014_v25 = vadd.f32 %v1012_v45, %v1010_v38  ;;  %v1080_v54 = vmul.f32 %v3180_v0, %v3088_v11  ;;  %v952_v32 = vadd.f32 %v950_v61, %v948_v5  ;;  %v2523_v38 = vld [vmem:[%s3056_s23 + $0x310] sm:$0xff] }
  0x91   : > { %v4281_v43 = vrot.slane %v3219_v52, 1  ;;  %v4282_v44 = vrot.slane %v3212_v46, 1  ;;  %v1082_v48 = vmul.f32 %v2503_v3, %v3090_v12  ;;  %v1086_v20 = vmul.f32 %v1004_v55, %v3100_v16 }
  0x92   : > { %v890_v18 = vadd.f32 %v888_v30, %v882_v50  ;;  %v1018_v2 = vadd.f32 %v1016_v10, %v1014_v25  ;;  %v1036_v51 = vmul.f32 %v3151_v42, %v1004_v55  ;;  %v4283_v0 = vrot.slane %v3222_v53, 1 }
  0x93   : > { %v1074_v19 = vsel %vm811_vm0, %v4282_v44, %v4281_v43  ;;  %v956_v61 = vadd.f32 %v954_v35, %v952_v32  ;;  %v1084_v45 = vadd.f32 %v1082_v48, %v1080_v54  ;;  %v1090_v4 = vmul.f32 %v3212_v46, %v3119_v27  ;;  %v3461_v43 = vld [vmem:[%s3056_s23 + $0x230] sm:$0xff] }
  0x94   : > { %v1078_v52 = vsel %vm811_vm0, %v4283_v0, %v1077_v26  ;;  %v1094_v58 = vmul.f32 %v2511_v8, %v3135_v33  ;;  %892 = vst [vmem:[#allocation2] sm:$0xff] %v890_v18  ;;  %v896_v30 = vadd.f32 %v3268_v36, %v890_v18  ;;  %v1022_v56 = vadd.f32 %v1020_v22, %v1018_v2  ;;  %v3478_v2 = vld [vmem:[%s3056_s23 + $0x60] sm:$0xff] }
  0x95   : > { %v1098_v6 = vmul.f32 %v1074_v19, %v3137_v34  ;;  %v1102_v31 = vmul.f32 %v3222_v53, %v3146_v40  ;;  %v960_v55 = vadd.f32 %v958_v23, %v956_v61  ;;  %v1088_v26 = vadd.f32 %v1086_v20, %v1084_v45 }
  0x96   : > { %v1106_v35 = vmul.f32 %v2515_v62, %v3148_v41  ;;  %v1154_v46 = vmul.f32 %v3222_v53, %v3088_v11  ;;  %v897_v13 = vrot.slane %v896_v30, 4  ;;  %v1026_v3 = vadd.f32 %v1024_v17, %v1022_v56  ;;  %v3487_v56 = vld [vmem:[%s3056_s23 + $0x68] sm:$0xff] }
  0x97   : > { %v1156_v36 = vmul.f32 %v2515_v62, %v3090_v12  ;;  %v1160_v10 = vmul.f32 %v1078_v52, %v3100_v16  ;;  %v964_v22 = vadd.f32 %v962_v60, %v960_v55  ;;  %v1092_v5 = vadd.f32 %v1090_v4, %v1088_v26  ;;  %v3464_v60 = vld [vmem:[%s3056_s23 + $0x238] sm:$0xff] }
  0x98   : > { %v1110_v50 = vmul.f32 %v3151_v42, %v1078_v52  ;;  %v4284_v23 = vrot.slane %v3262_v28, 1  ;;  %v4285_v25 = vrot.slane %v3259_v21, 1  ;;  %v898_v53 = vadd.f32 %v897_v13, %v896_v30 }
  0x99   : > { %v1030_v54 = vadd.f32 %v1028_v1, %v1026_v3  ;;  %v1158_v17 = vadd.f32 %v1156_v36, %v1154_v46  ;;  %v1164_v32 = vmul.f32 %v3259_v21, %v3119_v27  ;;  %967 = vst [vmem:[#allocation2 + $0x10] sm:$0xff] %v964_v22  ;;  %v970_v28 = vadd.f32 %v3303_v24, %v964_v22  ;;  %v2536_v22 = vld [vmem:[%s3056_s23 + $0x328] sm:$0xff] }
  0x9a   : > { %v1148_v8 = vsel %vm811_vm0, %v4285_v25, %v4284_v23  ;;  %v1096_v44 = vadd.f32 %v1094_v58, %v1092_v5  ;;  %v3473_v1 = vsel %vm811_vm0, %v1150_v14, %v1151_v29  ;;  %v1168_v19 = vmul.f32 %v2523_v38, %v3135_v33  ;;  %v2527_v14 = vld [vmem:[%s3056_s23 + $0x140] sm:$0xff] }
  0x9b   : > { %v899_v21 = vrot.slane %v898_v53, 2  ;;  %v1034_v48 = vadd.f32 %v1032_v15, %v1030_v54  ;;  %v1162_v20 = vadd.f32 %v1160_v10, %v1158_v17  ;;  %v1172_v18 = vmul.f32 %v1148_v8, %v3137_v34 }
  0x9c   : > { %v971_v24 = vrot.slane %v970_v28, 4  ;;  %v1100_v0 = vadd.f32 %v1098_v6, %v1096_v44  ;;  %v1220_v52 = vrot.slane %v3461_v43, 1  ;;  %v1221_v61 = vrot.slane %v3464_v60, 1 }
  0x9d   : > { %v900_v62 = vadd.f32 %v899_v21, %v898_v53  ;;  %v1038_v45 = vadd.f32 %v1036_v51, %v1034_v48  ;;  %v1166_v29 = vadd.f32 %v1164_v32, %v1162_v20  ;;  %v1176_v4 = vmul.f32 %v3265_v49, %v3146_v40  ;;  %v2540_v20 = vld [vmem:[%s3056_s23 + $0x158] sm:$0xff] }
  0x9e   : > { %v972_v15 = vadd.f32 %v971_v24, %v970_v28  ;;  %v1104_v58 = vadd.f32 %v1102_v31, %v1100_v0  ;;  %v1180_v30 = vmul.f32 %v2527_v14, %v3148_v41  ;;  %v1224_v6 = vrot.slane %v3478_v2, 1 }
  0x9f   : > { %v901_v55 = vrot.slane %v900_v62, 1  ;;  %1041 = vst [vmem:[#allocation2 + $0x20] sm:$0xff] %v1038_v45  ;;  %v1044_v26 = vadd.f32 %v3354_v37, %v1038_v45  ;;  %v1170_v46 = vadd.f32 %v1168_v19, %v1166_v29  ;;  %v1229_v51 = vmul.f32 %v3278_v57, %v3088_v11 }
  0xa0   : > { %v973_v13 = vrot.slane %v972_v15, 2  ;;  %v1108_v3 = vadd.f32 %v1106_v35, %v1104_v58  ;;  %v1223_v38 = vsel %vm811_vm0, %v1221_v61, %v1220_v52  ;;  %v1231_v31 = vmul.f32 %v3327_v47, %v3090_v12 }
  0xa1   : > { %v1045_v36 = vrot.slane %v1044_v26, 4  ;;  %v1174_v10 = vadd.f32 %v1172_v18, %v1170_v46  ;;  %v1225_v5 = vrot.slane %v3487_v56, 1  ;;  %v1235_v37 = vmul.f32 %v3314_v9, %v3100_v16 }
  0xa2   : > { %v974_v23 = vadd.f32 %v973_v13, %v972_v15  ;;  %v1112_v25 = vadd.f32 %v1110_v50, %v1108_v3  ;;  %v1233_v8 = vadd.f32 %v1231_v31, %v1229_v51  ;;  %v1239_v57 = vmul.f32 %v3464_v60, %v3119_v27 }
  0xa3   : > { %v902_v35 = vadd.f32 %v901_v55, %v900_v62  ;;  %v1046_v53 = vadd.f32 %v1045_v36, %v1044_v26  ;;  %v1178_v54 = vadd.f32 %v1176_v4, %v1174_v10  ;;  %v1184_v47 = vmul.f32 %v3151_v42, %v3473_v1  ;;  %v2535_v26 = vld [vmem:[%s3056_s23 + $0x320] sm:$0xff]  ;;  %v2546_v10 = vld [vmem:[%s3056_s23 + $0x248] sm:$0xff] }
  0xa4   : > { %v975_v17 = vrot.slane %v974_v23, 1  ;;  %1115 = vst [vmem:[#allocation2 + $0x30] sm:$0xff] %v1112_v25  ;;  %v1118_v32 = vadd.f32 %v3380_v7, %v1112_v25  ;;  %v1237_v28 = vadd.f32 %v1235_v37, %v1233_v8  ;;  %v1243_v9 = vmul.f32 %v2536_v22, %v3135_v33 }
  0xa5   : > { %v1047_v44 = vrot.slane %v1046_v53, 2  ;;  %v1182_v50 = vadd.f32 %v1180_v30, %v1178_v54  ;;  %v1227_v60 = vsel %vm811_vm0, %v1225_v5, %v1224_v6  ;;  %v1247_v19 = vmul.f32 %v1223_v38, %v3137_v34 }
  0xa6   : > { %v976_v21 = vadd.f32 %v975_v17, %v974_v23  ;;  %v1119_v48 = vrot.slane %v1118_v32, 4  ;;  %v1241_v18 = vadd.f32 %v1239_v57, %v1237_v28  ;;  %v1251_v7 = vmul.f32 %v3487_v56, %v3146_v40 }
  0xa7   : > { %v1048_v24 = vadd.f32 %v1047_v44, %v1046_v53  ;;  %v1186_v0 = vadd.f32 %v1184_v47, %v1182_v50  ;;  %v1255_v62 = vmul.f32 %v2540_v20, %v3148_v41  ;;  %v1228_v45 = vmul.f32 %v3265_v49, %v3088_v11 }
  0xa8   : > { %v977_v29 = vadd.f32 %v976_v21, %v902_v35  ;;  %v1120_v4 = vadd.f32 %v1119_v48, %v1118_v32  ;;  %v1245_v15 = vadd.f32 %v1243_v9, %v1241_v18  ;;  %v1230_v58 = vmul.f32 %v2527_v14, %v3090_v12  ;;  %v3530_v14 = vld [vmem:[%s3056_s23 + $0x240] sm:$0xff]  ;;  %v2539_v18 = vld [vmem:[%s3056_s23 + $0x150] sm:$0xff] }
  0xa9   : > { %v1049_v30 = vrot.slane %v1048_v24, 1  ;;  %1189 = vst [vmem:[#allocation2 + $0x40] sm:$0xff] %v1186_v0  ;;  %v1192_v55 = vadd.f32 %v3417_v39, %v1186_v0  ;;  %v1222_v46 = vsel %vm811_vm0, %v1220_v52, %v1221_v61  ;;  %v1234_v51 = vmul.f32 %v3473_v1, %v3100_v16  ;;  %v3536_v1 = vld [vmem:[%s3056_s23 + $0x70] sm:$0xff] }
  0xaa   : > { %v1121_v13 = vrot.slane %v1120_v4, 2  ;;  %v1249_v49 = vadd.f32 %v1247_v19, %v1245_v15  ;;  %v1232_v3 = vadd.f32 %v1230_v58, %v1228_v45  ;;  %v1238_v38 = vmul.f32 %v3461_v43, %v3119_v27  ;;  %v3540_v43 = vld [vmem:[%s3056_s23 + $0x78] sm:$0xff] }
  0xab   : > { %v1050_v31 = vadd.f32 %v1049_v30, %v1048_v24  ;;  %v1193_v36 = vrot.slane %v1192_v55, 4  ;;  %v1259_v39 = vmul.f32 %v3151_v42, %v1227_v60  ;;  %v1242_v61 = vmul.f32 %v2535_v26, %v3135_v33  ;;  %v2548_v24 = vld [vmem:[%s3056_s23 + $0x338] sm:$0xff] }
  0xac   : > { %v1122_v22 = vadd.f32 %v1121_v13, %v1120_v4  ;;  %v1253_v37 = vadd.f32 %v1251_v7, %v1249_v49  ;;  %v1236_v52 = vadd.f32 %v1234_v51, %v1232_v3  ;;  %v1246_v8 = vmul.f32 %v1222_v46, %v3137_v34  ;;  %v2552_v3 = vld [vmem:[%s3056_s23 + $0x168] sm:$0xff] }
  0xad   : > { %v1051_v23 = vadd.f32 %v1050_v31, %v977_v29  ;;  %v1194_v25 = vadd.f32 %v1193_v36, %v1192_v55  ;;  %v1294_v57 = vrot.slane %v3530_v14, 1  ;;  %v1295_v47 = vrot.slane %v2546_v10, 1 }
  0xae   : > { %v1123_v35 = vrot.slane %v1122_v22, 1  ;;  %v1257_v53 = vadd.f32 %v1255_v62, %v1253_v37  ;;  %v1240_v54 = vadd.f32 %v1238_v38, %v1236_v52  ;;  %v1250_v32 = vmul.f32 %v3478_v2, %v3146_v40  ;;  %v2547_v38 = vld [vmem:[%s3056_s23 + $0x330] sm:$0xff] }
  0xaf   : > { %v1195_v17 = vrot.slane %v1194_v25, 2  ;;  %v1298_v28 = vrot.slane %v3536_v1, 1  ;;  %v1303_v9 = vmul.f32 %v3487_v56, %v3088_v11  ;;  %v1299_v21 = vrot.slane %v3540_v43, 1 }
  0xb0   : > { %v1124_v44 = vadd.f32 %v1123_v35, %v1122_v22  ;;  %v1261_v50 = vadd.f32 %v1259_v39, %v1257_v53  ;;  %v1244_v19 = vadd.f32 %v1242_v61, %v1240_v54  ;;  %v1226_v7 = vsel %vm811_vm0, %v1224_v6, %v1225_v5  ;;  %v3592_v53 = vld [vmem:[%s3056_s23 + $0x80] sm:$0xff] }
  0xb1   : > { %v1196_v48 = vadd.f32 %v1195_v17, %v1194_v25  ;;  %v1305_v0 = vmul.f32 %v2540_v20, %v3090_v12  ;;  %v1309_v62 = vmul.f32 %v1227_v60, %v3100_v16  ;;  %v1254_v4 = vmul.f32 %v2539_v18, %v3148_v41 }
  0xb2   : > { %v1125_v45 = vadd.f32 %v1124_v44, %v1051_v23  ;;  %1264 = vst [vmem:[#allocation2 + $0x58] sm:$0x3f] %v1261_v50  ;;  %v1248_v29 = vadd.f32 %v1246_v8, %v1244_v19  ;;  %v1297_v56 = vsel %vm811_vm0, %v1295_v47, %v1294_v57  ;;  %v1258_v58 = vmul.f32 %v3151_v42, %v1226_v7  ;;  %v2558_v23 = vld [vmem:[%s3056_s23 + $0x258] sm:$0xff] }
  0xb3   : > { %v1197_v15 = vrot.slane %v1196_v48, 1  ;;  %v1307_v30 = vadd.f32 %v1305_v0, %v1303_v9  ;;  %v1313_v6 = vmul.f32 %v2546_v10, %v3119_v27  ;;  %v1265_v5 = vsel %vm894_vm1, %v1261_v50, 0.0  ;;  %v3578_v10 = vld [vmem:[%s3056_s23 + $0x250] sm:$0xff]  ;;  %v3598_v9 = vld [vmem:[%s3056_s23 + $0x88] sm:$0xff] }
  0xb4   : > { %v1252_v60 = vadd.f32 %v1250_v32, %v1248_v29  ;;  %v1301_v20 = vsel %vm811_vm0, %v1299_v21, %v1298_v28  ;;  %v1317_v55 = vmul.f32 %v2548_v24, %v3135_v33  ;;  %v1321_v51 = vmul.f32 %v1297_v56, %v3137_v34  ;;  %v2560_v24 = vld [vmem:[%s3056_s23 + $0x348] sm:$0xff]  ;;  %v2551_v29 = vld [vmem:[%s3056_s23 + $0x160] sm:$0xff] }
  0xb5   : > { %v1198_v26 = vadd.f32 %v1197_v15, %v1196_v48  ;;  %v1311_v46 = vadd.f32 %v1309_v62, %v1307_v30  ;;  %v1325_v13 = vmul.f32 %v3540_v43, %v3146_v40  ;;  %v1302_v31 = vmul.f32 %v3478_v2, %v3088_v11 }
  0xb6   : > { %v1256_v49 = vadd.f32 %v1254_v4, %v1252_v60  ;;  %v1304_v36 = vmul.f32 %v2539_v18, %v3090_v12  ;;  %v1308_v39 = vmul.f32 %v1226_v7, %v3100_v16  ;;  %v1329_v52 = vmul.f32 %v2552_v3, %v3148_v41 }
  0xb7   : > { %v3580_v22 = vadd.f32 %v1198_v26, %v1125_v45  ;;  %v1315_v37 = vadd.f32 %v1313_v6, %v1311_v46  ;;  %v1296_v61 = vsel %vm811_vm0, %v1294_v57, %v1295_v47  ;;  %v1333_v2 = vmul.f32 %v3151_v42, %v1301_v20 }
  0xb8   : > { %v3586_v25 = vadd.f32 %v1258_v58, %v1256_v49  ;;  %v1306_v8 = vadd.f32 %v1304_v36, %v1302_v31  ;;  %v1312_v35 = vmul.f32 %v3530_v14, %v3119_v27  ;;  %v1300_v17 = vsel %vm811_vm0, %v1298_v28, %v1299_v21 }
  0xb9   : > { %v1319_v54 = vadd.f32 %v1317_v55, %v1315_v37  ;;  %v1316_v32 = vmul.f32 %v2547_v38, %v3135_v33  ;;  %v1368_v57 = vrot.slane %v3578_v10, 1  ;;  %v1320_v14 = vmul.f32 %v1296_v61, %v3137_v34  ;;  %v2564_v37 = vld [vmem:[%s3056_s23 + $0x178] sm:$0xff] }
  0xba   : > { %1263 = vst [vmem:[#allocation2 + $0x50] sm:$0xff] %v3586_v25  ;;  %v1266_v47 = vadd.f32 %v1265_v5, %v3586_v25  ;;  %v1310_v44 = vadd.f32 %v1308_v39, %v1306_v8  ;;  %v1369_v50 = vrot.slane %v2558_v23, 1  ;;  %v1372_v48 = vrot.slane %v3592_v53, 1 }
  0xbb   : > { %v1323_v19 = vadd.f32 %v1321_v51, %v1319_v54  ;;  %v1377_v28 = vmul.f32 %v3540_v43, %v3088_v11  ;;  %v1379_v21 = vmul.f32 %v2552_v3, %v3090_v12  ;;  %v1373_v0 = vrot.slane %v3598_v9, 1  ;;  %v3638_v54 = vld [vmem:[%s3056_s23 + $0x260] sm:$0xff] }
  0xbc   : > { %v1267_v18 = vrot.slane %v1266_v47, 4  ;;  %v1314_v7 = vadd.f32 %v1312_v35, %v1310_v44  ;;  %v1383_v62 = vmul.f32 %v1301_v20, %v3100_v16  ;;  %v1371_v4 = vsel %vm811_vm0, %v1369_v50, %v1368_v57 }
  0xbd   : > { %v1327_v45 = vadd.f32 %v1325_v13, %v1323_v19  ;;  %v1381_v56 = vadd.f32 %v1379_v21, %v1377_v28  ;;  %v1387_v15 = vmul.f32 %v2558_v23, %v3119_v27  ;;  %v1324_v43 = vmul.f32 %v3536_v1, %v3146_v40 }
  0xbe   : > { %v1268_v58 = vadd.f32 %v1267_v18, %v1266_v47  ;;  %v1318_v30 = vadd.f32 %v1316_v32, %v1314_v7  ;;  %v1328_v6 = vmul.f32 %v2551_v29, %v3148_v41  ;;  %v1332_v60 = vmul.f32 %v3151_v42, %v1300_v17 }
  0xbf   : > { %v1331_v5 = vadd.f32 %v1329_v52, %v1327_v45  ;;  %v1385_v20 = vadd.f32 %v1383_v62, %v1381_v56  ;;  %v1391_v55 = vmul.f32 %v2560_v24, %v3135_v33  ;;  %v1375_v51 = vsel %vm811_vm0, %v1373_v0, %v1372_v48  ;;  %v2559_v52 = vld [vmem:[%s3056_s23 + $0x340] sm:$0xff] }
  0xc0   : > { %v1269_v26 = vrot.slane %v1268_v58, 2  ;;  %v1322_v46 = vadd.f32 %v1320_v14, %v1318_v30  ;;  %v1395_v13 = vmul.f32 %v1371_v4, %v3137_v34  ;;  %v1370_v38 = vsel %vm811_vm0, %v1368_v57, %v1369_v50  ;;  %v2570_v14 = vld [vmem:[%s3056_s23 + $0x268] sm:$0xff]  ;;  %v3644_v50 = vld [vmem:[%s3056_s23 + $0x90] sm:$0xff] }
  0xc1   : > { %v1335_v49 = vadd.f32 %v1333_v2, %v1331_v5  ;;  %v1389_v3 = vadd.f32 %v1387_v15, %v1385_v20  ;;  %v1376_v31 = vmul.f32 %v3536_v1, %v3088_v11  ;;  %v1378_v61 = vmul.f32 %v2551_v29, %v3090_v12 }
  0xc2   : > { %v1270_v36 = vadd.f32 %v1269_v26, %v1268_v58  ;;  %v1326_v39 = vadd.f32 %v1324_v43, %v1322_v46  ;;  %v1382_v23 = vmul.f32 %v1300_v17, %v3100_v16  ;;  %v1399_v8 = vmul.f32 %v3598_v9, %v3146_v40  ;;  %v3647_v17 = vld [vmem:[%s3056_s23 + $0x98] sm:$0xff] }
  0xc3   : > { %1338 = vst [vmem:[#allocation2 + $0x68] sm:$0x3f] %v1335_v49  ;;  %v1393_v2 = vadd.f32 %v1391_v55, %v1389_v3  ;;  %v1403_v35 = vmul.f32 %v2564_v37, %v3148_v41  ;;  %v1407_v1 = vmul.f32 %v3151_v42, %v1375_v51  ;;  %v1380_v47 = vadd.f32 %v1378_v61, %v1376_v31  ;;  %v2563_v55 = vld [vmem:[%s3056_s23 + $0x170] sm:$0xff]  ;;  %v2572_v46 = vld [vmem:[%s3056_s23 + $0x358] sm:$0xff] }
  0xc4   : > { %v1271_v32 = vrot.slane %v1270_v36, 1  ;;  %v1330_v57 = vadd.f32 %v1328_v6, %v1326_v39  ;;  %v1386_v44 = vmul.f32 %v3578_v10, %v3119_v27  ;;  %v1339_v19 = vsel %vm894_vm1, %v1335_v49, 0.0 }
  0xc5   : > { %v1397_v28 = vadd.f32 %v1395_v13, %v1393_v2  ;;  %v1390_v21 = vmul.f32 %v2559_v52, %v3135_v33  ;;  %v1394_v18 = vmul.f32 %v1370_v38, %v3137_v34  ;;  %v1384_v62 = vadd.f32 %v1382_v23, %v1380_v47 }
  0xc6   : > { %v1272_v7 = vadd.f32 %v1271_v32, %v1270_v36  ;;  %v3652_v24 = vadd.f32 %v1332_v60, %v1330_v57  ;;  %v1442_v45 = vrot.slane %v3638_v54, 1  ;;  %v1443_v29 = vrot.slane %v2570_v14, 1 }
  0xc7   : > { %v1401_v10 = vadd.f32 %v1399_v8, %v1397_v28  ;;  %v1446_v4 = vrot.slane %v3644_v50, 1  ;;  %v1447_v56 = vrot.slane %v3647_v17, 1  ;;  %v1388_v30 = vadd.f32 %v1386_v44, %v1384_v62  ;;  %v2582_v62 = vld [vmem:[%s3056_s23 + $0x278] sm:$0xff] }
  0xc8   : > { %v3658_v15 = vadd.f32 %v1272_v7, %v3580_v22  ;;  %1337 = vst [vmem:[#allocation2 + $0x60] sm:$0xff] %v3652_v24  ;;  %v1340_v58 = vadd.f32 %v1339_v19, %v3652_v24  ;;  %v1451_v43 = vmul.f32 %v3598_v9, %v3088_v11  ;;  %v1374_v5 = vsel %vm811_vm0, %v1372_v48, %v1373_v0  ;;  %v3699_v19 = vld [vmem:[%s3056_s23 + $0x270] sm:$0xff] }
  0xc9   : > { %v1405_v6 = vadd.f32 %v1403_v35, %v1401_v10  ;;  %v1398_v60 = vmul.f32 %v3592_v53, %v3146_v40  ;;  %v1453_v22 = vmul.f32 %v2564_v37, %v3090_v12  ;;  %v1392_v26 = vadd.f32 %v1390_v21, %v1388_v30 }
  0xca   : > { %v1341_v20 = vrot.slane %v1340_v58, 4  ;;  %v1445_v13 = vsel %vm811_vm0, %v1443_v29, %v1442_v45  ;;  %v1457_v9 = vmul.f32 %v1375_v51, %v3100_v16  ;;  %v1402_v3 = vmul.f32 %v2563_v55, %v3148_v41  ;;  %v2576_v51 = vld [vmem:[%s3056_s23 + $0x188] sm:$0xff] }
  0xcb   : > { %v1409_v49 = vadd.f32 %v1407_v1, %v1405_v6  ;;  %v1455_v48 = vadd.f32 %v1453_v22, %v1451_v43  ;;  %v1461_v0 = vmul.f32 %v2570_v14, %v3119_v27  ;;  %v1396_v31 = vadd.f32 %v1394_v18, %v1392_v26  ;;  %v2571_v1 = vld [vmem:[%s3056_s23 + $0x350] sm:$0xff] }
  0xcc   : > { %v1342_v38 = vadd.f32 %v1341_v20, %v1340_v58  ;;  %v1406_v36 = vmul.f32 %v3151_v42, %v1374_v5  ;;  %v1449_v39 = vsel %vm811_vm0, %v1447_v56, %v1446_v4  ;;  %v1465_v52 = vmul.f32 %v2572_v46, %v3135_v33 }
  0xcd   : > { %1412 = vst [vmem:[#allocation2 + $0x78] sm:$0x3f] %v1409_v49  ;;  %v1459_v37 = vadd.f32 %v1457_v9, %v1455_v48  ;;  %v1469_v61 = vmul.f32 %v1445_v13, %v3137_v34  ;;  %v1473_v23 = vmul.f32 %v3647_v17, %v3146_v40  ;;  %v1400_v8 = vadd.f32 %v1398_v60, %v1396_v31  ;;  %v2584_v31 = vld [vmem:[%s3056_s23 + $0x368] sm:$0xff] }
  0xce   : > { %v1343_v2 = vrot.slane %v1342_v38, 2  ;;  %v1477_v35 = vmul.f32 %v2576_v51, %v3148_v41  ;;  %v1450_v32 = vmul.f32 %v3592_v53, %v3088_v11  ;;  %v1444_v47 = vsel %vm811_vm0, %v1442_v45, %v1443_v29  ;;  %v3708_v29 = vld [vmem:[%s3056_s23 + $0xa0] sm:$0xff] }
  0xcf   : > { %v1463_v57 = vadd.f32 %v1461_v0, %v1459_v37  ;;  %v1452_v44 = vmul.f32 %v2563_v55, %v3090_v12  ;;  %v1456_v14 = vmul.f32 %v1374_v5, %v3100_v16  ;;  %v1413_v21 = vsel %vm894_vm1, %v1409_v49, 0.0  ;;  %v3714_v5 = vld [vmem:[%s3056_s23 + $0xa8] sm:$0xff] }
  0xd0   : > { %v1344_v28 = vadd.f32 %v1343_v2, %v1342_v38  ;;  %v1404_v18 = vadd.f32 %v1402_v3, %v1400_v8  ;;  %v1481_v7 = vmul.f32 %v3151_v42, %v1449_v39  ;;  %v1460_v58 = vmul.f32 %v3638_v54, %v3119_v27 }
  0xd1   : > { %v1467_v10 = vadd.f32 %v1465_v52, %v1463_v57  ;;  %v1454_v53 = vadd.f32 %v1452_v44, %v1450_v32  ;;  %v1464_v45 = vmul.f32 %v2571_v1, %v3135_v33  ;;  %v1468_v6 = vmul.f32 %v1444_v47, %v3137_v34  ;;  %v3742_v44 = vld [vmem:[%s3053_s21 + $0x8] ss:$0 sm:$0xff] }
  0xd2   : > { %v1345_v30 = vrot.slane %v1344_v28, 1  ;;  %v3710_v43 = vadd.f32 %v1406_v36, %v1404_v18  ;;  %v1516_v60 = vrot.slane %v3699_v19, 1  ;;  %v1472_v20 = vmul.f32 %v3644_v50, %v3146_v40 }
  0xd3   : > { %v1471_v42 = vadd.f32 %v1469_v61, %v1467_v10  ;;  %v1458_v22 = vadd.f32 %v1456_v14, %v1454_v53  ;;  %v1517_v54 = vrot.slane %v2582_v62, 1  ;;  %v1520_v46 = vrot.slane %v3708_v29, 1  ;;  %v2575_v61 = vld [vmem:[%s3056_s23 + $0x180] sm:$0xff] }
  0xd4   : > { %v1346_v55 = vadd.f32 %v1345_v30, %v1344_v28  ;;  %1411 = vst [vmem:[#allocation2 + $0x70] sm:$0xff] %v3710_v43  ;;  %v1414_v26 = vadd.f32 %v1413_v21, %v3710_v43  ;;  %v1525_v13 = vmul.f32 %v3647_v17, %v3088_v11  ;;  %v1521_v3 = vrot.slane %v3714_v5, 1  ;;  %v2583_v10 = vld [vmem:[%s3056_s23 + $0x360] sm:$0xff] }
  0xd5   : > { %v1475_v9 = vadd.f32 %v1473_v23, %v1471_v42  ;;  %v1462_v49 = vadd.f32 %v1460_v58, %v1458_v22  ;;  %v1527_v48 = vmul.f32 %v2576_v51, %v3090_v12  ;;  %v1519_v36 = vsel %vm811_vm0, %v1517_v54, %v1516_v60 }
  0xd6   : > { %v1347_v0 = vadd.f32 %v1346_v55, %v3658_v15  ;;  %v1415_v38 = vrot.slane %v1414_v26, 4  ;;  %v1531_v37 = vmul.f32 %v1449_v39, %v3100_v16  ;;  %v1535_v23 = vmul.f32 %v2582_v62, %v3119_v27  ;;  %v2588_v62 = vld [vmem:[%s3056_s23 + $0x198] sm:$0xff] }
  0xd7   : > { %v1479_v52 = vadd.f32 %v1477_v35, %v1475_v9  ;;  %v1466_v2 = vadd.f32 %v1464_v45, %v1462_v49  ;;  %v1529_v8 = vadd.f32 %v1527_v48, %v1525_v13  ;;  %v1448_v15 = vsel %vm811_vm0, %v1446_v4, %v1447_v56 }
  0xd8   : > { %v1416_v1 = vadd.f32 %v1415_v38, %v1414_v26  ;;  %v1476_v51 = vmul.f32 %v2575_v61, %v3148_v41  ;;  %v1539_v57 = vmul.f32 %v2584_v31, %v3135_v33  ;;  %v1480_v14 = vmul.f32 %v3742_v44, %v1448_v15  ;;  %v3774_v38 = vld [vmem:[%s3056_s23 + $0xb0] sm:$0xff] }
  0xd9   : > { %v1483_v32 = vadd.f32 %v1481_v7, %v1479_v52  ;;  %v1470_v39 = vadd.f32 %v1468_v6, %v1466_v2  ;;  %v1533_v35 = vadd.f32 %v1531_v37, %v1529_v8  ;;  %v1523_v17 = vsel %vm811_vm0, %v1521_v3, %v1520_v46  ;;  %v3777_v37 = vld [vmem:[%s3056_s23 + $0xb8] sm:$0xff] }
  0xda   : > { %v1417_v47 = vrot.slane %v1416_v1, 2  ;;  %v1543_v4 = vmul.f32 %v1519_v36, %v3137_v34  ;;  %v1547_v21 = vmul.f32 %v3714_v5, %v3146_v40  ;;  %v1524_v18 = vmul.f32 %v3644_v50, %v3088_v11  ;;  %v2594_v50 = vld [vmem:[%s3056_s23 + $0x288] sm:$0xff] }
  0xdb   : > { %1486 = vst [vmem:[#allocation2 + $0x88] sm:$0x3f] %v1483_v32  ;;  %v1474_v56 = vadd.f32 %v1472_v20, %v1470_v39  ;;  %v1537_v28 = vadd.f32 %v1535_v23, %v1533_v35  ;;  %v1518_v53 = vsel %vm811_vm0, %v1516_v60, %v1517_v54  ;;  %v1526_v58 = vmul.f32 %v2575_v61, %v3090_v12  ;;  %v2593_v20 = vld [vmem:[%s3056_s23 + $0x280] sm:$0xff] }
  0xdc   : > { %v1418_v7 = vadd.f32 %v1417_v47, %v1416_v1  ;;  %v1530_v45 = vmul.f32 %v1448_v15, %v3100_v16  ;;  %v1551_v42 = vmul.f32 %v2588_v62, %v3148_v41  ;;  %v1555_v22 = vmul.f32 %v3742_v44, %v1523_v17 }
  0xdd   : > { %v1478_v30 = vadd.f32 %v1476_v51, %v1474_v56  ;;  %v1541_v6 = vadd.f32 %v1539_v57, %v1537_v28  ;;  %v1487_v26 = vsel %vm894_vm1, %v1483_v32, 0.0  ;;  %v1528_v13 = vadd.f32 %v1526_v58, %v1524_v18  ;;  %v2596_v57 = vld [vmem:[%s3056_s23 + $0x378] sm:$0xff] }
  0xde   : > { %v1419_v55 = vrot.slane %v1418_v7, 1  ;;  %v1534_v60 = vmul.f32 %v3699_v19, %v3119_v27  ;;  %v1538_v49 = vmul.f32 %v2583_v10, %v3135_v33  ;;  %v1542_v48 = vmul.f32 %v1518_v53, %v3137_v34 }
  0xdf   : > { %v3769_v54 = vadd.f32 %v1480_v14, %v1478_v30  ;;  %v1545_v9 = vadd.f32 %v1543_v4, %v1541_v6  ;;  %v1532_v36 = vadd.f32 %v1530_v45, %v1528_v13  ;;  %v1590_v52 = vrot.slane %v2593_v20, 1  ;;  %v2587_v4 = vld [vmem:[%s3056_s23 + $0x190] sm:$0xff] }
  0xe0   : > { %v1420_v31 = vadd.f32 %v1419_v55, %v1418_v7  ;;  %v1591_v61 = vrot.slane %v2594_v50, 1  ;;  %v1546_v8 = vmul.f32 %v3708_v29, %v3146_v40  ;;  %v1599_v23 = vmul.f32 %v3714_v5, %v3088_v11 }
  0xe1   : > { %1485 = vst [vmem:[#allocation2 + $0x80] sm:$0xff] %v3769_v54  ;;  %v1488_v19 = vadd.f32 %v1487_v26, %v3769_v54  ;;  %v1549_v2 = vadd.f32 %v1547_v21, %v1545_v9  ;;  %v1536_v15 = vadd.f32 %v1534_v60, %v1532_v36  ;;  %v1594_v51 = vrot.slane %v3774_v38, 1 }
  0xe2   : > { %v1421_v1 = vadd.f32 %v1420_v31, %v1347_v0  ;;  %v1601_v32 = vmul.f32 %v2588_v62, %v3090_v12  ;;  %v1595_v47 = vrot.slane %v3777_v37, 1  ;;  %v1605_v14 = vmul.f32 %v1523_v17, %v3100_v16 }
  0xe3   : > { %v1489_v39 = vrot.slane %v1488_v19, 4  ;;  %v1553_v35 = vadd.f32 %v1551_v42, %v1549_v2  ;;  %v1540_v56 = vadd.f32 %v1538_v49, %v1536_v15  ;;  %v1593_v28 = vsel %vm811_vm0, %v1591_v61, %v1590_v52  ;;  %v2600_v42 = vld [vmem:[%s3056_s23 + $0x1a8] sm:$0xff]  ;;  %v2605_v2 = vld [vmem:[%s3056_s23 + $0x290] sm:$0xff] }
  0xe4   : > { %v1603_v21 = vadd.f32 %v1601_v32, %v1599_v23  ;;  %v1609_v0 = vmul.f32 %v2594_v50, %v3119_v27  ;;  %v1522_v62 = vsel %vm811_vm0, %v1520_v46, %v1521_v3  ;;  %v1550_v17 = vmul.f32 %v2587_v4, %v3148_v41  ;;  %v2595_v50 = vld [vmem:[%s3056_s23 + $0x370] sm:$0xff] }
  0xe5   : > { %v1490_v18 = vadd.f32 %v1489_v39, %v1488_v19  ;;  %v1557_v7 = vadd.f32 %v1555_v22, %v1553_v35  ;;  %v1544_v10 = vadd.f32 %v1542_v48, %v1540_v56  ;;  %v1554_v53 = vmul.f32 %v3742_v44, %v1522_v62 }
  0xe6   : > { %v1607_v58 = vadd.f32 %v1605_v14, %v1603_v21  ;;  %v1613_v45 = vmul.f32 %v2596_v57, %v3135_v33  ;;  %v1597_v5 = vsel %vm811_vm0, %v1595_v47, %v1594_v51  ;;  %v1617_v6 = vmul.f32 %v1593_v28, %v3137_v34  ;;  %v3831_v57 = vld [vmem:[%s3056_s23 + $0xc0] sm:$0xff]  ;;  %v3834_v14 = vld [vmem:[%s3056_s23 + $0xc8] sm:$0xff] }
  0xe7   : > { %v1491_v30 = vrot.slane %v1490_v18, 2  ;;  %1560 = vst [vmem:[#allocation2 + $0x98] sm:$0x3f] %v1557_v7  ;;  %v1621_v46 = vmul.f32 %v3777_v37, %v3146_v40  ;;  %v1548_v3 = vadd.f32 %v1546_v8, %v1544_v10  ;;  %v1598_v55 = vmul.f32 %v3708_v29, %v3088_v11  ;;  %v2606_v8 = vld [vmem:[%s3056_s23 + $0x298] sm:$0xff] }
  0xe8   : > { %v1611_v22 = vadd.f32 %v1609_v0, %v1607_v58  ;;  %v1600_v26 = vmul.f32 %v2587_v4, %v3090_v12  ;;  %v1625_v60 = vmul.f32 %v2600_v42, %v3148_v41  ;;  %v1592_v9 = vsel %vm811_vm0, %v1590_v52, %v1591_v61 }
  0xe9   : > { %v1492_v13 = vadd.f32 %v1491_v30, %v1490_v18  ;;  %v1604_v49 = vmul.f32 %v1522_v62, %v3100_v16  ;;  %v1552_v48 = vadd.f32 %v1550_v17, %v1548_v3  ;;  %v1608_v19 = vmul.f32 %v2593_v20, %v3119_v27 }
  0xea   : > { %v1615_v31 = vadd.f32 %v1613_v45, %v1611_v22  ;;  %v1602_v36 = vadd.f32 %v1600_v26, %v1598_v55  ;;  %v1561_v23 = vsel %vm894_vm1, %v1557_v7, 0.0  ;;  %v1629_v15 = vmul.f32 %v3742_v44, %v1597_v5  ;;  %v2599_v22 = vld [vmem:[%s3056_s23 + $0x1a0] sm:$0xff] }
  0xeb   : > { %v1493_v29 = vrot.slane %v1492_v13, 1  ;;  %v1612_v32 = vmul.f32 %v2595_v50, %v3135_v33  ;;  %v3827_v39 = vadd.f32 %v1554_v53, %v1552_v48  ;;  %v1616_v35 = vmul.f32 %v1592_v9, %v3137_v34 }
  0xec   : > { %v1619_v52 = vadd.f32 %v1617_v6, %v1615_v31  ;;  %v1606_v61 = vadd.f32 %v1604_v49, %v1602_v36  ;;  %v1620_v4 = vmul.f32 %v3774_v38, %v3146_v40  ;;  %v1664_v56 = vrot.slane %v2605_v2, 1  ;;  %v2608_v6 = vld [vmem:[%s3056_s23 + $0x388] sm:$0xff] }
  0xed   : > { %v1494_v20 = vadd.f32 %v1493_v29, %v1492_v13  ;;  %v1665_v28 = vrot.slane %v2606_v8, 1  ;;  %1559 = vst [vmem:[#allocation2 + $0x90] sm:$0xff] %v3827_v39  ;;  %v1562_v21 = vadd.f32 %v1561_v23, %v3827_v39  ;;  %v1673_v7 = vmul.f32 %v3777_v37, %v3088_v11 }
  0xee   : > { %v1623_v0 = vadd.f32 %v1621_v46, %v1619_v52  ;;  %v1610_v18 = vadd.f32 %v1608_v19, %v1606_v61  ;;  %v1668_v17 = vrot.slane %v3831_v57, 1  ;;  %v1669_v10 = vrot.slane %v3834_v14, 1 }
  0xef   : > { %v1495_v62 = vadd.f32 %v1494_v20, %v1421_v1  ;;  %v1675_v53 = vmul.f32 %v2600_v42, %v3090_v12  ;;  %v1563_v58 = vrot.slane %v1562_v21, 4  ;;  %v1679_v3 = vmul.f32 %v1597_v5, %v3100_v16 }
  0xf0   : > { %v1627_v45 = vadd.f32 %v1625_v60, %v1623_v0  ;;  %v1614_v30 = vadd.f32 %v1612_v32, %v1610_v18  ;;  %v1596_v1 = vsel %vm811_vm0, %v1594_v51, %v1595_v47  ;;  %v1667_v46 = vsel %vm811_vm0, %v1665_v28, %v1664_v56  ;;  %v2607_v32 = vld [vmem:[%s3056_s23 + $0x380] sm:$0xff]  ;;  %v2618_v0 = vld [vmem:[%s3056_s23 + $0x2a8] sm:$0xff] }
  0xf1   : > { %v1677_v50 = vadd.f32 %v1675_v53, %v1673_v7  ;;  %v1683_v42 = vmul.f32 %v2606_v8, %v3119_v27  ;;  %v1564_v55 = vadd.f32 %v1563_v58, %v1562_v21  ;;  %v1624_v60 = vmul.f32 %v2599_v22, %v3148_v41  ;;  %v2617_v21 = vld [vmem:[%s3056_s23 + $0x2a0] sm:$0xff] }
  0xf2   : > { %v1631_v26 = vadd.f32 %v1629_v15, %v1627_v45  ;;  %v1618_v13 = vadd.f32 %v1616_v35, %v1614_v30  ;;  %v1628_v5 = vmul.f32 %v3742_v44, %v1596_v1  ;;  %v1687_v9 = vmul.f32 %v2608_v6, %v3135_v33  ;;  %v2612_v35 = vld [vmem:[%s3056_s23 + $0x1b8] sm:$0xff]  ;;  %v3888_v6 = vld [vmem:[%s3056_s23 + $0xd0] sm:$0xff] }
  0xf3   : > { %v1681_v37 = vadd.f32 %v1679_v3, %v1677_v50  ;;  %v1565_v49 = vrot.slane %v1564_v55, 2  ;;  %v1671_v47 = vsel %vm811_vm0, %v1669_v10, %v1668_v17  ;;  %v1691_v48 = vmul.f32 %v1667_v46, %v3137_v34 }
  0xf4   : > { %1634 = vst [vmem:[#allocation2 + $0xa8] sm:$0x3f] %v1631_v26  ;;  %v1622_v51 = vadd.f32 %v1620_v4, %v1618_v13  ;;  %v1672_v36 = vmul.f32 %v3774_v38, %v3088_v11  ;;  %v1674_v19 = vmul.f32 %v2599_v22, %v3090_v12  ;;  %v1678_v8 = vmul.f32 %v1596_v1, %v3100_v16  ;;  %v3892_v22 = vld [vmem:[%s3056_s23 + $0xd8] sm:$0xff] }
  0xf5   : > { %v1685_v31 = vadd.f32 %v1683_v42, %v1681_v37  ;;  %v1566_v29 = vadd.f32 %v1565_v49, %v1564_v55  ;;  %v1695_v15 = vmul.f32 %v3834_v14, %v3146_v40  ;;  %v1666_v52 = vsel %vm811_vm0, %v1664_v56, %v1665_v28 }
  0xf6   : > { %v1626_v23 = vadd.f32 %v1624_v60, %v1622_v51  ;;  %v1635_v61 = vsel %vm894_vm1, %v1631_v26, 0.0  ;;  %v1676_v38 = vadd.f32 %v1674_v19, %v1672_v36  ;;  %v1682_v4 = vmul.f32 %v2605_v2, %v3119_v27  ;;  %v2620_v51 = vld [vmem:[%s3056_s23 + $0x398] sm:$0xff]  ;;  %v2611_v19 = vld [vmem:[%s3056_s23 + $0x1b0] sm:$0xff] }
  0xf7   : > { %v1689_v20 = vadd.f32 %v1687_v9, %v1685_v31  ;;  %v1567_v18 = vrot.slane %v1566_v29, 1  ;;  %v1699_v53 = vmul.f32 %v2612_v35, %v3148_v41  ;;  %v1703_v58 = vmul.f32 %v3742_v44, %v1671_v47 }
  0xf8   : > { %v3881_v7 = vadd.f32 %v1628_v5, %v1626_v23  ;;  %v1680_v56 = vadd.f32 %v1678_v8, %v1676_v38  ;;  %v1686_v28 = vmul.f32 %v2607_v32, %v3135_v33  ;;  %v1690_v30 = vmul.f32 %v1666_v52, %v3137_v34 }
  0xf9   : > { %v1693_v45 = vadd.f32 %v1691_v48, %v1689_v20  ;;  %v1568_v3 = vadd.f32 %v1567_v18, %v1566_v29  ;;  %v1738_v1 = vrot.slane %v2617_v21, 1  ;;  %v1739_v46 = vrot.slane %v2618_v0, 1 }
  0xfa   : > { %v1636_v2 = vadd.f32 %v1635_v61, %v3881_v7  ;;  %v1684_v42 = vadd.f32 %v1682_v4, %v1680_v56  ;;  %v1694_v55 = vmul.f32 %v3831_v57, %v3146_v40  ;;  %v1747_v26 = vmul.f32 %v3834_v14, %v3088_v11 }
  0xfb   : > { %v1697_v50 = vadd.f32 %v1695_v15, %v1693_v45  ;;  %v1569_v13 = vadd.f32 %v1568_v3, %v1495_v62  ;;  %v1742_v5 = vrot.slane %v3888_v6, 1  ;;  %v1749_v37 = vmul.f32 %v2612_v35, %v3090_v12 }
  0xfc   : > { %v1637_v60 = vrot.slane %v1636_v2, 4  ;;  %v1688_v49 = vadd.f32 %v1686_v28, %v1684_v42  ;;  %v1743_v48 = vrot.slane %v3892_v22, 1  ;;  %v1753_v31 = vmul.f32 %v1671_v47, %v3100_v16  ;;  %v2619_v28 = vld [vmem:[%s3056_s23 + $0x390] sm:$0xff] }
  0xfd   : > { %v1701_v9 = vadd.f32 %v1699_v53, %v1697_v50  ;;  %v1741_v8 = vsel %vm811_vm0, %v1739_v46, %v1738_v1  ;;  %v1751_v29 = vadd.f32 %v1749_v37, %v1747_v26  ;;  %v1757_v62 = vmul.f32 %v2618_v0, %v3119_v27 }
  0xfe   : > { %v1638_v36 = vadd.f32 %v1637_v60, %v1636_v2  ;;  %v1670_v15 = vsel %vm811_vm0, %v1668_v17, %v1669_v10  ;;  %v1692_v32 = vadd.f32 %v1690_v30, %v1688_v49  ;;  %v1698_v52 = vmul.f32 %v2611_v19, %v3148_v41  ;;  %v2624_v2 = vld [vmem:[%s3056_s23 + $0x1c8] sm:$0xff] }
  0xff   : > { %v1705_v23 = vadd.f32 %v1703_v58, %v1701_v9  ;;  %v1702_v61 = vmul.f32 %v3742_v44, %v1670_v15  ;;  %v1755_v35 = vadd.f32 %v1753_v31, %v1751_v29  ;;  %v1761_v20 = vmul.f32 %v2620_v51, %v3135_v33  ;;  %v2630_v9 = vld [vmem:[%s3056_s23 + $0x2b8] sm:$0xff] }
 0x100   : > { %v1639_v47 = vrot.slane %v1638_v36, 2  ;;  %v1696_v38 = vadd.f32 %v1694_v55, %v1692_v32  ;;  %v1745_v14 = vsel %vm811_vm0, %v1743_v48, %v1742_v5  ;;  %v1765_v4 = vmul.f32 %v1741_v8, %v3137_v34  ;;  %v2629_v55 = vld [vmem:[%s3056_s23 + $0x2b0] sm:$0xff] }
 0x101   : > { %1708 = vst [vmem:[#allocation2 + $0xb8] sm:$0x3f] %v1705_v23  ;;  %v1746_v17 = vmul.f32 %v3831_v57, %v3088_v11  ;;  %v1759_v0 = vadd.f32 %v1757_v62, %v1755_v35  ;;  %v1748_v18 = vmul.f32 %v2611_v19, %v3090_v12  ;;  %v1752_v53 = vmul.f32 %v1670_v15, %v3100_v16 }
 0x102   : > { %v1640_v10 = vadd.f32 %v1639_v47, %v1638_v36  ;;  %v1709_v58 = vsel %vm894_vm1, %v1705_v23, 0.0  ;;  %v1700_v45 = vadd.f32 %v1698_v52, %v1696_v38  ;;  %v1769_v56 = vmul.f32 %v3892_v22, %v3146_v40 }
 0x103   : > { %v1740_v30 = vsel %vm811_vm0, %v1738_v1, %v1739_v46  ;;  %v1763_v57 = vadd.f32 %v1761_v20, %v1759_v0  ;;  %v1750_v50 = vadd.f32 %v1748_v18, %v1746_v17  ;;  %v1756_v42 = vmul.f32 %v2617_v21, %v3119_v27 }
 0x104   : > { %v1641_v3 = vrot.slane %v1640_v10, 1  ;;  %v3932_v26 = vadd.f32 %v1702_v61, %v1700_v45  ;;  %v1773_v60 = vmul.f32 %v2624_v2, %v3148_v41  ;;  %v1777_v37 = vmul.f32 %v3742_v44, %v1745_v14  ;;  %v2623_v61 = vld [vmem:[%s3056_s23 + $0x1c0] sm:$0xff] }
 0x105   : > { %v1767_v51 = vadd.f32 %v1765_v4, %v1763_v57  ;;  %v1754_v31 = vadd.f32 %v1752_v53, %v1750_v50  ;;  %v1760_v1 = vmul.f32 %v2619_v28, %v3135_v33  ;;  %v1764_v36 = vmul.f32 %v1740_v30, %v3137_v34 }
 0x106   : > { %v1642_v49 = vadd.f32 %v1641_v3, %v1640_v10  ;;  %v1710_v46 = vadd.f32 %v1709_v58, %v3932_v26  ;;  %v1812_v21 = vrot.slane %v2629_v55, 1  ;;  %v1821_v19 = vmul.f32 %v3892_v22, %v3088_v11  ;;  %v2632_v22 = vld [vmem:[%s3056_s23 + $0x3a8] sm:$0xff] }
 0x107   : > { %v1771_v29 = vadd.f32 %v1769_v56, %v1767_v51  ;;  %v1758_v62 = vadd.f32 %v1756_v42, %v1754_v31  ;;  %v1813_v23 = vrot.slane %v2630_v9, 1  ;;  %v1823_v32 = vmul.f32 %v2624_v2, %v3090_v12  ;;  %v2634_v10 = vld [vmem:[%s3056_s23 + $0xe8] sm:$0xff]  ;;  %v2636_v51 = vld [vmem:[%s3056_s23 + $0x1d8] sm:$0xff] }
 0x108   : > { %v1643_v8 = vadd.f32 %v1642_v49, %v1569_v13  ;;  %v1711_v15 = vrot.slane %v1710_v46, 4  ;;  %v1827_v52 = vmul.f32 %v1745_v14, %v3100_v16  ;;  %v1744_v35 = vsel %vm811_vm0, %v1742_v5, %v1743_v48  ;;  %v2633_v13 = vld [vmem:[%s3056_s23 + $0xe0] sm:$0xff] }
 0x109   : > { %v1775_v47 = vadd.f32 %v1773_v60, %v1771_v29  ;;  %v1762_v20 = vadd.f32 %v1760_v1, %v1758_v62  ;;  %v1768_v38 = vmul.f32 %v3888_v6, %v3146_v40  ;;  %v1772_v17 = vmul.f32 %v2623_v61, %v3148_v41 }
 0x10a   : > { %v1712_v4 = vadd.f32 %v1711_v15, %v1710_v46  ;;  %v1825_v0 = vadd.f32 %v1823_v32, %v1821_v19  ;;  %v1831_v18 = vmul.f32 %v2630_v9, %v3119_v27  ;;  %v1776_v58 = vmul.f32 %v3742_v44, %v1744_v35 }
 0x10b   : > { %v1779_v53 = vadd.f32 %v1777_v37, %v1775_v47  ;;  %v1766_v14 = vadd.f32 %v1764_v36, %v1762_v20  ;;  %v1815_v5 = vsel %vm811_vm0, %v1813_v23, %v1812_v21  ;;  %v1816_v45 = vrot.slane %v2633_v13, 1  ;;  %v2631_v37 = vld [vmem:[%s3056_s23 + $0x3a0] sm:$0xff] }
 0x10c   : > { %v1713_v48 = vrot.slane %v1712_v4, 2  ;;  %v1829_v56 = vadd.f32 %v1827_v52, %v1825_v0  ;;  %v1835_v28 = vmul.f32 %v2632_v22, %v3135_v33  ;;  %v1817_v3 = vrot.slane %v2634_v10, 1 }
 0x10d   : > { %1782 = vst [vmem:[#allocation2 + $0xc8] sm:$0x3f] %v1779_v53  ;;  %v1770_v30 = vadd.f32 %v1768_v38, %v1766_v14  ;;  %v1820_v2 = vmul.f32 %v3888_v6, %v3088_v11  ;;  %v1822_v57 = vmul.f32 %v2623_v61, %v3090_v12  ;;  %v1839_v60 = vmul.f32 %v1815_v5, %v3137_v34 }
 0x10e   : > { %v1714_v50 = vadd.f32 %v1713_v48, %v1712_v4  ;;  %v1833_v42 = vadd.f32 %v1831_v18, %v1829_v56  ;;  %v1826_v9 = vmul.f32 %v1744_v35, %v3100_v16  ;;  %v1843_v31 = vmul.f32 %v2634_v10, %v3146_v40 }
 0x10f   : > { %v1774_v49 = vadd.f32 %v1772_v17, %v1770_v30  ;;  %v1824_v1 = vadd.f32 %v1822_v57, %v1820_v2  ;;  %v1830_v46 = vmul.f32 %v2629_v55, %v3119_v27  ;;  %v1783_v19 = vsel %vm894_vm1, %v1779_v53, 0.0 }
 0x110   : > { %v1715_v36 = vrot.slane %v1714_v50, 1  ;;  %v1837_v11 = vadd.f32 %v1835_v28, %v1833_v42  ;;  %v1814_v12 = vsel %vm811_vm0, %v1812_v21, %v1813_v23  ;;  %v1819_v16 = vsel %vm811_vm0, %v1817_v3, %v1816_v45  ;;  %v2635_v23 = vld [vmem:[%s3056_s23 + $0x1d0] sm:$0xff] }
 0x111   : > { %v3970_v6 = vadd.f32 %v1776_v58, %v1774_v49  ;;  %v1828_v29 = vadd.f32 %v1826_v9, %v1824_v1  ;;  %v1834_v62 = vmul.f32 %v2631_v37, %v3135_v33  ;;  %v1847_v27 = vmul.f32 %v2636_v51, %v3148_v41  ;;  %v3993_v42 = vld [vmem:[#allocation2 + $0x10] sm:$0xff]  ;;  %v3997_v9 = vld [vmem:[#allocation2 + $0x20] sm:$0xff]  ;;  %v1898_v49 = vld [vmem:[#allocation2 + $0x28] sm:$0x3f] }
 0x112   : > { %v1716_v15 = vadd.f32 %v1715_v36, %v1714_v50  ;;  %v1841_v32 = vadd.f32 %v1839_v60, %v1837_v11  ;;  %v1838_v47 = vmul.f32 %v1814_v12, %v3137_v34  ;;  %v1851_v21 = vmul.f32 %v3742_v44, %v1819_v16  ;;  %v3991_v50 = vld [vmem:[#allocation2] sm:$0xff]  ;;  %v1883_v60 = vld [vmem:[#allocation2 + $0x18] sm:$0x3f]  ;;  %v3999_v51 = vld [vmem:[#allocation2 + $0x30] sm:$0xff] }
 0x113   : > { %v1784_v55 = vadd.f32 %v1783_v19, %v3970_v6  ;;  %v1832_v52 = vadd.f32 %v1830_v46, %v1828_v29  ;;  %v1842_v22 = vmul.f32 %v2633_v13, %v3146_v40  ;;  %v1818_v33 = vsel %vm811_vm0, %v1816_v45, %v1817_v3  ;;  %v1928_v11 = vld [vmem:[#allocation2 + $0x48] sm:$0x3f] }
 0x114   : > { %v1717_v61 = vadd.f32 %v1716_v15, %v1643_v8  ;;  %v1845_v35 = vadd.f32 %v1843_v31, %v1841_v32  ;;  %v1846_v0 = vmul.f32 %v2635_v23, %v3148_v41  ;;  %v1850_v8 = vmul.f32 %v3742_v44, %v1818_v33  ;;  %v3989_v44 = vld [vmem:[#allocation2 + $0x8] sm:$0x3f]  ;;  %v1913_v31 = vld [vmem:[#allocation2 + $0x38] sm:$0x3f] }
 0x115   : > { %v1785_v20 = vrot.slane %v1784_v55, 4  ;;  %v1836_v38 = vadd.f32 %v1834_v62, %v1832_v52 }
 0x116   : > { %v1849_v4 = vadd.f32 %v1847_v27, %v1845_v35 }
 0x117   : > { %v1786_v17 = vadd.f32 %v1785_v20, %v1784_v55  ;;  %v1840_v10 = vadd.f32 %v1838_v47, %v1836_v38  ;;  %v2696_v38 = vld [vmem:[#allocation2 + $0x40] sm:$0xff] }
 0x118   : > { %v1853_v18 = vadd.f32 %v1851_v21, %v1849_v4  ;;  %v1943_v21 = vld [vmem:[#allocation2 + $0x58] sm:$0x3f] }
 0x119   : > { %v1787_v53 = vrot.slane %v1786_v17, 2  ;;  %v1844_v34 = vadd.f32 %v1842_v22, %v1840_v10 }
 0x11a   : > { %1856 = vst [vmem:[#allocation2 + $0xd8] sm:$0x3f] %v1853_v18  ;;  %v1857_v5 = vsel %vm894_vm1, %v1853_v18, 0.0 }
 0x11b   : > { %v1788_v14 = vadd.f32 %v1787_v53, %v1786_v17  ;;  %v1848_v58 = vadd.f32 %v1846_v0, %v1844_v34 }
 0x11d   : > { %v1789_v48 = vrot.slane %v1788_v14, 1  ;;  %v3986_v40 = vadd.f32 %v1850_v8, %v1848_v58 }
 0x11f   : > { %v1790_v13 = vadd.f32 %v1789_v48, %v1788_v14  ;;  %v1858_v59 = vadd.f32 %v1857_v5, %v3986_v40 }
 0x121   : > { %v1791_v45 = vadd.f32 %v1790_v13, %v1717_v61  ;;  %v1859_v56 = vrot.slane %v1858_v59, 4  ;;  %v1958_v13 = vld [vmem:[#allocation2 + $0x68] sm:$0x3f] }
 0x123   : > { %v1860_v28 = vadd.f32 %v1859_v56, %v1858_v59 }
 0x125   : > { %v1861_v41 = vrot.slane %v1860_v28, 2 }
 0x127   : > { %v1862_v30 = vadd.f32 %v1861_v41, %v1860_v28 }
 0x129   : > { %v1863_v3 = vrot.slane %v1862_v30, 1 }
 0x12b   : > { %v1864_v2 = vadd.f32 %v1863_v3, %v1862_v30 }
 0x12d   : > { %v1865_v57 = vadd.f32 %v1864_v2, %v1791_v45 }
 0x12f   : > { %v3995_v37 = vmul.f32 0.0051020407, %v1865_v57 }
 0x131   : > { %v2064_v1 = vsub.f32 %v3986_v40, %v3995_v37  ;;  %v1869_v46 = vsub.f32 %v3991_v50, %v3995_v37  ;;  %v1870_v36 = vsub.f32 %v3989_v44, %v3995_v37  ;;  %v1884_v19 = vsub.f32 %v3993_v42, %v3995_v37 }
 0x132   : > { %v1885_v12 = vsub.f32 %v1883_v60, %v3995_v37  ;;  %v1899_v16 = vsub.f32 %v3997_v9, %v3995_v37  ;;  %v1900_v29 = vsub.f32 %v1898_v49, %v3995_v37  ;;  %v1914_v62 = vsub.f32 %v3999_v51, %v3995_v37 }
 0x133   : > { %v4015_v15 = vmul.f32 %v2064_v1, %v2064_v1  ;;  %v1871_v32 = vmul.f32 %v1869_v46, %v1869_v46  ;;  %v1872_v27 = vmul.f32 %v1870_v36, %v1870_v36  ;;  %v1886_v55 = vmul.f32 %v1884_v19, %v1884_v19 }
 0x134   : > { %v1887_v52 = vmul.f32 %v1885_v12, %v1885_v12  ;;  %v1901_v47 = vmul.f32 %v1899_v16, %v1899_v16  ;;  %v1902_v61 = vmul.f32 %v1900_v29, %v1900_v29  ;;  %v1915_v35 = vsub.f32 %v1913_v31, %v3995_v37 }
 0x135   : > { %v1873_v23 = vsel %vm894_vm1, %v1872_v27, 0.0  ;;  %v1916_v20 = vmul.f32 %v1914_v62, %v1914_v62  ;;  %v1929_v22 = vsub.f32 %v2696_v38, %v3995_v37  ;;  %v1930_v4 = vsub.f32 %v1928_v11, %v3995_v37 }
 0x136   : > { %v1874_v33 = vadd.f32 %v1873_v23, %v1871_v32  ;;  %v1888_v17 = vsel %vm894_vm1, %v1887_v52, 0.0  ;;  %v1903_v10 = vsel %vm894_vm1, %v1902_v61, 0.0  ;;  %v1917_v0 = vmul.f32 %v1915_v35, %v1915_v35 }
 0x137   : > { %v1889_v18 = vadd.f32 %v1888_v17, %v1886_v55  ;;  %v1904_v53 = vadd.f32 %v1903_v10, %v1901_v47  ;;  %v1931_v34 = vmul.f32 %v1929_v22, %v1929_v22  ;;  %v1932_v8 = vmul.f32 %v1930_v4, %v1930_v4  ;;  %v1973_v55 = vld [vmem:[#allocation2 + $0x78] sm:$0x3f] }
 0x138   : > { %v1875_v14 = vrot.slane %v1874_v33, 4  ;;  %v1918_v58 = vsel %vm894_vm1, %v1917_v0, 0.0  ;;  %v1944_v5 = vsub.f32 %v3586_v25, %v3995_v37  ;;  %v1945_v48 = vsub.f32 %v1943_v21, %v3995_v37 }
 0x139   : > { %v1890_v59 = vrot.slane %v1889_v18, 4  ;;  %v1905_v45 = vrot.slane %v1904_v53, 4  ;;  %v1919_v56 = vadd.f32 %v1918_v58, %v1916_v20  ;;  %v1933_v28 = vsel %vm894_vm1, %v1932_v8, 0.0 }
 0x13a   : > { %v1876_v41 = vadd.f32 %v1875_v14, %v1874_v33  ;;  %v1934_v30 = vadd.f32 %v1933_v28, %v1931_v34  ;;  %v1946_v3 = vmul.f32 %v1944_v5, %v1944_v5  ;;  %v1947_v2 = vmul.f32 %v1945_v48, %v1945_v48 }
 0x13b   : > { %v1891_v57 = vadd.f32 %v1890_v59, %v1889_v18  ;;  %v1906_v60 = vadd.f32 %v1905_v45, %v1904_v53  ;;  %v1920_v49 = vrot.slane %v1919_v56, 4  ;;  %v1959_v31 = vsub.f32 %v3652_v24, %v3995_v37  ;;  %v1988_v53 = vld [vmem:[#allocation2 + $0x88] sm:$0x3f]  ;;  %v2003_v45 = vld [vmem:[#allocation2 + $0x98] sm:$0x3f] }
 0x13c   : > { %v1877_v1 = vrot.slane %v1876_v41, 2  ;;  %v1935_v25 = vrot.slane %v1934_v30, 4  ;;  %v1948_v46 = vsel %vm894_vm1, %v1947_v2, 0.0  ;;  %v1960_v36 = vsub.f32 %v1958_v13, %v3995_v37 }
 0x13d   : > { %v1892_v19 = vrot.slane %v1891_v57, 2  ;;  %v1907_v11 = vrot.slane %v1906_v60, 2  ;;  %v1921_v12 = vadd.f32 %v1920_v49, %v1919_v56  ;;  %v1949_v16 = vadd.f32 %v1948_v46, %v1946_v3 }
 0x13e   : > { %v1878_v29 = vadd.f32 %v1877_v1, %v1876_v41  ;;  %v1936_v62 = vadd.f32 %v1935_v25, %v1934_v30  ;;  %v1961_v32 = vmul.f32 %v1959_v31, %v1959_v31  ;;  %v1962_v27 = vmul.f32 %v1960_v36, %v1960_v36  ;;  %v2018_v25 = vld [vmem:[#allocation2 + $0xa8] sm:$0x3f] }
 0x13f   : > { %v1893_v52 = vadd.f32 %v1892_v19, %v1891_v57  ;;  %v1908_v47 = vadd.f32 %v1907_v11, %v1906_v60  ;;  %v1922_v61 = vrot.slane %v1921_v12, 2  ;;  %v1950_v35 = vrot.slane %v1949_v16, 4 }
 0x140   : > { %v1879_v24 = vrot.slane %v1878_v29, 1  ;;  %v1937_v21 = vrot.slane %v1936_v62, 2  ;;  %v1963_v23 = vsel %vm894_vm1, %v1962_v27, 0.0  ;;  %v1974_v20 = vsub.f32 %v3710_v43, %v3995_v37 }
 0x141   : > { %v1894_v38 = vrot.slane %v1893_v52, 1  ;;  %v1909_v22 = vrot.slane %v1908_v47, 1  ;;  %v1923_v4 = vadd.f32 %v1922_v61, %v1921_v12  ;;  %v1951_v33 = vadd.f32 %v1950_v35, %v1949_v16 }
 0x142   : > { %v1880_v17 = vadd.f32 %v1879_v24, %v1878_v29  ;;  %v1938_v10 = vadd.f32 %v1937_v21, %v1936_v62  ;;  %v1964_v0 = vadd.f32 %v1963_v23, %v1961_v32  ;;  %v1975_v18 = vsub.f32 %v1973_v55, %v3995_v37 }
 0x143   : > { %v1895_v34 = vadd.f32 %v1894_v38, %v1893_v52  ;;  %v1910_v8 = vadd.f32 %v1909_v22, %v1908_v47  ;;  %v1924_v14 = vrot.slane %v1923_v4, 1  ;;  %v1952_v58 = vrot.slane %v1951_v33, 2  ;;  %v2033_v52 = vld [vmem:[#allocation2 + $0xb8] sm:$0x3f]  ;;  %v2048_v38 = vld [vmem:[#allocation2 + $0xc8] sm:$0x3f] }
 0x144   : > { %v1939_v5 = vrot.slane %v1938_v10, 1  ;;  %v1965_v48 = vrot.slane %v1964_v0, 4  ;;  %v1976_v13 = vmul.f32 %v1974_v20, %v1974_v20  ;;  %v1977_v59 = vmul.f32 %v1975_v18, %v1975_v18 }
 0x145   : > { %v1896_v43 = vadd.f32 %v1895_v34, %v1880_v17  ;;  %v1925_v56 = vadd.f32 %v1924_v14, %v1923_v4  ;;  %v1953_v28 = vadd.f32 %v1952_v58, %v1951_v33  ;;  %v1989_v41 = vsub.f32 %v3769_v54, %v3995_v37  ;;  %v2063_v34 = vld [vmem:[#allocation2 + $0xd8] sm:$0x3f] }
 0x146   : > { %v1940_v30 = vadd.f32 %v1939_v5, %v1938_v10  ;;  %v1966_v3 = vadd.f32 %v1965_v48, %v1964_v0  ;;  %v1978_v2 = vsel %vm894_vm1, %v1977_v59, 0.0  ;;  %v1990_v57 = vsub.f32 %v1988_v53, %v3995_v37 }
 0x147   : > { %v1911_v60 = vadd.f32 %v1910_v8, %v1896_v43  ;;  %v1954_v49 = vrot.slane %v1953_v28, 1  ;;  %v1979_v31 = vadd.f32 %v1978_v2, %v1976_v13  ;;  %v1991_v1 = vmul.f32 %v1989_v41, %v1989_v41 }
 0x148   : > { %v1967_v46 = vrot.slane %v1966_v3, 2  ;;  %v1992_v36 = vmul.f32 %v1990_v57, %v1990_v57  ;;  %v2004_v19 = vsub.f32 %v3827_v39, %v3995_v37  ;;  %v2005_v11 = vsub.f32 %v2003_v45, %v3995_v37 }
 0x149   : > { %v1926_v12 = vadd.f32 %v1925_v56, %v1911_v60  ;;  %v1955_v54 = vadd.f32 %v1954_v49, %v1953_v28  ;;  %v1980_v16 = vrot.slane %v1979_v31, 4  ;;  %v2019_v29 = vsub.f32 %v3881_v7, %v3995_v37 }
 0x14a   : > { %v1968_v62 = vadd.f32 %v1967_v46, %v1966_v3  ;;  %v1993_v32 = vsel %vm894_vm1, %v1992_v36, 0.0  ;;  %v2006_v27 = vmul.f32 %v2004_v19, %v2004_v19  ;;  %v2007_v55 = vmul.f32 %v2005_v11, %v2005_v11 }
 0x14b   : > { %v1941_v47 = vadd.f32 %v1940_v30, %v1926_v12  ;;  %v1981_v61 = vadd.f32 %v1980_v16, %v1979_v31  ;;  %v1994_v35 = vadd.f32 %v1993_v32, %v1991_v1  ;;  %v2020_v24 = vsub.f32 %v2018_v25, %v3995_v37 }
 0x14c   : > { %v1969_v39 = vrot.slane %v1968_v62, 1  ;;  %v2008_v21 = vsel %vm894_vm1, %v2007_v55, 0.0  ;;  %v2021_v23 = vmul.f32 %v2019_v29, %v2019_v29  ;;  %v2034_v20 = vsub.f32 %v3932_v26, %v3995_v37 }
 0x14d   : > { %v1956_v22 = vadd.f32 %v1955_v54, %v1941_v47  ;;  %v1982_v4 = vrot.slane %v1981_v61, 2  ;;  %v1995_v33 = vrot.slane %v1994_v35, 4  ;;  %v2009_v17 = vadd.f32 %v2008_v21, %v2006_v27 }
 0x14e   : > { %v1970_v10 = vadd.f32 %v1969_v39, %v1968_v62  ;;  %v2022_v0 = vmul.f32 %v2020_v24, %v2020_v24  ;;  %v2035_v18 = vsub.f32 %v2033_v52, %v3995_v37  ;;  %v2036_v53 = vmul.f32 %v2034_v20, %v2034_v20 }
 0x14f   : > { %v1983_v8 = vadd.f32 %v1982_v4, %v1981_v61  ;;  %v1996_v14 = vadd.f32 %v1995_v33, %v1994_v35  ;;  %v2010_v58 = vrot.slane %v2009_v17, 4  ;;  %v2049_v5 = vsub.f32 %v3970_v6, %v3995_v37 }
 0x150   : > { %v1971_v48 = vadd.f32 %v1970_v10, %v1956_v22  ;;  %v2023_v13 = vsel %vm894_vm1, %v2022_v0, 0.0  ;;  %v2037_v59 = vmul.f32 %v2035_v18, %v2035_v18  ;;  %v2050_v45 = vsub.f32 %v2048_v38, %v3995_v37 }
 0x151   : > { %v1984_v43 = vrot.slane %v1983_v8, 1  ;;  %v1997_v56 = vrot.slane %v1996_v14, 2  ;;  %v2011_v28 = vadd.f32 %v2010_v58, %v2009_v17  ;;  %v2024_v41 = vadd.f32 %v2023_v13, %v2021_v23 }
 0x152   : > { %v2038_v30 = vsel %vm894_vm1, %v2037_v59, 0.0  ;;  %v2051_v3 = vmul.f32 %v2049_v5, %v2049_v5  ;;  %v2052_v2 = vmul.f32 %v2050_v45, %v2050_v45  ;;  %v2065_v57 = vsub.f32 %v2063_v34, %v3995_v37 }
 0x153   : > { %v1985_v60 = vadd.f32 %v1984_v43, %v1983_v8  ;;  %v1998_v49 = vadd.f32 %v1997_v56, %v1996_v14  ;;  %v2012_v31 = vrot.slane %v2011_v28, 2  ;;  %v2025_v1 = vrot.slane %v2024_v41, 4 }
 0x154   : > { %v2039_v25 = vadd.f32 %v2038_v30, %v2036_v53  ;;  %v2053_v46 = vsel %vm894_vm1, %v2052_v2, 0.0  ;;  %v2067_v36 = vmul.f32 %v2065_v57, %v2065_v57 }
 0x155   : > { %v1986_v19 = vadd.f32 %v1985_v60, %v1971_v48  ;;  %v1999_v11 = vrot.slane %v1998_v49, 1  ;;  %v2013_v12 = vadd.f32 %v2012_v31, %v2011_v28  ;;  %v2026_v54 = vadd.f32 %v2025_v1, %v2024_v41  ;;  %v2080_v28 = vld [vmem:[%s784_s26] sm:$0x1]  ;;  %v2104_v60 = vld [vmem:[#allocation2 + $0x18] sm:$0x3f] }
 0x156   : > { %v2040_v16 = vrot.slane %v2039_v25, 4  ;;  %v2054_v29 = vadd.f32 %v2053_v46, %v2051_v3  ;;  %v2068_v62 = vsel %vm894_vm1, %v2067_v36, 0.0  ;;  %v2082_v3 = vld [vmem:[%s787_s29] sm:$0x1]  ;;  %v2113_v36 = vld [vmem:[#allocation2 + $0x28] sm:$0x3f] }
 0x157   : > { %v2000_v32 = vadd.f32 %v1999_v11, %v1998_v49  ;;  %v2014_v27 = vrot.slane %v2013_v12, 1  ;;  %v2027_v55 = vrot.slane %v2026_v54, 2  ;;  %v2069_v52 = vadd.f32 %v2068_v62, %v4015_v15  ;;  %v2130_v49 = vld [vmem:[#allocation2 + $0x40] sm:$0xff] }
 0x158   : > { %v2041_v47 = vadd.f32 %v2040_v16, %v2039_v25  ;;  %v2055_v61 = vrot.slane %v2054_v29, 4  ;;  %v2148_v11 = vld [vmem:[#allocation2 + $0x60] sm:$0xff] }
 0x159   : > { %v2001_v35 = vadd.f32 %v2000_v32, %v1986_v19  ;;  %v2015_v24 = vadd.f32 %v2014_v27, %v2013_v12  ;;  %v2028_v39 = vadd.f32 %v2027_v55, %v2026_v54  ;;  %v2070_v21 = vrot.slane %v2069_v52, 4  ;;  %v2139_v19 = vld [vmem:[#allocation2 + $0x50] sm:$0xff]  ;;  %v2140_v27 = vld [vmem:[#allocation2 + $0x58] sm:$0x3f]  ;;  %v2149_v55 = vld [vmem:[#allocation2 + $0x68] sm:$0x3f] }
 0x15a   : > { %v2042_v23 = vrot.slane %v2041_v47, 2  ;;  %v2056_v20 = vadd.f32 %v2055_v61, %v2054_v29  ;;  %v2131_v29 = vld [vmem:[#allocation2 + $0x48] sm:$0x3f] }
 0x15b   : > { %v2016_v38 = vadd.f32 %v2015_v24, %v2001_v35  ;;  %v2029_v22 = vrot.slane %v2028_v39, 1  ;;  %v2071_v4 = vadd.f32 %v2070_v21, %v2069_v52 }
 0x15c   : > { %v2043_v33 = vadd.f32 %v2042_v23, %v2041_v47  ;;  %v2057_v17 = vrot.slane %v2056_v20, 2 }
 0x15d   : > { %v2030_v10 = vadd.f32 %v2029_v22, %v2028_v39  ;;  %v2072_v0 = vrot.slane %v2071_v4, 2  ;;  %v2157_v39 = vld [vmem:[#allocation2 + $0x70] sm:$0xff]  ;;  %v2166_v22 = vld [vmem:[#allocation2 + $0x80] sm:$0xff] }
 0x15e   : > { %v2044_v18 = vrot.slane %v2043_v33, 1  ;;  %v2058_v53 = vadd.f32 %v2057_v17, %v2056_v20 }
 0x15f   : > { %v2031_v15 = vadd.f32 %v2030_v10, %v2016_v38  ;;  %v2073_v34 = vadd.f32 %v2072_v0, %v2071_v4  ;;  %v2175_v4 = vld [vmem:[#allocation2 + $0x90] sm:$0xff] }
 0x160   : > { %v2045_v8 = vadd.f32 %v2044_v18, %v2043_v33  ;;  %v2059_v14 = vrot.slane %v2058_v53, 1  ;;  %v2158_v18 = vld [vmem:[#allocation2 + $0x78] sm:$0x3f] }
 0x161   : > { %v2074_v58 = vrot.slane %v2073_v34, 1 }
 0x162   : > { %v2046_v5 = vadd.f32 %v2045_v8, %v2031_v15  ;;  %v2060_v48 = vadd.f32 %v2059_v14, %v2058_v53  ;;  %v2167_v14 = vld [vmem:[#allocation2 + $0x88] sm:$0x3f] }
 0x163   : > { %v2075_v59 = vadd.f32 %v2074_v58, %v2073_v34  ;;  %v2176_v58 = vld [vmem:[#allocation2 + $0x98] sm:$0x3f] }
 0x164   : > { %v2061_v13 = vadd.f32 %v2060_v48, %v2046_v5 }
 0x166   : > { %v2076_v45 = vadd.f32 %v2075_v59, %v2061_v13 }
 0x168   : > { %v2077_v43 = vmul.f32 0.0051020407, %v2076_v45  ;;  %v2185_v45 = vld [vmem:[#allocation2 + $0xa8] sm:$0x3f] }
 0x16a   : > { %v2078_v56 = vadd.f32 1e-05, %v2077_v43 }
 0x16c   : > { %2693 = vrsqrt.f32 %v2078_v56 }
 0x176   : > { %v2694_v41 = vpop.eup %2693 }
 0x177   : > { %v2081_v30 = vmul.f32 %v2694_v41, %v2080_v28 }
 0x179   : > { %v2083_v2 = vmul.f32 %v2081_v30, %v3995_v37  ;;  %v4070_v57 = vrot.slane %v2081_v30, %v3066_v63 }
 0x17b   : > { %v2084_v31 = vsub.f32 %v2082_v3, %v2083_v2  ;;  %v2091_v1 = vmul.f32 %v4070_v57, %v3991_v50  ;;  %v2092_v25 = vmul.f32 %v4070_v57, %v3989_v44  ;;  %v2105_v46 = vmul.f32 %v4070_v57, %v3993_v42  ;;  %v2122_v50 = vld [vmem:[#allocation2 + $0x38] sm:$0x3f] }
 0x17c   : > { %v2106_v37 = vmul.f32 %v2104_v60, %v4070_v57  ;;  %v2114_v12 = vmul.f32 %v4070_v57, %v3997_v9  ;;  %v2115_v54 = vmul.f32 %v2113_v36, %v4070_v57  ;;  %v2123_v16 = vmul.f32 %v4070_v57, %v3999_v51  ;;  %v2212_v36 = vld [vmem:[#allocation2 + $0xd8] sm:$0x3f] }
 0x17d   : > { %v4086_v44 = vrot.slane %v2084_v31, %v3066_v63  ;;  %v2124_v42 = vmul.f32 %v2122_v50, %v4070_v57  ;;  %v2132_v62 = vmul.f32 %v2130_v49, %v4070_v57  ;;  %v2133_v32 = vmul.f32 %v2131_v29, %v4070_v57  ;;  %v2194_v49 = vld [vmem:[#allocation2 + $0xb8] sm:$0x3f] }
 0x17e   : > { %v2141_v9 = vmul.f32 %v2139_v19, %v4070_v57  ;;  %v2142_v52 = vmul.f32 %v2140_v27, %v4070_v57  ;;  %v2150_v51 = vmul.f32 %v2148_v11, %v4070_v57  ;;  %v2151_v47 = vmul.f32 %v2149_v55, %v4070_v57 }
 0x17f   : > { %v2099_v63 = vadd.f32 %v4086_v44, %v2091_v1  ;;  %v2100_v61 = vadd.f32 %v4086_v44, %v2092_v25  ;;  %v2107_v35 = vadd.f32 %v2105_v46, %v4086_v44  ;;  %v2108_v24 = vadd.f32 %v2106_v37, %v4086_v44  ;;  %v2203_v46 = vld [vmem:[#allocation2 + $0xc8] sm:$0x3f] }
 0x180   : > { %v2116_v21 = vadd.f32 %v2114_v12, %v4086_v44  ;;  %v2117_v23 = vadd.f32 %v2115_v54, %v4086_v44  ;;  %v2125_v20 = vadd.f32 %v2123_v16, %v4086_v44  ;;  %v2126_v38 = vadd.f32 %v2124_v42, %v4086_v44 }
 0x181   : > { %2101 = vst [vmem:[%s4105_s5] sm:$0xff] %v2099_v63  ;;  %2102 = vst [vmem:[%s4105_s5 + $0x8] sm:$0x3f] %v2100_v61  ;;  %v2134_v33 = vadd.f32 %v2132_v62, %v4086_v44  ;;  %v2135_v17 = vadd.f32 %v2133_v32, %v4086_v44  ;;  %v2143_v10 = vadd.f32 %v2141_v9, %v4086_v44 }
 0x182   : > { %2637 = vst [vmem:[%s4105_s5 + $0x10] sm:$0xff] %v2107_v35  ;;  %2638 = vst [vmem:[%s4105_s5 + $0x18] sm:$0x3f] %v2108_v24  ;;  %v2144_v0 = vadd.f32 %v2142_v52, %v4086_v44  ;;  %v2152_v53 = vadd.f32 %v2150_v51, %v4086_v44  ;;  %v2153_v15 = vadd.f32 %v2151_v47, %v4086_v44 }
 0x183   : > { %2639 = vst [vmem:[%s4105_s5 + $0x20] sm:$0xff] %v2116_v21  ;;  %2640 = vst [vmem:[%s4105_s5 + $0x28] sm:$0x3f] %v2117_v23  ;;  %v2159_v34 = vmul.f32 %v2157_v39, %v4070_v57  ;;  %v2160_v8 = vmul.f32 %v2158_v18, %v4070_v57  ;;  %v2168_v5 = vmul.f32 %v2166_v22, %v4070_v57 }
 0x184   : > { %2641 = vst [vmem:[%s4105_s5 + $0x30] sm:$0xff] %v2125_v20  ;;  %2642 = vst [vmem:[%s4105_s5 + $0x38] sm:$0x3f] %v2126_v38  ;;  %v2169_v48 = vmul.f32 %v2167_v14, %v4070_v57  ;;  %v2177_v13 = vmul.f32 %v2175_v4, %v4070_v57  ;;  %v2178_v59 = vmul.f32 %v2176_v58, %v4070_v57 }
 0x185   : > { %2643 = vst [vmem:[%s4105_s5 + $0x40] sm:$0xff] %v2134_v33  ;;  %2644 = vst [vmem:[%s4105_s5 + $0x48] sm:$0x3f] %v2135_v17  ;;  %v2161_v43 = vadd.f32 %v2159_v34, %v4086_v44  ;;  %v2162_v56 = vadd.f32 %v2160_v8, %v4086_v44  ;;  %v2186_v28 = vmul.f32 %v4070_v57, %v3881_v7 }
 0x186   : > { %2645 = vst [vmem:[%s4105_s5 + $0x50] sm:$0xff] %v2143_v10  ;;  %2646 = vst [vmem:[%s4105_s5 + $0x58] sm:$0x3f] %v2144_v0  ;;  %v2187_v41 = vmul.f32 %v2185_v45, %v4070_v57  ;;  %v2170_v30 = vadd.f32 %v2168_v5, %v4086_v44  ;;  %v2171_v3 = vadd.f32 %v2169_v48, %v4086_v44 }
 0x187   : > { %2647 = vst [vmem:[%s4105_s5 + $0x60] sm:$0xff] %v2152_v53  ;;  %2648 = vst [vmem:[%s4105_s5 + $0x68] sm:$0x3f] %v2153_v15  ;;  %v2179_v2 = vadd.f32 %v2177_v13, %v4086_v44  ;;  %v2180_v60 = vadd.f32 %v2178_v59, %v4086_v44  ;;  %v2188_v7 = vadd.f32 %v2186_v28, %v4086_v44 }
 0x188   : > { %2649 = vst [vmem:[%s4105_s5 + $0x70] sm:$0xff] %v2161_v43  ;;  %2650 = vst [vmem:[%s4105_s5 + $0x78] sm:$0x3f] %v2162_v56  ;;  %v2189_v31 = vadd.f32 %v2187_v41, %v4086_v44  ;;  %v2195_v1 = vmul.f32 %v4070_v57, %v3932_v26  ;;  %v2196_v25 = vmul.f32 %v2194_v49, %v4070_v57  ;;  %2226 = sbr.rel (!%p2781_p5) target bundleno = 413 (0x19d), region = 116 }
 0x189   : > { %2651 = vst [vmem:[%s4105_s5 + $0x80] sm:$0xff] %v2170_v30  ;;  %2652 = vst [vmem:[%s4105_s5 + $0x88] sm:$0x3f] %v2171_v3  ;;  %v2204_v19 = vmul.f32 %v4070_v57, %v3970_v6  ;;  %v2205_v11 = vmul.f32 %v2203_v46, %v4070_v57  ;;  %v2213_v26 = vmul.f32 %v4070_v57, %v3986_v40  ;;  %v2310_v40 = vld [vmem:[%s4105_s5] sm:$0xff] (%p2781_p5)  ;;  %v2316_v42 = vld [vmem:[%s4105_s5 + $0x18] sm:$0xff] (%p2781_p5) }
 0x18a   : > { %2653 = vst [vmem:[%s4105_s5 + $0x90] sm:$0xff] %v2179_v2  ;;  %2654 = vst [vmem:[%s4105_s5 + $0x98] sm:$0x3f] %v2180_v60  ;;  %v2214_v37 = vmul.f32 %v2212_v36, %v4070_v57  ;;  %v2197_v12 = vadd.f32 %v2195_v1, %v4086_v44  ;;  %v2198_v54 = vadd.f32 %v2196_v25, %v4086_v44  ;;  %v2312_v57 = vld [vmem:[%s4105_s5 + $0x8] sm:$0xff] (%p2781_p5)  ;;  %v2318_v62 = vld [vmem:[%s4105_s5 + $0x20] sm:$0xff] (%p2781_p5) }
 0x18b   : > { %2655 = vst [vmem:[%s4105_s5 + $0xa0] sm:$0xff] %v2188_v7  ;;  %2656 = vst [vmem:[%s4105_s5 + $0xa8] sm:$0x3f] %v2189_v31  ;;  %v2206_v16 = vadd.f32 %v2204_v19, %v4086_v44  ;;  %v2207_v50 = vadd.f32 %v2205_v11, %v4086_v44  ;;  %v2215_v6 = vadd.f32 %v2213_v26, %v4086_v44  ;;  %v2320_v32 = vld [vmem:[%s4105_s5 + $0x28] sm:$0xff] (%p2781_p5)  ;;  %v2322_v27 = vld [vmem:[%s4105_s5 + $0x30] sm:$0xff] (%p2781_p5) }
 0x18c   : > { %v2216_v29 = vadd.f32 %v2214_v37, %v4086_v44  ;;  %2657 = vst [vmem:[%s4105_s5 + $0xb0] sm:$0xff] %v2197_v12  ;;  %2658 = vst [vmem:[%s4105_s5 + $0xb8] sm:$0x3f] %v2198_v54  ;;  %v2314_v44 = vld [vmem:[%s4105_s5 + $0x10] sm:$0xff] (%p2781_p5)  ;;  %v2324_v55 = vld [vmem:[%s4105_s5 + $0x38] sm:$0xff] (%p2781_p5) }
 0x18d   : > { %2659 = vst [vmem:[%s4105_s5 + $0xc0] sm:$0xff] %v2206_v16  ;;  %2660 = vst [vmem:[%s4105_s5 + $0xc8] sm:$0x3f] %v2207_v50  ;;  %v2326_v9 = vld [vmem:[%s4105_s5 + $0x40] sm:$0xff] (%p2781_p5)  ;;  %v2328_v52 = vld [vmem:[%s4105_s5 + $0x48] sm:$0xff] (%p2781_p5) }
 0x18e   : > { %2661 = vst [vmem:[%s4105_s5 + $0xd0] sm:$0xff] %v2215_v6  ;;  %2662 = vst [vmem:[%s4105_s5 + $0xd8] sm:$0x3f] %v2216_v29  ;;  %v2330_v51 = vld [vmem:[%s4105_s5 + $0x50] sm:$0xff] (%p2781_p5)  ;;  %v2332_v47 = vld [vmem:[%s4105_s5 + $0x58] sm:$0xff] (%p2781_p5) }
 0x18f   : > { %2311 = vst [vmem:[%s4182_s9] sm:$0xff] %v2310_v40  ;;  %2313 = vst [vmem:[%s4182_s9 + $0x10] sm:$0xff] %v2312_v57  ;;  %v2334_v63 = vld [vmem:[%s4105_s5 + $0x60] sm:$0xff]  ;;  %v2336_v61 = vld [vmem:[%s4105_s5 + $0x68] sm:$0xff] }
 0x190   : > { %2315 = vst [vmem:[%s4182_s9 + $0x20] sm:$0xff] %v2314_v44  ;;  %2317 = vst [vmem:[%s4182_s9 + $0x30] sm:$0xff] %v2316_v42  ;;  %v2338_v35 = vld [vmem:[%s4105_s5 + $0x70] sm:$0xff]  ;;  %v2340_v24 = vld [vmem:[%s4105_s5 + $0x78] sm:$0xff] }
 0x191   : > { %2319 = vst [vmem:[%s4182_s9 + $0x40] sm:$0xff] %v2318_v62  ;;  %2321 = vst [vmem:[%s4182_s9 + $0x50] sm:$0xff] %v2320_v32  ;;  %v2342_v39 = vld [vmem:[%s4105_s5 + $0x80] sm:$0xff]  ;;  %v2344_v21 = vld [vmem:[%s4105_s5 + $0x88] sm:$0xff] }
 0x192   : > { %2323 = vst [vmem:[%s4182_s9 + $0x60] sm:$0xff] %v2322_v27  ;;  %2325 = vst [vmem:[%s4182_s9 + $0x70] sm:$0xff] %v2324_v55  ;;  %v2346_v23 = vld [vmem:[%s4105_s5 + $0x90] sm:$0xff]  ;;  %v2348_v20 = vld [vmem:[%s4105_s5 + $0x98] sm:$0xff] }
 0x193   : > { %2327 = vst [vmem:[%s4182_s9 + $0x80] sm:$0xff] %v2326_v9  ;;  %2329 = vst [vmem:[%s4182_s9 + $0x90] sm:$0xff] %v2328_v52  ;;  %v2350_v38 = vld [vmem:[%s4105_s5 + $0xa0] sm:$0xff]  ;;  %v2352_v22 = vld [vmem:[%s4105_s5 + $0xa8] sm:$0xff] }
 0x194   : > { %2331 = vst [vmem:[%s4182_s9 + $0xa0] sm:$0xff] %v2330_v51  ;;  %2333 = vst [vmem:[%s4182_s9 + $0xb0] sm:$0xff] %v2332_v47  ;;  %v2354_v4 = vld [vmem:[%s4105_s5 + $0xb0] sm:$0xff]  ;;  %v2356_v33 = vld [vmem:[%s4105_s5 + $0xb8] sm:$0xff] }
 0x195   : > { %2335 = vst [vmem:[%s4182_s9 + $0xc0] sm:$0xff] %v2334_v63  ;;  %2337 = vst [vmem:[%s4182_s9 + $0xd0] sm:$0xff] %v2336_v61  ;;  %v2358_v17 = vld [vmem:[%s4105_s5 + $0xc0] sm:$0xff]  ;;  %v2360_v10 = vld [vmem:[%s4105_s5 + $0xc8] sm:$0xff] }
 0x196   : > { %2339 = vst [vmem:[%s4182_s9 + $0xe0] sm:$0xff] %v2338_v35  ;;  %2341 = vst [vmem:[%s4182_s9 + $0xf0] sm:$0xff] %v2340_v24  ;;  %v2362_v0 = vld [vmem:[%s4105_s5 + $0xd0] sm:$0xff]  ;;  %v2364_v18 = vld [vmem:[%s4105_s5 + $0xd8] sm:$0xff] }
 0x197   : > { %2343 = vst [vmem:[%s4182_s9 + $0x100] sm:$0xff] %v2342_v39  ;;  %2345 = vst [vmem:[%s4182_s9 + $0x110] sm:$0xff] %v2344_v21 }
 0x198   : > { %2347 = vst [vmem:[%s4182_s9 + $0x120] sm:$0xff] %v2346_v23  ;;  %2349 = vst [vmem:[%s4182_s9 + $0x130] sm:$0xff] %v2348_v20 }
 0x199   : > { %2351 = vst [vmem:[%s4182_s9 + $0x140] sm:$0xff] %v2350_v38  ;;  %2353 = vst [vmem:[%s4182_s9 + $0x150] sm:$0xff] %v2352_v22 }
 0x19a   : > { %2355 = vst [vmem:[%s4182_s9 + $0x160] sm:$0xff] %v2354_v4  ;;  %2357 = vst [vmem:[%s4182_s9 + $0x170] sm:$0xff] %v2356_v33 }
 0x19b   : > { %2359 = vst [vmem:[%s4182_s9 + $0x180] sm:$0xff] %v2358_v17  ;;  %2361 = vst [vmem:[%s4182_s9 + $0x190] sm:$0xff] %v2360_v10 }
 0x19c   : > { %2363 = vst [vmem:[%s4182_s9 + $0x1a0] sm:$0xff] %v2362_v0  ;;  %2365 = vst [vmem:[%s4182_s9 + $0x1b0] sm:$0xff] %v2364_v18 }
 0x19d PF: > { %p11_p11 = scmp.ge.s32.totalorder %s2765_s19, 4   ;;  %s4286_s15 = smov %s2715_s16 }
 0x19e   : > { %s4287_s16 = smov %s2775_s22  ;;  %s4288_s17 = smov %s2765_s19 }
 0x19f   :  { %13 = sbr.rel (!%p11_p11) target bundleno = 2 (0x2), region = 282 }

</bundles_post_ra>
